<compile_context>
chip_gen: v6e
topology: v6e:2x2x1
jax: 0.10.0
libtpu: 0.0.40
codegen_flags: <defaults>
</compile_context>

<pallas_src>
import functools
import math

import jax
import jax.numpy as jnp
from jax.experimental import pallas as pl
from jax.experimental.pallas import tpu as pltpu

_BN_EPS = 1e-5
_LANE = 128          # lane width; pixel tiles are multiples of this
_MAX_TILE_P = 1024   # upper bound on pixels per grid step


# ----------------------------- Pallas kernels ------------------------------

def _conv1x1_kernel(x_ref, w_ref, shift_ref, o_ref, *, relu):
    """o = relu?( w @ x + shift );  w:(Cout,Cin) bf16, x:(Cin,TILE_P) bf16."""
    y = jnp.dot(w_ref[...], x_ref[...], preferred_element_type=jnp.float32)
    y = y + shift_ref[...]
    if relu:
        y = jnp.maximum(y, 0.0)
    o_ref[...] = y.astype(o_ref.dtype)


def _sum3_conv_kernel(*refs, relu, has_residual):
    """o = relu?( w @ (a+b+c) + shift ) [+ res]  — fused sum + 1x1 conv + BN affine."""
    if has_residual:
        a_ref, b_ref, c_ref, res_ref, w_ref, shift_ref, o_ref = refs
    else:
        a_ref, b_ref, c_ref, w_ref, shift_ref, o_ref = refs
        res_ref = None
    s = (a_ref[...].astype(jnp.float32) + b_ref[...].astype(jnp.float32)
         + c_ref[...].astype(jnp.float32))
    y = jnp.dot(w_ref[...], s.astype(jnp.bfloat16),
                preferred_element_type=jnp.float32)
    y = y + shift_ref[...]
    if relu:
        y = jnp.maximum(y, 0.0)
    if has_residual:
        y = y + res_ref[...].astype(jnp.float32)
    o_ref[...] = y.astype(o_ref.dtype)


# ------------------------------ tiling helpers ------------------------------

def _round_up(x, m):
    return ((x + m - 1) // m) * m


def _plan_rows(p):
    """Pick (p_pad, tile): tile | p_pad, tile % 128 == 0, tile <= 1024, and
    >= 2 grid steps when there is enough work (v7x has 2 TensorCores)."""
    p_pad = _round_up(p, _LANE)
    if p_pad <= 2 * _LANE:
        return p_pad, p_pad
    tile = min(_MAX_TILE_P, _round_up(p_pad // 2, _LANE))
    return _round_up(p_pad, tile), tile


def _flatten_pad(x, p, p_pad, dtype=None):
    x2 = x.reshape(x.shape[0], -1)
    if dtype is not None:
        x2 = x2.astype(dtype)
    if p_pad != p:
        x2 = jnp.pad(x2, ((0, 0), (0, p_pad - p)))
    return x2


# ------------------------------ JAX wrappers --------------------------------

def conv1x1(x, w_eff, shift, *, relu, out_dtype=jnp.bfloat16):
    """1x1 conv (BN scale pre-folded into w_eff) + shift + optional ReLU.

    x: (Cin, *spatial) channel-major slab; returns (Cout, *spatial)."""
    cin = x.shape[0]
    spatial = x.shape[1:]
    p = math.prod(spatial)
    p_pad, tile = _plan_rows(p)
    xp = _flatten_pad(x, p, p_pad, jnp.bfloat16)
    cout = w_eff.shape[0]

    out = pl.pallas_call(
        functools.partial(_conv1x1_kernel, relu=relu),
        out_shape=jax.ShapeDtypeStruct((cout, p_pad), out_dtype),
        grid=(p_pad // tile,),
        in_specs=[
            pl.BlockSpec((cin, tile), lambda i: (0, i)),
            pl.BlockSpec((cout, cin), lambda i: (0, 0)),   # resident weights
            pl.BlockSpec((cout, 1), lambda i: (0, 0)),     # resident bias
        ],
        out_specs=pl.BlockSpec((cout, tile), lambda i: (0, i)),
        compiler_params=pltpu.CompilerParams(dimension_semantics=("parallel",)),
    )(xp, w_eff.astype(jnp.bfloat16), shift.reshape(cout, 1).astype(jnp.float32))
    return out[:, :p].reshape((cout,) + spatial)


def sum3_conv_bn_act(x, fu, lfu, w_eff, shift, *, residual=None, relu=True,
                     out_dtype=jnp.float32):
    """relu( bn_scale*conv2(x+fu+lfu) + bn_shift ) [+ residual], fully fused.

    All slabs are channel-major (C, *spatial); BN scale pre-folded into w_eff."""
    cin = x.shape[0]
    spatial = x.shape[1:]
    p = math.prod(spatial)
    p_pad, tile = _plan_rows(p)
    cout = w_eff.shape[0]

    operands = [_flatten_pad(x, p, p_pad, jnp.bfloat16),
                _flatten_pad(fu, p, p_pad, jnp.bfloat16),
                _flatten_pad(lfu, p, p_pad, jnp.bfloat16)]
    in_specs = [pl.BlockSpec((cin, tile), lambda i: (0, i)) for _ in range(3)]

    has_res = residual is not None
    if has_res:
        operands.append(_flatten_pad(residual, p, p_pad))     # residual kept in f32
        in_specs.append(pl.BlockSpec((cout, tile), lambda i: (0, i)))

    operands += [w_eff.astype(jnp.bfloat16),
                 shift.reshape(cout, 1).astype(jnp.float32)]
    in_specs += [pl.BlockSpec((cout, cin), lambda i: (0, 0)),
                 pl.BlockSpec((cout, 1), lambda i: (0, 0))]

    out = pl.pallas_call(
        functools.partial(_sum3_conv_kernel, relu=relu, has_residual=has_res),
        out_shape=jax.ShapeDtypeStruct((cout, p_pad), out_dtype),
        grid=(p_pad // tile,),
        in_specs=in_specs,
        out_specs=pl.BlockSpec((cout, tile), lambda i: (0, i)),
        compiler_params=pltpu.CompilerParams(dimension_semantics=("parallel",)),
    )(*operands)
    return out[:, :p].reshape((cout,) + spatial)


def fourier_unit(x, w_eff, shift):
    """FourierUnit.forward (defaults: no pos-enc, 2-D FFT, ortho norm) on a
    channel-major (C, N, H, W) slab.  Returns (Cout, N, H, W) bf16."""
    c, n, h, w = x.shape
    # TODO(synk): rfft2/irfft2 have no Pallas primitive; kept as jnp.fft glue.
    ff = jnp.fft.rfft2(x.astype(jnp.float32), axes=(-2, -1), norm="ortho")    # (C,N,H,Wf)
    wf = ff.shape[-1]
    stacked = jnp.stack((ff.real, ff.imag), axis=1).reshape(2 * c, n, h, wf)  # [c0_re,c0_im,...]
    y = conv1x1(stacked, w_eff, shift, relu=True, out_dtype=jnp.float32)      # (2*Cout,N,H,Wf)
    y = y.reshape(y.shape[0] // 2, 2, n, h, wf)
    comp = jax.lax.complex(y[:, 0], y[:, 1])
    out = jnp.fft.irfft2(comp, s=(h, w), axes=(-2, -1), norm="ortho")         # (Cout,N,H,W)
    return out.astype(jnp.bfloat16)


def _ffc_bn_act_g(xg, bp, *, residual, out_dtype, enable_lfu=True):
    """Global branch of FFC_BN_ACT (ratio=1): SpectralTransform(stride=1)
    + eval-mode BatchNorm + ReLU, with the ResNet residual optionally fused."""
    # conv1 (1x1) + BN + ReLU
    x1 = conv1x1(xg, bp["conv1_w_eff"], bp["conv1_shift"], relu=True,
                 out_dtype=jnp.bfloat16)                                      # (c_half,N,H,W)
    # global Fourier unit
    fu = fourier_unit(x1, bp["fu_w_eff"], bp["fu_shift"])                     # (c_half,N,H,W)
    if enable_lfu:
        c = x1.shape[0]
        xs = jnp.concatenate(jnp.split(x1[: c // 4], 2, axis=2), axis=0)      # split H, cat C
        xs = jnp.concatenate(jnp.split(xs, 2, axis=3), axis=0)                # split W, cat C
        xs = fourier_unit(xs, bp["lfu_w_eff"], bp["lfu_shift"])               # (c_half,N,H/2,W/2)
        # TODO(synk): the 2x2 spatial replication could be folded into the sum
        # kernel's index_map (2-D spatial grid with modulo); materialized here
        # since the tensor is tiny.
        xs = jnp.tile(xs, (1, 1, 2, 2))
    else:
        xs = jnp.zeros_like(fu)
    # conv2(x + fu + xs) + outer BN + ReLU (+ residual) in one fused kernel
    return sum3_conv_bn_act(x1, fu, xs, bp["conv2_w_eff"], bp["conv2_shift"],
                            residual=residual, relu=True, out_dtype=out_dtype)


def ffc_resnet_block(x_nchw, params, *, enable_lfu=True):
    """FFCResnetBlock.forward for the all-global config (ratio_gin=ratio_gout=1).
    The local branch is identically zero; the global-branch tensor is returned."""
    xg = jnp.transpose(x_nchw, (1, 0, 2, 3))          # (C,N,H,W): one layout for the whole chain
    h1 = _ffc_bn_act_g(xg, params["block1"], residual=None,
                       out_dtype=jnp.bfloat16, enable_lfu=enable_lfu)
    out = _ffc_bn_act_g(h1, params["block2"], residual=xg,
                        out_dtype=jnp.float32, enable_lfu=enable_lfu)
    return jnp.transpose(out, (1, 0, 2, 3))           # back to NCHW


# ----------------------------- parameter init -------------------------------

def _bn_affine(key, c):
    kg, kb, km, kv = jax.random.split(key, 4)
    gamma = 1.0 + 0.1 * jax.random.normal(kg, (c,), jnp.float32)
    beta = 0.1 * jax.random.normal(kb, (c,), jnp.float32)
    mean = 0.1 * jax.random.normal(km, (c,), jnp.float32)
    var = 1.0 + 0.1 * jnp.abs(jax.random.normal(kv, (c,), jnp.float32))
    scale = gamma / jnp.sqrt(var + _BN_EPS)
    shift = beta - mean * scale
    return scale, shift


def _init_ffc_bn_act_g(key, dim):
    """SpectralTransform(dim, dim) + outer BatchNorm(dim); BN scales pre-folded."""
    c_half = dim // 2
    ks = jax.random.split(key, 8)
    conv1_w = 0.1 * jax.random.normal(ks[0], (c_half, dim), jnp.float32)
    s1, b1 = _bn_affine(ks[1], c_half)
    fu_w = 0.1 * jax.random.normal(ks[2], (2 * c_half, 2 * c_half), jnp.float32)
    sf, bf = _bn_affine(ks[3], 2 * c_half)
    lfu_w = 0.1 * jax.random.normal(ks[4], (2 * c_half, 2 * c_half), jnp.float32)
    sl, bl = _bn_affine(ks[5], 2 * c_half)
    conv2_w = 0.1 * jax.random.normal(ks[6], (dim, c_half), jnp.float32)
    sg, bg = _bn_affine(ks[7], dim)                   # FFC_BN_ACT.bn_g
    return {
        "conv1_w_eff": conv1_w * s1[:, None], "conv1_shift": b1,
        "fu_w_eff": fu_w * sf[:, None], "fu_shift": bf,
        "lfu_w_eff": lfu_w * sl[:, None], "lfu_shift": bl,
        "conv2_w_eff": conv2_w * sg[:, None], "conv2_shift": bg,
    }


def init_params(key, dim):
    k1, k2 = jax.random.split(key)
    return {"block1": _init_ffc_bn_act_g(k1, dim),
            "block2": _init_ffc_bn_act_g(k2, dim)}


# ---------------------------------- main -------------------------------------

if __name__ == "__main__":
    key = jax.random.PRNGKey(0)
    kx, kp = jax.random.split(key)

    N, DIM, H, W = 2, 16, 16, 16     # DIM % 8 == 0 so the LFU channel split works
    x = jax.random.normal(kx, (N, DIM, H, W), jnp.float32)
    params = init_params(kp, DIM)

    y = jax.jit(ffc_resnet_block)(x, params)
    y = jax.block_until_ready(y)

    assert y.shape == (N, DIM, H, W), y.shape
    assert bool(jnp.all(jnp.isfinite(y)))
    print("KERNEL_OK")
</pallas_src>

<mosaic_0001>
module attributes {stable_mosaic.version = 11 : i64} {
  func.func @_conv1x1_kernel(%arg0: i32, %arg1: memref<16x256xbf16, #tpu.memory_space<vmem>>, %arg2: memref<8x16xbf16, #tpu.memory_space<vmem>>, %arg3: memref<8x1xf32, #tpu.memory_space<vmem>>, %arg4: memref<8x256xbf16, #tpu.memory_space<vmem>>) attributes {dimension_semantics = [#tpu.dimension_semantics<parallel>], iteration_bounds = array<i64: 2>, scalar_prefetch = 0 : i64, scratch_operands = 0 : i64, tpu.core_type = #tpu.core_type<tc>, window_params = [{transform_indices = @transform_0, window_bounds = array<i64: 16, 256>}, {pipeline_mode = #tpu.pipeline_mode<synchronous>, transform_indices = @transform_1, window_bounds = array<i64: 8, 16>}, {pipeline_mode = #tpu.pipeline_mode<synchronous>, transform_indices = @transform_2, window_bounds = array<i64: 8, 1>}, {transform_indices = @transform_3, window_bounds = array<i64: 8, 256>}]} {
    %c0 = arith.constant 0 : index
    %c0_0 = arith.constant 0 : index
    %0 = vector.load %arg2[%c0, %c0_0] : memref<8x16xbf16, #tpu.memory_space<vmem>>, vector<8x16xbf16>
    %c0_1 = arith.constant 0 : index
    %c0_2 = arith.constant 0 : index
    %1 = vector.load %arg1[%c0_1, %c0_2] : memref<16x256xbf16, #tpu.memory_space<vmem>>, vector<16x256xbf16>
    %cst = arith.constant dense<0.000000e+00> : vector<8x256xf32>
    %2 = tpu.matmul %0, %1, %cst {dimension_numbers = #tpu.dot_dimension_numbers<[1], [0], [0], [1], [0, 0, 1, 1], [], []>} : vector<8x16xbf16>, vector<16x256xbf16>, vector<8x256xf32> -> vector<8x256xf32>
    %c0_3 = arith.constant 0 : index
    %c0_4 = arith.constant 0 : index
    %3 = vector.load %arg3[%c0_3, %c0_4] : memref<8x1xf32, #tpu.memory_space<vmem>>, vector<8x1xf32>
    %4 = vector.broadcast %3 : vector<8x1xf32> to vector<8x256xf32>
    %5 = arith.addf %2, %4 : vector<8x256xf32>
    %cst_5 = arith.constant 0.000000e+00 : f32
    %6 = vector.broadcast %cst_5 : f32 to vector<8x256xf32>
    %7 = arith.maximumf %5, %6 : vector<8x256xf32>
    %8 = arith.truncf %7 : vector<8x256xf32> to vector<8x256xbf16>
    %c0_6 = arith.constant 0 : index
    %c0_7 = arith.constant 0 : index
    %9 = vector.load %arg4[%c0_6, %c0_7] : memref<8x256xbf16, #tpu.memory_space<vmem>>, vector<8x256xbf16>
    tpu.vector_store %arg4[%c0_6, %c0_7], %8 {strides = array<i32>} : memref<8x256xbf16, #tpu.memory_space<vmem>>, vector<8x256xbf16>,
    return
  }
  func.func @transform_0(%arg0: i32) -> (i32, i32) {
    %c0_i32 = arith.constant 0 : i32
    %c0_i32_0 = arith.constant 0 : i32
    return %c0_i32, %arg0 : i32, i32
  }
  func.func @transform_1(%arg0: i32) -> (i32, i32) {
    %c0_i32 = arith.constant 0 : i32
    %c0_i32_0 = arith.constant 0 : i32
    %c0_i32_1 = arith.constant 0 : i32
    return %c0_i32, %c0_i32_0 : i32, i32
  }
  func.func @transform_2(%arg0: i32) -> (i32, i32) {
    %c0_i32 = arith.constant 0 : i32
    %c0_i32_0 = arith.constant 0 : i32
    %c0_i32_1 = arith.constant 0 : i32
    return %c0_i32, %c0_i32_0 : i32, i32
  }
  func.func @transform_3(%arg0: i32) -> (i32, i32) {
    %c0_i32 = arith.constant 0 : i32
    %c0_i32_0 = arith.constant 0 : i32
    return %c0_i32, %arg0 : i32, i32
  }
}

module attributes {stable_mosaic.version = 11 : i64} {
  func.func @_conv1x1_kernel(%arg0: i32, %arg1: memref<16x256xbf16, #tpu.memory_space<vmem>>, %arg2: memref<16x16xbf16, #tpu.memory_space<vmem>>, %arg3: memref<16x1xf32, #tpu.memory_space<vmem>>, %arg4: memref<16x256xf32, #tpu.memory_space<vmem>>) attributes {dimension_semantics = [#tpu.dimension_semantics<parallel>], iteration_bounds = array<i64: 2>, scalar_prefetch = 0 : i64, scratch_operands = 0 : i64, tpu.core_type = #tpu.core_type<tc>, window_params = [{transform_indices = @transform_0, window_bounds = array<i64: 16, 256>}, {pipeline_mode = #tpu.pipeline_mode<synchronous>, transform_indices = @transform_1, window_bounds = array<i64: 16, 16>}, {pipeline_mode = #tpu.pipeline_mode<synchronous>, transform_indices = @transform_2, window_bounds = array<i64: 16, 1>}, {transform_indices = @transform_3, window_bounds = array<i64: 16, 256>}]} {
    %c0 = arith.constant 0 : index
    %c0_0 = arith.constant 0 : index
    %0 = vector.load %arg2[%c0, %c0_0] : memref<16x16xbf16, #tpu.memory_space<vmem>>, vector<16x16xbf16>
    %c0_1 = arith.constant 0 : index
    %c0_2 = arith.constant 0 : index
    %1 = vector.load %arg1[%c0_1, %c0_2] : memref<16x256xbf16, #tpu.memory_space<vmem>>, vector<16x256xbf16>
    %cst = arith.constant dense<0.000000e+00> : vector<16x256xf32>
    %2 = tpu.matmul %0, %1, %cst {dimension_numbers = #tpu.dot_dimension_numbers<[1], [0], [0], [1], [0, 0, 1, 1], [], []>} : vector<16x16xbf16>, vector<16x256xbf16>, vector<16x256xf32> -> vector<16x256xf32>
    %c0_3 = arith.constant 0 : index
    %c0_4 = arith.constant 0 : index
    %3 = vector.load %arg3[%c0_3, %c0_4] : memref<16x1xf32, #tpu.memory_space<vmem>>, vector<16x1xf32>
    %4 = vector.broadcast %3 : vector<16x1xf32> to vector<16x256xf32>
    %5 = arith.addf %2, %4 : vector<16x256xf32>
    %cst_5 = arith.constant 0.000000e+00 : f32
    %6 = vector.broadcast %cst_5 : f32 to vector<16x256xf32>
    %7 = arith.maximumf %5, %6 : vector<16x256xf32>
    %c0_6 = arith.constant 0 : index
    %c0_7 = arith.constant 0 : index
    %8 = vector.load %arg4[%c0_6, %c0_7] : memref<16x256xf32, #tpu.memory_space<vmem>>, vector<16x256xf32>
    tpu.vector_store %arg4[%c0_6, %c0_7], %7 {strides = array<i32>} : memref<16x256xf32, #tpu.memory_space<vmem>>, vector<16x256xf32>,
    return
  }
  func.func @transform_0(%arg0: i32) -> (i32, i32) {
    %c0_i32 = arith.constant 0 : i32
    %c0_i32_0 = arith.constant 0 : i32
    return %c0_i32, %arg0 : i32, i32
  }
  func.func @transform_1(%arg0: i32) -> (i32, i32) {
    %c0_i32 = arith.constant 0 : i32
    %c0_i32_0 = arith.constant 0 : i32
    %c0_i32_1 = arith.constant 0 : i32
    return %c0_i32, %c0_i32_0 : i32, i32
  }
  func.func @transform_2(%arg0: i32) -> (i32, i32) {
    %c0_i32 = arith.constant 0 : i32
    %c0_i32_0 = arith.constant 0 : i32
    %c0_i32_1 = arith.constant 0 : i32
    return %c0_i32, %c0_i32_0 : i32, i32
  }
  func.func @transform_3(%arg0: i32) -> (i32, i32) {
    %c0_i32 = arith.constant 0 : i32
    %c0_i32_0 = arith.constant 0 : i32
    return %c0_i32, %arg0 : i32, i32
  }
}

module attributes {stable_mosaic.version = 11 : i64} {
  func.func @_conv1x1_kernel(%arg0: i32, %arg1: memref<16x128xbf16, #tpu.memory_space<vmem>>, %arg2: memref<16x16xbf16, #tpu.memory_space<vmem>>, %arg3: memref<16x1xf32, #tpu.memory_space<vmem>>, %arg4: memref<16x128xf32, #tpu.memory_space<vmem>>) attributes {dimension_semantics = [#tpu.dimension_semantics<parallel>], iteration_bounds = array<i64: 1>, scalar_prefetch = 0 : i64, scratch_operands = 0 : i64, tpu.core_type = #tpu.core_type<tc>, window_params = [{transform_indices = @transform_0, window_bounds = array<i64: 16, 128>}, {pipeline_mode = #tpu.pipeline_mode<synchronous>, transform_indices = @transform_1, window_bounds = array<i64: 16, 16>}, {pipeline_mode = #tpu.pipeline_mode<synchronous>, transform_indices = @transform_2, window_bounds = array<i64: 16, 1>}, {transform_indices = @transform_3, window_bounds = array<i64: 16, 128>}]} {
    %c0 = arith.constant 0 : index
    %c0_0 = arith.constant 0 : index
    %0 = vector.load %arg2[%c0, %c0_0] : memref<16x16xbf16, #tpu.memory_space<vmem>>, vector<16x16xbf16>
    %c0_1 = arith.constant 0 : index
    %c0_2 = arith.constant 0 : index
    %1 = vector.load %arg1[%c0_1, %c0_2] : memref<16x128xbf16, #tpu.memory_space<vmem>>, vector<16x128xbf16>
    %cst = arith.constant dense<0.000000e+00> : vector<16x128xf32>
    %2 = tpu.matmul %0, %1, %cst {dimension_numbers = #tpu.dot_dimension_numbers<[1], [0], [0], [1], [0, 0, 1, 1], [], []>} : vector<16x16xbf16>, vector<16x128xbf16>, vector<16x128xf32> -> vector<16x128xf32>
    %c0_3 = arith.constant 0 : index
    %c0_4 = arith.constant 0 : index
    %3 = vector.load %arg3[%c0_3, %c0_4] : memref<16x1xf32, #tpu.memory_space<vmem>>, vector<16x1xf32>
    %4 = vector.broadcast %3 : vector<16x1xf32> to vector<16x128xf32>
    %5 = arith.addf %2, %4 : vector<16x128xf32>
    %cst_5 = arith.constant 0.000000e+00 : f32
    %6 = vector.broadcast %cst_5 : f32 to vector<16x128xf32>
    %7 = arith.maximumf %5, %6 : vector<16x128xf32>
    %c0_6 = arith.constant 0 : index
    %c0_7 = arith.constant 0 : index
    %8 = vector.load %arg4[%c0_6, %c0_7] : memref<16x128xf32, #tpu.memory_space<vmem>>, vector<16x128xf32>
    tpu.vector_store %arg4[%c0_6, %c0_7], %7 {strides = array<i32>} : memref<16x128xf32, #tpu.memory_space<vmem>>, vector<16x128xf32>,
    return
  }
  func.func @transform_0(%arg0: i32) -> (i32, i32) {
    %c0_i32 = arith.constant 0 : i32
    %c0_i32_0 = arith.constant 0 : i32
    return %c0_i32, %arg0 : i32, i32
  }
  func.func @transform_1(%arg0: i32) -> (i32, i32) {
    %c0_i32 = arith.constant 0 : i32
    %c0_i32_0 = arith.constant 0 : i32
    %c0_i32_1 = arith.constant 0 : i32
    return %c0_i32, %c0_i32_0 : i32, i32
  }
  func.func @transform_2(%arg0: i32) -> (i32, i32) {
    %c0_i32 = arith.constant 0 : i32
    %c0_i32_0 = arith.constant 0 : i32
    %c0_i32_1 = arith.constant 0 : i32
    return %c0_i32, %c0_i32_0 : i32, i32
  }
  func.func @transform_3(%arg0: i32) -> (i32, i32) {
    %c0_i32 = arith.constant 0 : i32
    %c0_i32_0 = arith.constant 0 : i32
    return %c0_i32, %arg0 : i32, i32
  }
}

module attributes {stable_mosaic.version = 11 : i64} {
  func.func @_sum3_conv_kernel(%arg0: i32, %arg1: memref<8x256xbf16, #tpu.memory_space<vmem>>, %arg2: memref<8x256xbf16, #tpu.memory_space<vmem>>, %arg3: memref<8x256xbf16, #tpu.memory_space<vmem>>, %arg4: memref<16x8xbf16, #tpu.memory_space<vmem>>, %arg5: memref<16x1xf32, #tpu.memory_space<vmem>>, %arg6: memref<16x256xbf16, #tpu.memory_space<vmem>>) attributes {dimension_semantics = [#tpu.dimension_semantics<parallel>], iteration_bounds = array<i64: 2>, scalar_prefetch = 0 : i64, scratch_operands = 0 : i64, tpu.core_type = #tpu.core_type<tc>, window_params = [{transform_indices = @transform_0, window_bounds = array<i64: 8, 256>}, {transform_indices = @transform_1, window_bounds = array<i64: 8, 256>}, {transform_indices = @transform_2, window_bounds = array<i64: 8, 256>}, {pipeline_mode = #tpu.pipeline_mode<synchronous>, transform_indices = @transform_3, window_bounds = array<i64: 16, 8>}, {pipeline_mode = #tpu.pipeline_mode<synchronous>, transform_indices = @transform_4, window_bounds = array<i64: 16, 1>}, {transform_indices = @transform_5, window_bounds = array<i64: 16, 256>}]} {
    %c0 = arith.constant 0 : index
    %c0_0 = arith.constant 0 : index
    %0 = vector.load %arg1[%c0, %c0_0] : memref<8x256xbf16, #tpu.memory_space<vmem>>, vector<8x256xbf16>
    %1 = arith.extf %0 : vector<8x256xbf16> to vector<8x256xf32>
    %c0_1 = arith.constant 0 : index
    %c0_2 = arith.constant 0 : index
    %2 = vector.load %arg2[%c0_1, %c0_2] : memref<8x256xbf16, #tpu.memory_space<vmem>>, vector<8x256xbf16>
    %3 = arith.extf %2 : vector<8x256xbf16> to vector<8x256xf32>
    %4 = arith.addf %1, %3 : vector<8x256xf32>
    %c0_3 = arith.constant 0 : index
    %c0_4 = arith.constant 0 : index
    %5 = vector.load %arg3[%c0_3, %c0_4] : memref<8x256xbf16, #tpu.memory_space<vmem>>, vector<8x256xbf16>
    %6 = arith.extf %5 : vector<8x256xbf16> to vector<8x256xf32>
    %7 = arith.addf %4, %6 : vector<8x256xf32>
    %c0_5 = arith.constant 0 : index
    %c0_6 = arith.constant 0 : index
    %8 = vector.load %arg4[%c0_5, %c0_6] : memref<16x8xbf16, #tpu.memory_space<vmem>>, vector<16x8xbf16>
    %9 = arith.truncf %7 : vector<8x256xf32> to vector<8x256xbf16>
    %cst = arith.constant dense<0.000000e+00> : vector<16x256xf32>
    %10 = tpu.matmul %8, %9, %cst {dimension_numbers = #tpu.dot_dimension_numbers<[1], [0], [0], [1], [0, 0, 1, 1], [], []>} : vector<16x8xbf16>, vector<8x256xbf16>, vector<16x256xf32> -> vector<16x256xf32>
    %c0_7 = arith.constant 0 : index
    %c0_8 = arith.constant 0 : index
    %11 = vector.load %arg5[%c0_7, %c0_8] : memref<16x1xf32, #tpu.memory_space<vmem>>, vector<16x1xf32>
    %12 = vector.broadcast %11 : vector<16x1xf32> to vector<16x256xf32>
    %13 = arith.addf %10, %12 : vector<16x256xf32>
    %cst_9 = arith.constant 0.000000e+00 : f32
    %14 = vector.broadcast %cst_9 : f32 to vector<16x256xf32>
    %15 = arith.maximumf %13, %14 : vector<16x256xf32>
    %16 = arith.truncf %15 : vector<16x256xf32> to vector<16x256xbf16>
    %c0_10 = arith.constant 0 : index
    %c0_11 = arith.constant 0 : index
    %17 = vector.load %arg6[%c0_10, %c0_11] : memref<16x256xbf16, #tpu.memory_space<vmem>>, vector<16x256xbf16>
    tpu.vector_store %arg6[%c0_10, %c0_11], %16 {strides = array<i32>} : memref<16x256xbf16, #tpu.memory_space<vmem>>, vector<16x256xbf16>,
    return
  }
  func.func @transform_0(%arg0: i32) -> (i32, i32) {
    %c0_i32 = arith.constant 0 : i32
    %c0_i32_0 = arith.constant 0 : i32
    return %c0_i32, %arg0 : i32, i32
  }
  func.func @transform_1(%arg0: i32) -> (i32, i32) {
    %c0_i32 = arith.constant 0 : i32
    %c0_i32_0 = arith.constant 0 : i32
    return %c0_i32, %arg0 : i32, i32
  }
  func.func @transform_2(%arg0: i32) -> (i32, i32) {
    %c0_i32 = arith.constant 0 : i32
    %c0_i32_0 = arith.constant 0 : i32
    return %c0_i32, %arg0 : i32, i32
  }
  func.func @transform_3(%arg0: i32) -> (i32, i32) {
    %c0_i32 = arith.constant 0 : i32
    %c0_i32_0 = arith.constant 0 : i32
    %c0_i32_1 = arith.constant 0 : i32
    return %c0_i32, %c0_i32_0 : i32, i32
  }
  func.func @transform_4(%arg0: i32) -> (i32, i32) {
    %c0_i32 = arith.constant 0 : i32
    %c0_i32_0 = arith.constant 0 : i32
    %c0_i32_1 = arith.constant 0 : i32
    return %c0_i32, %c0_i32_0 : i32, i32
  }
  func.func @transform_5(%arg0: i32) -> (i32, i32) {
    %c0_i32 = arith.constant 0 : i32
    %c0_i32_0 = arith.constant 0 : i32
    return %c0_i32, %arg0 : i32, i32
  }
}

module attributes {stable_mosaic.version = 11 : i64} {
  func.func @_sum3_conv_kernel(%arg0: i32, %arg1: memref<8x256xbf16, #tpu.memory_space<vmem>>, %arg2: memref<8x256xbf16, #tpu.memory_space<vmem>>, %arg3: memref<8x256xbf16, #tpu.memory_space<vmem>>, %arg4: memref<16x256xf32, #tpu.memory_space<vmem>>, %arg5: memref<16x8xbf16, #tpu.memory_space<vmem>>, %arg6: memref<16x1xf32, #tpu.memory_space<vmem>>, %arg7: memref<16x256xf32, #tpu.memory_space<vmem>>) attributes {dimension_semantics = [#tpu.dimension_semantics<parallel>], iteration_bounds = array<i64: 2>, scalar_prefetch = 0 : i64, scratch_operands = 0 : i64, tpu.core_type = #tpu.core_type<tc>, window_params = [{transform_indices = @transform_0, window_bounds = array<i64: 8, 256>}, {transform_indices = @transform_1, window_bounds = array<i64: 8, 256>}, {transform_indices = @transform_2, window_bounds = array<i64: 8, 256>}, {transform_indices = @transform_3, window_bounds = array<i64: 16, 256>}, {pipeline_mode = #tpu.pipeline_mode<synchronous>, transform_indices = @transform_4, window_bounds = array<i64: 16, 8>}, {pipeline_mode = #tpu.pipeline_mode<synchronous>, transform_indices = @transform_5, window_bounds = array<i64: 16, 1>}, {transform_indices = @transform_6, window_bounds = array<i64: 16, 256>}]} {
    %c0 = arith.constant 0 : index
    %c0_0 = arith.constant 0 : index
    %0 = vector.load %arg1[%c0, %c0_0] : memref<8x256xbf16, #tpu.memory_space<vmem>>, vector<8x256xbf16>
    %1 = arith.extf %0 : vector<8x256xbf16> to vector<8x256xf32>
    %c0_1 = arith.constant 0 : index
    %c0_2 = arith.constant 0 : index
    %2 = vector.load %arg2[%c0_1, %c0_2] : memref<8x256xbf16, #tpu.memory_space<vmem>>, vector<8x256xbf16>
    %3 = arith.extf %2 : vector<8x256xbf16> to vector<8x256xf32>
    %4 = arith.addf %1, %3 : vector<8x256xf32>
    %c0_3 = arith.constant 0 : index
    %c0_4 = arith.constant 0 : index
    %5 = vector.load %arg3[%c0_3, %c0_4] : memref<8x256xbf16, #tpu.memory_space<vmem>>, vector<8x256xbf16>
    %6 = arith.extf %5 : vector<8x256xbf16> to vector<8x256xf32>
    %7 = arith.addf %4, %6 : vector<8x256xf32>
    %c0_5 = arith.constant 0 : index
    %c0_6 = arith.constant 0 : index
    %8 = vector.load %arg5[%c0_5, %c0_6] : memref<16x8xbf16, #tpu.memory_space<vmem>>, vector<16x8xbf16>
    %9 = arith.truncf %7 : vector<8x256xf32> to vector<8x256xbf16>
    %cst = arith.constant dense<0.000000e+00> : vector<16x256xf32>
    %10 = tpu.matmul %8, %9, %cst {dimension_numbers = #tpu.dot_dimension_numbers<[1], [0], [0], [1], [0, 0, 1, 1], [], []>} : vector<16x8xbf16>, vector<8x256xbf16>, vector<16x256xf32> -> vector<16x256xf32>
    %c0_7 = arith.constant 0 : index
    %c0_8 = arith.constant 0 : index
    %11 = vector.load %arg6[%c0_7, %c0_8] : memref<16x1xf32, #tpu.memory_space<vmem>>, vector<16x1xf32>
    %12 = vector.broadcast %11 : vector<16x1xf32> to vector<16x256xf32>
    %13 = arith.addf %10, %12 : vector<16x256xf32>
    %cst_9 = arith.constant 0.000000e+00 : f32
    %14 = vector.broadcast %cst_9 : f32 to vector<16x256xf32>
    %15 = arith.maximumf %13, %14 : vector<16x256xf32>
    %c0_10 = arith.constant 0 : index
    %c0_11 = arith.constant 0 : index
    %16 = vector.load %arg4[%c0_10, %c0_11] : memref<16x256xf32, #tpu.memory_space<vmem>>, vector<16x256xf32>
    %17 = arith.addf %15, %16 : vector<16x256xf32>
    %c0_12 = arith.constant 0 : index
    %c0_13 = arith.constant 0 : index
    %18 = vector.load %arg7[%c0_12, %c0_13] : memref<16x256xf32, #tpu.memory_space<vmem>>, vector<16x256xf32>
    tpu.vector_store %arg7[%c0_12, %c0_13], %17 {strides = array<i32>} : memref<16x256xf32, #tpu.memory_space<vmem>>, vector<16x256xf32>,
    return
  }
  func.func @transform_0(%arg0: i32) -> (i32, i32) {
    %c0_i32 = arith.constant 0 : i32
    %c0_i32_0 = arith.constant 0 : i32
    return %c0_i32, %arg0 : i32, i32
  }
  func.func @transform_1(%arg0: i32) -> (i32, i32) {
    %c0_i32 = arith.constant 0 : i32
    %c0_i32_0 = arith.constant 0 : i32
    return %c0_i32, %arg0 : i32, i32
  }
  func.func @transform_2(%arg0: i32) -> (i32, i32) {
    %c0_i32 = arith.constant 0 : i32
    %c0_i32_0 = arith.constant 0 : i32
    return %c0_i32, %arg0 : i32, i32
  }
  func.func @transform_3(%arg0: i32) -> (i32, i32) {
    %c0_i32 = arith.constant 0 : i32
    %c0_i32_0 = arith.constant 0 : i32
    return %c0_i32, %arg0 : i32, i32
  }
  func.func @transform_4(%arg0: i32) -> (i32, i32) {
    %c0_i32 = arith.constant 0 : i32
    %c0_i32_0 = arith.constant 0 : i32
    %c0_i32_1 = arith.constant 0 : i32
    return %c0_i32, %c0_i32_0 : i32, i32
  }
  func.func @transform_5(%arg0: i32) -> (i32, i32) {
    %c0_i32 = arith.constant 0 : i32
    %c0_i32_0 = arith.constant 0 : i32
    %c0_i32_1 = arith.constant 0 : i32
    return %c0_i32, %c0_i32_0 : i32, i32
  }
  func.func @transform_6(%arg0: i32) -> (i32, i32) {
    %c0_i32 = arith.constant 0 : i32
    %c0_i32_0 = arith.constant 0 : i32
    return %c0_i32, %arg0 : i32, i32
  }
}

</mosaic_0001>

<bundles_post_ra>
// kernel: ffc_resnet_block.8
= control target key start
LH: loop header
LB: loop body
LE: loop exit
PB: predicated region body
PF: predicated region fallthrough
CT: control target
= control target key end

     0   :  { %s444_s12 = smov 0   ;;  %s446_s13 = smov 0   ;;  %s502_s0 = inlined_call_operand.vmem [shape: bf16[16,512], index: 0, kind: input, shape index: {}]   ;;  %s503_s1 = inlined_call_operand.vmem [shape: bf16[8,16], index: 1, kind: input, shape index: {}]   ;;  %s504_s2 = inlined_call_operand.vmem [shape: f32[8,1], index: 2, kind: input, shape index: {}]   ;;  %s505_s3 = inlined_call_operand.vmem [shape: bf16[8,512], index: 3, kind: output, shape index: {}]  }
   0x1   :  { %s448_s14 = smov 0  }
   0x2 LB: > { %s351_s15 = sadd.s32 4294967295, %s421_s14   ;;  %s461_s16 = sadd.s32 1, %s421_s14   ;;  %s421_s14 = sphi %s448_s14, %s508_s14   ;;  %s417_s13 = sphi %s446_s13, %s507_s13   ;;  %s413_s12 = sphi %s444_s12, %s506_s12  }
   0x3   : > { %s17_s17 = ssub.s32 %s421_s14, %s461_s16  ;;  %s20_s18 = sadd.s32 1, %s417_s13 }
   0x4   : > { %p18_p0 = scmp.eq.s32.totalorder %s17_s17, 0  ;;  %p27_p1 = scmp.ne.s32.totalorder %s417_s13, %s413_s12 }
   0x5   : > { %p28_p2 = scmp.eq.s32.totalorder %s421_s14, 0  ;;  %p354_p4 = scmp.ge.s32.totalorder %s421_s14, 2 }
   0x6   : > { %s470_s19 = scalar_select %p18_p0, %s417_s13, %s20_s18  }
   0x7   : > { %p29_p3 = por %p28_p2, %p27_p1  ;;  %127 = sbr.rel (%p354_p4) target bundleno = 17 (0x11), region = 24 }
   0xc   : > { %130 = sbr.rel (!%p29_p3) target bundleno = 17 (0x11), region = 28  ;;  %s132_s20 = sand.u32 (%p29_p3), 1, %s417_s13  }
   0xd   : > { %s368_s21 = sshll.u32 (%p29_p3), %s421_s14, 3  ;;  %s355_s22 = sshll.u32 (%p29_p3), %s132_s20, 4 }
   0xe   : > { %s137_s25 = scalar_lea.vmem (%p29_p3), %s502_s0, %s368_s21  ;;  %s134_s26 = scalar_lea.vmem (%p29_p3), [#allocation2], %s355_s22 }
   0xf   : > { %v168_v0 = vld [vmem:[%s137_s25] sm:$0xff] (%p29_p3)  ;;  %v170_v1 = vld [vmem:[%s137_s25 + $0x10] sm:$0xff] (%p29_p3) }
  0x10   : > { %169 = vst [vmem:[%s134_s26] sm:$0xff] (%p29_p3), %v168_v0  ;;  %171 = vst [vmem:[%s134_s26 + $0x8] sm:$0xff] (%p29_p3), %v170_v1 }
  0x11 PF: > { %p358_p5 = scmp.ge.s32.totalorder %s421_s14, 1  ;;  %p176_p6 = scmp.lt.s32.totalorder %s421_s14, 3 }
  0x13   : > { %p177_p7 = pnand %p358_p5, %p176_p6 }
  0x14   : > { %s183_s27 = sand.u32 (!%p177_p7), 1, %s413_s12   ;;  %s360_s7 = sshll.u32 (!%p177_p7), %s351_s15, 1 }
  0x15   : > { %180 = sbr.rel (%p177_p7) target bundleno = 234 (0xea), region = 66  ;;  %s359_s30 = sshll.u32 (!%p177_p7), %s183_s27, 4 }
  0x16   : > { %s185_s4 = scalar_lea.vmem (!%p177_p7), [#allocation2], %s359_s30  ;;  %p208_p8 = scmp.lt.s32.totalorder (!%p177_p7), %s360_s7, 3 }
  0x1a   : > { %v217_v2 = vld [vmem:[%s504_s2] sm:$0xff]  ;;  %v423_v3 = vmov 0   ;;  %vm233_vm0 = vcmask 130048   ;;  %s510_s7 = smov (!%p208_p8, %s360_s7), 3 }
  0x1b   : > { %269 = vmatprep.mubr.bf16.mxu0 %v423_v3  ;;  %395 = vset.pattern.permute.xlu0 %v423_v3  ;;  %v396_v4 = vld [vmem:[%s185_s4 + $0x4] ss:$8 sps:$4 sm:$0xff]   ;;  %v398_v5 = vld [vmem:[%s185_s4] ss:$8 sps:$4 sm:$0xff]   ;;  %s361_s8 = sshll.u32 %s510_s7, 2 }
  0x1c   : > { %220 = vperm.xlu0 %395, %v217_v2   ;;  %251 = vmatprep.subr.bf16.mxu0 %v396_v4  ;;  %v214_v6 = vld [vmem:[%s503_s1] sm:$0xf]  ;;  %s211_s11 = scalar_lea.vmem %s505_s3, %s361_s8 }
  0x1d   : > { %252 = vmatpush1.bf16.msra.mxu0 %v398_v5 }
  0x20   : > { %364 = vmatmul.mubr.msk.bf16.vlgmr.msra.gmra.mxu0 %vm233_vm0, %v214_v6 }
  0x97   : > { %v221_v7 = vpop.permute.xlu0 %220 }
  0xe0   : > { %v271_v8 = vpop.f32.mrf.mxu0 }
  0xe1   : > { %v272_v9 = vadd.f32 %v271_v8, %v221_v7 }
  0xe2   : > { %v273_v10 = vpop.f32.mrf.mxu0 }
  0xe3   : > { %v274_v11 = vadd.f32 %v273_v10, %v221_v7  ;;  %v278_v13 = vmax.f32 %v272_v9, 0.0 }
  0xe4   : > { %v275_v12 = vpop.f32.mrf.mxu0 }
  0xe5   : > { %v279_v14 = vmax.f32 %v274_v11, 0.0 }
  0xe6   : > { %v276_v15 = vpop.f32.mrf.mxu0 }
  0xe7   : > { %v369_v16 = vpack.c.bf16 %v279_v14, %v278_v13 }
  0xe9   : > { %288 = vst [vmem:[%s211_s11] sm:$0xff] %v369_v16 }
  0xea PF: > { %p10_p9 = scmp.ge.s32.totalorder %s461_s16, 4   ;;  %s506_s12 = smov %s417_s13 }
  0xeb   : > { %s507_s13 = smov %s470_s19  ;;  %s508_s14 = smov %s461_s16 }
  0xec   :  { %12 = sbr.rel (!%p10_p9) target bundleno = 2 (0x2), region = 105 }

// kernel: ffc_resnet_block.9
= control target key start
LH: loop header
LB: loop body
LE: loop exit
PB: predicated region body
PF: predicated region fallthrough
CT: control target
= control target key end

     0   :  { %s479_s12 = smov 0   ;;  %s481_s13 = smov 0   ;;  %s548_s0 = inlined_call_operand.vmem [shape: bf16[16,512], index: 0, kind: input, shape index: {}]   ;;  %s549_s1 = inlined_call_operand.vmem [shape: bf16[16,16], index: 1, kind: input, shape index: {}]   ;;  %s550_s2 = inlined_call_operand.vmem [shape: f32[16,1], index: 2, kind: input, shape index: {}]   ;;  %s551_s3 = inlined_call_operand.vmem [shape: f32[16,512], index: 3, kind: output, shape index: {}]  }
   0x1   :  { %s483_s14 = smov 0  }
   0x2 LB: > { %s383_s15 = sadd.s32 4294967295, %s456_s14   ;;  %s496_s16 = sadd.s32 1, %s456_s14   ;;  %s456_s14 = sphi %s483_s14, %s555_s14   ;;  %s452_s13 = sphi %s481_s13, %s554_s13   ;;  %s448_s12 = sphi %s479_s12, %s553_s12  }
   0x3   : > { %s17_s17 = ssub.s32 %s456_s14, %s496_s16  ;;  %s20_s18 = sadd.s32 1, %s452_s13 }
   0x4   : > { %p18_p0 = scmp.eq.s32.totalorder %s17_s17, 0  ;;  %p27_p1 = scmp.ne.s32.totalorder %s452_s13, %s448_s12 }
   0x5   : > { %p28_p2 = scmp.eq.s32.totalorder %s456_s14, 0  ;;  %p99_p3 = scmp.eq.s32.totalorder %s383_s15, 1 }
   0x6   : > { %s507_s19 = scalar_select %p18_p0, %s452_s13, %s20_s18  }
   0x7   : > { %p29_p4 = por %p28_p2, %p27_p1  ;;  %p509_p5 = por %p99_p3, %p27_p1 }
   0x8   : > { %p386_p6 = scmp.ge.s32.totalorder %s456_s14, 2 }
   0xa   : > { %127 = sbr.rel (%p386_p6) target bundleno = 20 (0x14), region = 24 }
   0xf   : > { %130 = sbr.rel (!%p29_p4) target bundleno = 20 (0x14), region = 28  ;;  %s132_s21 = sand.u32 (%p29_p4), 1, %s452_s13  }
  0x10   : > { %s402_s22 = sshll.u32 (%p29_p4), %s456_s14, 3  ;;  %s387_s23 = sshll.u32 (%p29_p4), %s132_s21, 4 }
  0x11   : > { %s137_s26 = scalar_lea.vmem (%p29_p4), %s548_s0, %s402_s22  ;;  %s134_s27 = scalar_lea.vmem (%p29_p4), [#allocation2], %s387_s23 }
  0x12   : > { %v168_v0 = vld [vmem:[%s137_s26] sm:$0xff] (%p29_p4)  ;;  %v170_v1 = vld [vmem:[%s137_s26 + $0x10] sm:$0xff] (%p29_p4) }
  0x13   : > { %169 = vst [vmem:[%s134_s27] sm:$0xff] (%p29_p4), %v168_v0  ;;  %171 = vst [vmem:[%s134_s27 + $0x8] sm:$0xff] (%p29_p4), %v170_v1 }
  0x14 PF: > { %p390_p7 = scmp.ge.s32.totalorder %s456_s14, 1  ;;  %p176_p8 = scmp.lt.s32.totalorder %s456_s14, 3 }
  0x16   : > { %p177_p9 = pnand %p390_p7, %p176_p8 }
  0x17   : > { %s183_s28 = sand.u32 (!%p177_p9), 1, %s448_s12  }
  0x18   : > { %180 = sbr.rel (%p177_p9) target bundleno = 247 (0xf7), region = 66  ;;  %s391_s29 = sshll.u32 (!%p177_p9), %s183_s28, 4 }
  0x19   : > { %s185_s7 = scalar_lea.vmem (!%p177_p9), [#allocation2], %s391_s29  ;;  %s392_s10 = sshll.u32 (!%p177_p9), %s183_s28, 5 }
  0x1a   : > { %s204_s11 = scalar_lea.vmem (!%p177_p9), [#allocation3], %s392_s10 }
  0x1d   : > { %v458_v2 = vmov 0   ;;  %v212_v3 = vld [vmem:[%s550_s2] sm:$0xff]  ;;  %v213_v4 = vld [vmem:[%s550_s2 + $0x8] sm:$0xff]  ;;  %vm239_vm0 = vcmask 130048   ;;  %s403_s12 = sshll.u32 (%p509_p5), %s383_s15, 4 }
  0x1e   : > { %275 = vmatprep.mubr.bf16.mxu0 %v458_v2  ;;  %429 = vset.pattern.permute.xlu0 %v458_v2  ;;  %v430_v5 = vld [vmem:[%s185_s7 + $0x4] ss:$8 sps:$4 sm:$0xff]   ;;  %v432_v6 = vld [vmem:[%s185_s7] ss:$8 sps:$4 sm:$0xff]   ;;  %s303_s21 = scalar_lea.vmem (%p509_p5), %s551_s3, %s403_s12 }
  0x1f   : > { %216 = vperm.xlu0 %429, %v212_v3   ;;  %257 = vmatprep.subr.bf16.mxu0 %v430_v5  ;;  %v433_v7 = vld [vmem:[%s549_s1] sm:$0xff]  }
  0x20   : > { %258 = vmatpush1.bf16.msra.mxu0 %v432_v6 }
  0x23   : > { %221 = vperm.xlu0 %429, %v213_v4   ;;  %396 = vmatmul.mubr.msk.bf16.vlgmr.msra.gmra.mxu0 %vm239_vm0, %v433_v7 }
  0x9a   : > { %v217_v8 = vpop.permute.xlu0 %216 }
  0x9e   : > { %v222_v14 = vpop.permute.xlu0 %221 }
  0xe3   : > { %v277_v9 = vpop.f32.mrf.mxu0 }
  0xe4   : > { %v278_v10 = vadd.f32 %v277_v9, %v217_v8 }
  0xe5   : > { %v279_v11 = vpop.f32.mrf.mxu0 }
  0xe6   : > { %v286_v12 = vmax.f32 %v278_v10, 0.0  ;;  %v280_v13 = vadd.f32 %v279_v11, %v217_v8 }
  0xe7   : > { %v281_v15 = vpop.f32.mrf.mxu0 }
  0xe8   : > { %290 = vst [vmem:[%s204_s11] sm:$0xff] %v286_v12  ;;  %v287_v16 = vmax.f32 %v280_v13, 0.0  ;;  %v282_v17 = vadd.f32 %v281_v15, %v222_v14 }
  0xe9   : > { %v283_v18 = vpop.f32.mrf.mxu0 }
  0xea   : > { %291 = vst [vmem:[%s204_s11 + $0x8] sm:$0xff] %v287_v16  ;;  %v288_v19 = vmax.f32 %v282_v17, 0.0  ;;  %v284_v20 = vadd.f32 %v283_v18, %v222_v14  ;;  %300 = sbr.rel (!%p509_p5) target bundleno = 247 (0xf7), region = 74 }
  0xec   : > { %292 = vst [vmem:[%s204_s11 + $0x10] sm:$0xff] %v288_v19  ;;  %v289_v21 = vmax.f32 %v284_v20, 0.0 }
  0xee   : > { %293 = vst [vmem:[%s204_s11 + $0x18] sm:$0xff] %v289_v21 }
  0xef   : > { %v316_v22 = vld [vmem:[%s204_s11] sm:$0xff] }
  0xf0   : > { %317 = vst [vmem:[%s303_s21] sm:$0xff] %v316_v22 }
  0xf1   : > { %v318_v23 = vld [vmem:[%s204_s11 + $0x8] sm:$0xff] }
  0xf2   : > { %319 = vst [vmem:[%s303_s21 + $0x8] sm:$0xff] %v318_v23 }
  0xf3   : > { %v320_v24 = vld [vmem:[%s204_s11 + $0x10] sm:$0xff] }
  0xf4   : > { %321 = vst [vmem:[%s303_s21 + $0x20] sm:$0xff] %v320_v24 }
  0xf5   : > { %v322_v25 = vld [vmem:[%s204_s11 + $0x18] sm:$0xff] }
  0xf6   : > { %323 = vst [vmem:[%s303_s21 + $0x28] sm:$0xff] %v322_v25 }
  0xf7 PF: > { %p10_p10 = scmp.ge.s32.totalorder %s496_s16, 4   ;;  %s553_s12 = smov %s452_s13 }
  0xf8   : > { %s554_s13 = smov %s507_s19  ;;  %s555_s14 = smov %s496_s16 }
  0xf9   :  { %12 = sbr.rel (!%p10_p10) target bundleno = 2 (0x2), region = 128 }

// kernel: reverse.9
= control target key start
LH: loop header
LB: loop body
LE: loop exit
PB: predicated region body
PF: predicated region fallthrough
CT: control target
= control target key end

     0   :  { %v104_v3 = vlaneseq  ;;  %v97_v18 = vld [vmem:[#allocation0 + $0x7] ss:$-1 sm:$0xff]  ;;  %v111_v19 = vld [vmem:[#allocation0 + $0x17] ss:$-1 sm:$0xff]  ;;  %s606_s0 = inlined_call_operand.vmem [shape: f32[8,2,16,7], index: 0, kind: input, shape index: {}]   ;;  %s607_s1 = inlined_call_operand.vmem [shape: f32[8,2,16,7], index: 1, kind: output, shape index: {}]  }
   0x1   :  { %v61_v0 = vld [vmem:[%s606_s0] sm:$0xff]  ;;  %v63_v1 = vld [vmem:[%s606_s0 + $0x8] sm:$0xff]  ;;  %v65_v2 = vld [vmem:[%s606_s0 + $0x10] sm:$0xff]  ;;  %v98_v20 = vrot.slane %v97_v18, 1  ;;  %v112_v21 = vrot.slane %v111_v19, 1 }
   0x2   :  { %62 = vst [vmem:[#allocation0 + $0x8] sm:$0xff] %v61_v0  ;;  %64 = vst [vmem:[#allocation0 + $0x18] sm:$0xff] %v63_v1  ;;  %v67_v4 = vld [vmem:[%s606_s0 + $0x18] sm:$0xff]  ;;  %v69_v5 = vld [vmem:[%s606_s0 + $0x20] sm:$0xff]  ;;  %v502_v10 = vshrl.u32 %v104_v3, 7 }
   0x3   :  { %66 = vst [vmem:[#allocation0 + $0x28] sm:$0xff] %v65_v2  ;;  %v71_v6 = vld [vmem:[%s606_s0 + $0x28] sm:$0xff]  ;;  %68 = vst [vmem:[#allocation0 + $0x38] sm:$0xff] %v67_v4  ;;  %v73_v7 = vld [vmem:[%s606_s0 + $0x30] sm:$0xff] }
   0x4   :  { %70 = vst [vmem:[#allocation0 + $0x48] sm:$0xff] %v69_v5  ;;  %72 = vst [vmem:[#allocation0 + $0x58] sm:$0xff] %v71_v6  ;;  %v75_v8 = vld [vmem:[%s606_s0 + $0x38] sm:$0xff]  ;;  %v77_v9 = vld [vmem:[%s606_s0 + $0x40] sm:$0xff]  ;;  %vm106_vm0 = vcmp.lt.s32.totalorder %v502_v10, 7 }
   0x5   :  { %74 = vst [vmem:[#allocation0 + $0x68] sm:$0xff] %v73_v7  ;;  %76 = vst [vmem:[#allocation0 + $0x78] sm:$0xff] %v75_v8  ;;  %v79_v11 = vld [vmem:[%s606_s0 + $0x48] sm:$0xff]  ;;  %v81_v12 = vld [vmem:[%s606_s0 + $0x50] sm:$0xff] }
   0x6   :  { %78 = vst [vmem:[#allocation0 + $0x88] sm:$0xff] %v77_v9  ;;  %v83_v13 = vld [vmem:[%s606_s0 + $0x58] sm:$0xff]  ;;  %80 = vst [vmem:[#allocation0 + $0x98] sm:$0xff] %v79_v11  ;;  %v85_v14 = vld [vmem:[%s606_s0 + $0x60] sm:$0xff] }
   0x7   :  { %82 = vst [vmem:[#allocation0 + $0xa8] sm:$0xff] %v81_v12  ;;  %84 = vst [vmem:[#allocation0 + $0xb8] sm:$0xff] %v83_v13  ;;  %v87_v15 = vld [vmem:[%s606_s0 + $0x68] sm:$0xff]  ;;  %v89_v16 = vld [vmem:[%s606_s0 + $0x70] sm:$0xff] }
   0x8   :  { %86 = vst [vmem:[#allocation0 + $0xc8] sm:$0xff] %v85_v14  ;;  %88 = vst [vmem:[#allocation0 + $0xd8] sm:$0xff] %v87_v15  ;;  %v91_v17 = vld [vmem:[%s606_s0 + $0x78] sm:$0xff]  ;;  %v125_v22 = vld [vmem:[#allocation0 + $0x27] ss:$-1 sm:$0xff] }
   0x9   :  { %90 = vst [vmem:[#allocation0 + $0xe8] sm:$0xff] %v89_v16  ;;  %92 = vst [vmem:[#allocation0 + $0xf8] sm:$0xff] %v91_v17  ;;  %v139_v23 = vld [vmem:[#allocation0 + $0x37] ss:$-1 sm:$0xff]  ;;  %v126_v24 = vrot.slane %v125_v22, 1 }
   0xa   :  { %v140_v25 = vrot.slane %v139_v23, 1  ;;  %v153_v26 = vld [vmem:[#allocation0 + $0x47] ss:$-1 sm:$0xff]  ;;  %v167_v27 = vld [vmem:[#allocation0 + $0x57] ss:$-1 sm:$0xff]  ;;  %99 = vst [vmem:[#allocation1] sm:$0xff] %v98_v20 }
   0xb   :  { %v102_v28 = vld [vmem:[#allocation0 + $0xf] ss:$-1 sm:$0xff]  ;;  %113 = vst [vmem:[#allocation1 + $0x8] sm:$0xff] %v112_v21  ;;  %v116_v29 = vld [vmem:[#allocation0 + $0x1f] ss:$-1 sm:$0xff]  ;;  %127 = vst [vmem:[#allocation1 + $0x10] sm:$0xff] %v126_v24 }
   0xc   :  { %v130_v30 = vld [vmem:[#allocation0 + $0x2f] ss:$-1 sm:$0xff]  ;;  %v103_v31 = vrot.slane %v102_v28, 1  ;;  %v117_v32 = vrot.slane %v116_v29, 1  ;;  %141 = vst [vmem:[#allocation1 + $0x18] sm:$0xff] %v140_v25  ;;  %v154_v35 = vrot.slane %v153_v26, 1 }
   0xd   :  { %v131_v33 = vrot.slane %v130_v30, 1  ;;  %v144_v34 = vld [vmem:[#allocation0 + $0x3f] ss:$-1 sm:$0xff]  ;;  %v158_v37 = vld [vmem:[#allocation0 + $0x4f] ss:$-1 sm:$0xff]  ;;  %v168_v38 = vrot.slane %v167_v27, 1 }
   0xe   :  { %v145_v36 = vrot.slane %v144_v34, 1  ;;  %v172_v39 = vld [vmem:[#allocation0 + $0x5f] ss:$-1 sm:$0xff]  ;;  %107 = vst.msk [vmem:[#allocation1] sm:$0xff] %vm106_vm0, %v103_v31  ;;  %121 = vst.msk [vmem:[#allocation1 + $0x8] sm:$0xff] %vm106_vm0, %v117_v32  ;;  %v159_v40 = vrot.slane %v158_v37, 1 }
   0xf   :  { %135 = vst.msk [vmem:[#allocation1 + $0x10] sm:$0xff] %vm106_vm0, %v131_v33  ;;  %155 = vst [vmem:[#allocation1 + $0x20] sm:$0xff] %v154_v35  ;;  %v173_v41 = vrot.slane %v172_v39, 1  ;;  %v181_v42 = vld [vmem:[#allocation0 + $0x67] ss:$-1 sm:$0xff] }
  0x10   :  { %v186_v43 = vld [vmem:[#allocation0 + $0x6f] ss:$-1 sm:$0xff]  ;;  %149 = vst.msk [vmem:[#allocation1 + $0x18] sm:$0xff] %vm106_vm0, %v145_v36  ;;  %169 = vst [vmem:[#allocation1 + $0x28] sm:$0xff] %v168_v38  ;;  %v182_v44 = vrot.slane %v181_v42, 1 }
  0x11   :  { %v187_v45 = vrot.slane %v186_v43, 1  ;;  %v195_v46 = vld [vmem:[#allocation0 + $0x77] ss:$-1 sm:$0xff]  ;;  %v200_v47 = vld [vmem:[#allocation0 + $0x7f] ss:$-1 sm:$0xff]  ;;  %163 = vst.msk [vmem:[#allocation1 + $0x20] sm:$0xff] %vm106_vm0, %v159_v40 }
  0x12   :  { %177 = vst.msk [vmem:[#allocation1 + $0x28] sm:$0xff] %vm106_vm0, %v173_v41  ;;  %v196_v48 = vrot.slane %v195_v46, 1  ;;  %v201_v49 = vrot.slane %v200_v47, 1  ;;  %v209_v50 = vld [vmem:[#allocation0 + $0x87] ss:$-1 sm:$0xff]  ;;  %183 = vst [vmem:[#allocation1 + $0x30] sm:$0xff] %v182_v44 }
  0x13   :  { %v214_v51 = vld [vmem:[#allocation0 + $0x8f] ss:$-1 sm:$0xff]  ;;  %v210_v52 = vrot.slane %v209_v50, 1  ;;  %v223_v54 = vld [vmem:[#allocation0 + $0x97] ss:$-1 sm:$0xff]  ;;  %191 = vst.msk [vmem:[#allocation1 + $0x30] sm:$0xff] %vm106_vm0, %v187_v45 }
  0x14   :  { %v215_v53 = vrot.slane %v214_v51, 1  ;;  %v228_v55 = vld [vmem:[#allocation0 + $0x9f] ss:$-1 sm:$0xff]  ;;  %197 = vst [vmem:[#allocation1 + $0x38] sm:$0xff] %v196_v48  ;;  %v224_v56 = vrot.slane %v223_v54, 1 }
  0x15   :  { %v229_v57 = vrot.slane %v228_v55, 1  ;;  %v237_v58 = vld [vmem:[#allocation0 + $0xa7] ss:$-1 sm:$0xff]  ;;  %v242_v59 = vld [vmem:[#allocation0 + $0xaf] ss:$-1 sm:$0xff]  ;;  %205 = vst.msk [vmem:[#allocation1 + $0x38] sm:$0xff] %vm106_vm0, %v201_v49 }
  0x16   :  { %211 = vst [vmem:[#allocation1 + $0x40] sm:$0xff] %v210_v52  ;;  %v238_v60 = vrot.slane %v237_v58, 1  ;;  %v243_v61 = vrot.slane %v242_v59, 1  ;;  %v251_v62 = vld [vmem:[#allocation0 + $0xb7] ss:$-1 sm:$0xff]  ;;  %225 = vst [vmem:[#allocation1 + $0x48] sm:$0xff] %v224_v56 }
  0x17   :  { %v256_v63 = vld [vmem:[#allocation0 + $0xbf] ss:$-1 sm:$0xff]  ;;  %219 = vst.msk [vmem:[#allocation1 + $0x40] sm:$0xff] %vm106_vm0, %v215_v53  ;;  %v252_v0 = vrot.slane %v251_v62, 1  ;;  %v265_v2 = vld [vmem:[#allocation0 + $0xc7] ss:$-1 sm:$0xff] }
  0x18   :  { %v257_v1 = vrot.slane %v256_v63, 1  ;;  %v270_v3 = vld [vmem:[#allocation0 + $0xcf] ss:$-1 sm:$0xff]  ;;  %233 = vst.msk [vmem:[#allocation1 + $0x48] sm:$0xff] %vm106_vm0, %v229_v57  ;;  %239 = vst [vmem:[#allocation1 + $0x50] sm:$0xff] %v238_v60  ;;  %v266_v4 = vrot.slane %v265_v2, 1 }
  0x19   :  { %v271_v5 = vrot.slane %v270_v3, 1  ;;  %v279_v6 = vld [vmem:[#allocation0 + $0xd7] ss:$-1 sm:$0xff]  ;;  %v284_v7 = vld [vmem:[#allocation0 + $0xdf] ss:$-1 sm:$0xff]  ;;  %247 = vst.msk [vmem:[#allocation1 + $0x50] sm:$0xff] %vm106_vm0, %v243_v61 }
  0x1a   :  { %253 = vst [vmem:[#allocation1 + $0x58] sm:$0xff] %v252_v0  ;;  %v280_v8 = vrot.slane %v279_v6, 1  ;;  %v285_v9 = vrot.slane %v284_v7, 1  ;;  %v293_v11 = vld [vmem:[#allocation0 + $0xe7] ss:$-1 sm:$0xff]  ;;  %267 = vst [vmem:[#allocation1 + $0x60] sm:$0xff] %v266_v4 }
  0x1b   :  { %v298_v12 = vld [vmem:[#allocation0 + $0xef] ss:$-1 sm:$0xff]  ;;  %261 = vst.msk [vmem:[#allocation1 + $0x58] sm:$0xff] %vm106_vm0, %v257_v1  ;;  %v294_v13 = vrot.slane %v293_v11, 1  ;;  %v307_v15 = vld [vmem:[#allocation0 + $0xf7] ss:$-1 sm:$0xff] }
  0x1c   :  { %v299_v14 = vrot.slane %v298_v12, 1  ;;  %v312_v16 = vld [vmem:[#allocation0 + $0xff] ss:$-1 sm:$0xff]  ;;  %275 = vst.msk [vmem:[#allocation1 + $0x60] sm:$0xff] %vm106_vm0, %v271_v5  ;;  %281 = vst [vmem:[#allocation1 + $0x68] sm:$0xff] %v280_v8  ;;  %v308_v17 = vrot.slane %v307_v15, 1 }
  0x1d   :  { %v313_v18 = vrot.slane %v312_v16, 1  ;;  %v376_v19 = vld [vmem:[#allocation1] sm:$0xff]  ;;  %v378_v20 = vld [vmem:[#allocation1 + $0x8] sm:$0xff]  ;;  %v380_v21 = vld [vmem:[#allocation1 + $0x10] sm:$0xff]  ;;  %289 = vst.msk [vmem:[#allocation1 + $0x68] sm:$0xff] %vm106_vm0, %v285_v9 }
  0x1e   :  { %295 = vst [vmem:[#allocation1 + $0x70] sm:$0xff] %v294_v13  ;;  %377 = vst [vmem:[%s607_s1] sm:$0xff] %v376_v19  ;;  %v382_v22 = vld [vmem:[#allocation1 + $0x18] sm:$0xff]  ;;  %v384_v23 = vld [vmem:[#allocation1 + $0x20] sm:$0xff] }
  0x1f   :  { %379 = vst [vmem:[%s607_s1 + $0x8] sm:$0xff] %v378_v20  ;;  %381 = vst [vmem:[%s607_s1 + $0x10] sm:$0xff] %v380_v21  ;;  %v386_v24 = vld [vmem:[#allocation1 + $0x28] sm:$0xff]  ;;  %v388_v25 = vld [vmem:[#allocation1 + $0x30] sm:$0xff] }
  0x20   :  { %303 = vst.msk [vmem:[#allocation1 + $0x70] sm:$0xff] %vm106_vm0, %v299_v14  ;;  %309 = vst [vmem:[#allocation1 + $0x78] sm:$0xff] %v308_v17  ;;  %v390_v26 = vld [vmem:[#allocation1 + $0x38] sm:$0xff]  ;;  %v392_v10 = vld [vmem:[#allocation1 + $0x40] sm:$0xff] }
  0x21   :  { %383 = vst [vmem:[%s607_s1 + $0x18] sm:$0xff] %v382_v22  ;;  %385 = vst [vmem:[%s607_s1 + $0x20] sm:$0xff] %v384_v23  ;;  %v394_v27 = vld [vmem:[#allocation1 + $0x48] sm:$0xff]  ;;  %v396_v28 = vld [vmem:[#allocation1 + $0x50] sm:$0xff] }
  0x22   :  { %387 = vst [vmem:[%s607_s1 + $0x28] sm:$0xff] %v386_v24  ;;  %317 = vst.msk [vmem:[#allocation1 + $0x78] sm:$0xff] %vm106_vm0, %v313_v18  ;;  %v398_v29 = vld [vmem:[#allocation1 + $0x58] sm:$0xff] }
  0x23   :  { %389 = vst [vmem:[%s607_s1 + $0x30] sm:$0xff] %v388_v25  ;;  %391 = vst [vmem:[%s607_s1 + $0x38] sm:$0xff] %v390_v26  ;;  %v400_v30 = vld [vmem:[#allocation1 + $0x60] sm:$0xff] }
  0x24   :  { %393 = vst [vmem:[%s607_s1 + $0x40] sm:$0xff] %v392_v10  ;;  %395 = vst [vmem:[%s607_s1 + $0x48] sm:$0xff] %v394_v27  ;;  %v402_v31 = vld [vmem:[#allocation1 + $0x68] sm:$0xff] }
  0x25   :  { %397 = vst [vmem:[%s607_s1 + $0x50] sm:$0xff] %v396_v28  ;;  %399 = vst [vmem:[%s607_s1 + $0x58] sm:$0xff] %v398_v29 }
  0x26   :  { %401 = vst [vmem:[%s607_s1 + $0x60] sm:$0xff] %v400_v30  ;;  %403 = vst [vmem:[%s607_s1 + $0x68] sm:$0xff] %v402_v31 }
  0x27   :  { %v404_v32 = vld [vmem:[#allocation1 + $0x70] sm:$0xff] }
  0x28   :  { %405 = vst [vmem:[%s607_s1 + $0x70] sm:$0xff] %v404_v32 }
  0x29   :  { %v406_v33 = vld [vmem:[#allocation1 + $0x78] sm:$0xff] }
  0x2a   :  { %407 = vst [vmem:[%s607_s1 + $0x78] sm:$0xff] %v406_v33 }

// kernel: reverse.10
= control target key start
LH: loop header
LB: loop body
LE: loop exit
PB: predicated region body
PF: predicated region fallthrough
CT: control target
= control target key end

     0   :  { %s80_s0 = inlined_call_operand.vmem [shape: f32[8,2,8,3], index: 0, kind: input, shape index: {}]   ;;  %s81_s1 = inlined_call_operand.vmem [shape: f32[8,2,8,3], index: 1, kind: output, shape index: {}]  }
   0x1   :  { %v24_v0 = vld [vmem:[%s80_s0 + $0x10] sm:$0xff]  ;;  %v25_v1 = vld [vmem:[%s80_s0 + $0x28] sm:$0xff]  ;;  %v29_v3 = vld [vmem:[%s80_s0 + $0x20] sm:$0xff] }
   0x2   :  { %v27_v2 = vld [vmem:[%s80_s0 + $0x8] sm:$0xff]  ;;  %4 = vst [vmem:[%s81_s1] sm:$0xff] %v24_v0  ;;  %26 = vst [vmem:[%s81_s1 + $0x18] sm:$0xff] %v25_v1  ;;  %v17_v4 = vld [vmem:[%s80_s0] sm:$0xff] }
   0x3   :  { %28 = vst [vmem:[%s81_s1 + $0x8] sm:$0xff] %v27_v2  ;;  %v32_v5 = vld [vmem:[%s80_s0 + $0x18] sm:$0xff]  ;;  %30 = vst [vmem:[%s81_s1 + $0x20] sm:$0xff] %v29_v3 }
   0x4   :  { %31 = vst [vmem:[%s81_s1 + $0x10] sm:$0xff] %v17_v4  ;;  %33 = vst [vmem:[%s81_s1 + $0x28] sm:$0xff] %v32_v5 }

// kernel: ffc_resnet_block.10
= control target key start
LH: loop header
LB: loop body
LE: loop exit
PB: predicated region body
PF: predicated region fallthrough
CT: control target
= control target key end

     0   :  { %v112_v0 = vmov 0.0   ;;  %vm113_vm0 = vmmov 0   ;;  %v114_v3 = vmov 0   ;;  %vm42_vm1 = vcmask 130048   ;;  %s153_s0 = inlined_call_operand.vmem [shape: bf16[16,128], index: 0, kind: input, shape index: {}]   ;;  %s154_s1 = inlined_call_operand.vmem [shape: bf16[16,16], index: 1, kind: input, shape index: {}]   ;;  %s155_s2 = inlined_call_operand.vmem [shape: f32[16,1], index: 2, kind: input, shape index: {}]   ;;  %s156_s3 = inlined_call_operand.vmem [shape: f32[16,128], index: 3, kind: output, shape index: {}]  }
   0x1   :  { %100 = vmatprep.subr.bf16.mxu0 %v112_v0  ;;  %v110_v1 = vld [vmem:[%s153_s0] sm:$0xff]   ;;  %102 = vmatprep.mubr.msk.bf16.mxu0 %vm113_vm0, %v112_v0  ;;  %v20_v5 = vld [vmem:[%s155_s2 + $0x8] sm:$0xff] }
   0x2   :  { %v111_v2 = vld [vmem:[%s154_s1] sm:$0xff]   ;;  %109 = vset.pattern.permute.xlu0 %v114_v3  ;;  %101 = vmatpush3.bf16.msra.mxu0 %v110_v1 }
   0x3   :  { %v19_v4 = vld [vmem:[%s155_s2] sm:$0xff] }
   0x4   :  { %23 = vperm.xlu0 %109, %v19_v4  }
   0x5   :  { %103 = vmatmul.mubr.msk.bf16.vlgmr.msra.gmra.mxu0 %vm42_vm1, %v111_v2 }
   0x8   :  { %28 = vperm.xlu0 %109, %v20_v5  }
  0x7f   :  { %v24_v6 = vpop.permute.xlu0 %23 }
  0x83   :  { %v29_v11 = vpop.permute.xlu0 %28 }
  0xc5   :  { %v80_v7 = vpop.f32.mrf.mxu0 }
  0xc6   :  { %v81_v8 = vadd.f32 %v80_v7, %v24_v6 }
  0xc7   :  { %v104_v9 = vpop.f32.mrf.mxu0 }
  0xc8   :  { %v87_v10 = vmax.f32 %v81_v8, 0.0 }
  0xc9   :  { %v83_v12 = vpop.f32.mrf.mxu0 }
  0xca   :  { %89 = vst [vmem:[%s156_s3] sm:$0xff] %v87_v10  ;;  %v84_v13 = vadd.f32 %v83_v12, %v29_v11 }
  0xcb   :  { %v105_v14 = vpop.f32.mrf.mxu0 }
  0xcc   :  { %v88_v15 = vmax.f32 %v84_v13, 0.0 }
  0xce   :  { %90 = vst [vmem:[%s156_s3 + $0x8] sm:$0xff] %v88_v15 }

// kernel: tile.14
= control target key start
LH: loop header
LB: loop body
LE: loop exit
PB: predicated region body
PF: predicated region fallthrough
CT: control target
= control target key end

     0   :  { %vm4101_vm0 = vcmask 1041409   ;;  %vm4105_vm1 = vcmask 1042434   ;;  %vm4109_vm2 = vcmask 1043459   ;;  %vm4113_vm3 = vcmask 1044484   ;;  %s7044_s12 = smov 112   ;;  %s7045_s13 = smov 120   ;;  %s8476_s0 = inlined_call_operand.vmem [shape: bf16[8,2,2,8,2,8], index: 0, kind: input, shape index: {}]   ;;  %s8477_s1 = inlined_call_operand.vmem [shape: bf16[8,512], index: 1, kind: output, shape index: {}]  }
   0x1   :  { %v6626_v0 = vld [vmem:[%s8476_s0 + $0xef] sm:$0x1]  ;;  %v6634_v1 = vld [vmem:[%s8476_s0 + $0xe7] sm:$0x1]  ;;  %v6610_v32 = vld [vmem:[%s8476_s0 + $0xff] sm:$0x1] }
   0x2   :  { %v6658_v2 = vld [vmem:[%s8476_s0 + $0xcf] sm:$0x1]  ;;  %v274_v3 = vunpack.c.l.bf16 %v6626_v0  ;;  %v402_v4 = vunpack.c.l.bf16 %v6634_v1  ;;  %v6666_v6 = vld [vmem:[%s8476_s0 + $0xc7] sm:$0x1]  ;;  %v18_v33 = vunpack.c.l.bf16 %v6610_v32  ;;  %v6618_v34 = vld [vmem:[%s8476_s0 + $0xf7] sm:$0x1] }
   0x3   :  { %v786_v5 = vunpack.c.l.bf16 %v6658_v2  ;;  %v6690_v7 = vld [vmem:[%s8476_s0 + $0xaf] sm:$0x1]  ;;  %v6698_v8 = vld [vmem:[%s8476_s0 + $0xa7] sm:$0x1]  ;;  %v914_v9 = vunpack.c.l.bf16 %v6666_v6  ;;  %v146_v35 = vunpack.c.l.bf16 %v6618_v34  ;;  %v6642_v36 = vld [vmem:[%s8476_s0 + $0xdf] sm:$0x1] }
   0x4   :  { %v1298_v10 = vunpack.c.l.bf16 %v6690_v7  ;;  %v1426_v11 = vunpack.c.l.bf16 %v6698_v8  ;;  %v6722_v12 = vld [vmem:[%s8476_s0 + $0x8f] sm:$0x1]  ;;  %v6730_v13 = vld [vmem:[%s8476_s0 + $0x87] sm:$0x1]  ;;  %277 = vst [vmem:[#allocation1 + $0x778] sm:$0x3] %v274_v3  ;;  %v530_v39 = vunpack.c.l.bf16 %v6642_v36 }
   0x5   :  { %v6754_v14 = vld [vmem:[%s8476_s0 + $0x6f] sm:$0x1]  ;;  %405 = vst [vmem:[#allocation1 + $0x738] sm:$0x3] %v402_v4  ;;  %789 = vst [vmem:[#allocation1 + $0x678] sm:$0x3] %v786_v5  ;;  %v1810_v15 = vunpack.c.l.bf16 %v6722_v12  ;;  %v1938_v16 = vunpack.c.l.bf16 %v6730_v13 }
   0x6   :  { %v2322_v17 = vunpack.c.l.bf16 %v6754_v14  ;;  %v6762_v18 = vld [vmem:[%s8476_s0 + $0x67] sm:$0x1]  ;;  %v6786_v19 = vld [vmem:[%s8476_s0 + $0x4f] sm:$0x1]  ;;  %917 = vst [vmem:[#allocation1 + $0x638] sm:$0x3] %v914_v9 }
   0x7   :  { %v6794_v20 = vld [vmem:[%s8476_s0 + $0x47] sm:$0x1]  ;;  %1301 = vst [vmem:[#allocation1 + $0x578] sm:$0x3] %v1298_v10  ;;  %1429 = vst [vmem:[#allocation1 + $0x538] sm:$0x3] %v1426_v11  ;;  %v2450_v21 = vunpack.c.l.bf16 %v6762_v18  ;;  %v2834_v22 = vunpack.c.l.bf16 %v6786_v19 }
   0x8   :  { %v2962_v23 = vunpack.c.l.bf16 %v6794_v20  ;;  %v6818_v24 = vld [vmem:[%s8476_s0 + $0x2f] sm:$0x1]  ;;  %v6826_v25 = vld [vmem:[%s8476_s0 + $0x27] sm:$0x1]  ;;  %1813 = vst [vmem:[#allocation1 + $0x478] sm:$0x3] %v1810_v15 }
   0x9   :  { %v6850_v26 = vld [vmem:[%s8476_s0 + $0xf] sm:$0x1]  ;;  %1941 = vst [vmem:[#allocation1 + $0x438] sm:$0x3] %v1938_v16  ;;  %2325 = vst [vmem:[#allocation1 + $0x378] sm:$0x3] %v2322_v17  ;;  %v3346_v27 = vunpack.c.l.bf16 %v6818_v24  ;;  %v3474_v28 = vunpack.c.l.bf16 %v6826_v25 }
   0xa   :  { %v3858_v29 = vunpack.c.l.bf16 %v6850_v26  ;;  %v6858_v30 = vld [vmem:[%s8476_s0 + $0x7] sm:$0x1]  ;;  %2453 = vst [vmem:[#allocation1 + $0x338] sm:$0x3] %v2450_v21  ;;  %2837 = vst [vmem:[#allocation1 + $0x278] sm:$0x3] %v2834_v22 }
   0xb   :  { %2965 = vst [vmem:[#allocation1 + $0x238] sm:$0x3] %v2962_v23  ;;  %v3986_v31 = vunpack.c.l.bf16 %v6858_v30  ;;  %3349 = vst [vmem:[#allocation1 + $0x178] sm:$0x3] %v3346_v27  ;;  %v6650_v37 = vld [vmem:[%s8476_s0 + $0xd7] sm:$0x1] }
   0xc   :  { %3477 = vst [vmem:[#allocation1 + $0x138] sm:$0x3] %v3474_v28  ;;  %3861 = vst [vmem:[#allocation1 + $0x78] sm:$0x3] %v3858_v29  ;;  %v6674_v38 = vld [vmem:[%s8476_s0 + $0xbf] sm:$0x1]  ;;  %v658_v40 = vunpack.c.l.bf16 %v6650_v37 }
   0xd   :  { %3989 = vst [vmem:[#allocation1 + $0x38] sm:$0x3] %v3986_v31  ;;  %21 = vst [vmem:[#allocation1 + $0x7f8] sm:$0x3] %v18_v33  ;;  %v1042_v41 = vunpack.c.l.bf16 %v6674_v38  ;;  %v6682_v42 = vld [vmem:[%s8476_s0 + $0xb7] sm:$0x1] }
   0xe   :  { %v6706_v43 = vld [vmem:[%s8476_s0 + $0x9f] sm:$0x1]  ;;  %v6714_v44 = vld [vmem:[%s8476_s0 + $0x97] sm:$0x1]  ;;  %149 = vst [vmem:[#allocation1 + $0x7b8] sm:$0x3] %v146_v35  ;;  %v1170_v45 = vunpack.c.l.bf16 %v6682_v42 }
   0xf   :  { %v1554_v46 = vunpack.c.l.bf16 %v6706_v43  ;;  %v1682_v47 = vunpack.c.l.bf16 %v6714_v44  ;;  %533 = vst [vmem:[#allocation1 + $0x6f8] sm:$0x3] %v530_v39  ;;  %661 = vst [vmem:[#allocation1 + $0x6b8] sm:$0x3] %v658_v40  ;;  %vm4117_vm4 = vcmask 1045509   ;;  %vm4121_vm5 = vcmask 1046534  }
  0x10   :  { %1045 = vst [vmem:[#allocation1 + $0x5f8] sm:$0x3] %v1042_v41  ;;  %vm4125_vm6 = vcmask 1047559   ;;  %v4420_v48 = vld [vmem:[#allocation1 + $0x375] sm:$0x8]   ;;  %s7046_s30 = smov 104  }
  0x11   :  { %1173 = vst [vmem:[#allocation1 + $0x5b8] sm:$0x3] %v1170_v45  ;;  %1557 = vst [vmem:[#allocation1 + $0x4f8] sm:$0x3] %v1554_v46  ;;  %v4386_v50 = vld [vmem:[#allocation1 + $0x335] sm:$0x8]  }
  0x12   :  { %1685 = vst [vmem:[#allocation1 + $0x4b8] sm:$0x3] %v1682_v47  ;;  %v4382_v49 = vld [vmem:[#allocation1 + $0x236] sm:$0x4]   ;;  %v4243_v5 = vld [vmem:[#allocation1 + $0x237] sm:$0x4]  }
  0x13   :  { %v4416_v51 = vld [vmem:[#allocation1 + $0x276] sm:$0x4]   ;;  %v4239_v63 = vld [vmem:[#allocation1 + $0x138] sm:$0x2]   ;;  %v6738_v34 = vld [vmem:[%s8476_s0 + $0x7f] sm:$0x1] }
  0x14   :  { %v4424_v52 = vld [vmem:[#allocation1 + $0x474] sm:$0x10]   ;;  %v4237_v62 = vld [vmem:[#allocation1 + $0x39] sm:$0x1]   ;;  %v6746_v39 = vld [vmem:[%s8476_s0 + $0x77] sm:$0x1]  ;;  %v2066_v45 = vunpack.c.l.bf16 %v6738_v34 }
  0x15   :  { %v4378_v53 = vld [vmem:[#allocation1 + $0x137] sm:$0x2]   ;;  %v4241_v4 = vsel %vm4101_vm0, %v4239_v63, %v4237_v62  ;;  %v4247_v6 = vld [vmem:[#allocation1 + $0x336] sm:$0x8]   ;;  %v6770_v40 = vld [vmem:[%s8476_s0 + $0x5f] sm:$0x1] }
  0x16   :  { %v4390_v54 = vld [vmem:[#allocation1 + $0x434] sm:$0x10]   ;;  %v4251_v7 = vld [vmem:[#allocation1 + $0x435] sm:$0x10]   ;;  %v4245_v11 = vsel %vm4105_vm1, %v4243_v5, %v4241_v4  ;;  %v6778_v41 = vld [vmem:[%s8476_s0 + $0x57] sm:$0x1] }
  0x17   :  { %v4410_v55 = vld [vmem:[#allocation1 + $0x78] sm:$0x1]   ;;  %v4255_v12 = vld [vmem:[#allocation1 + $0x534] sm:$0x20]   ;;  %v4249_v17 = vsel %vm4109_vm2, %v4247_v6, %v4245_v11  ;;  %v6802_v46 = vld [vmem:[%s8476_s0 + $0x3f] sm:$0x1] }
  0x18   :  { %v4412_v56 = vld [vmem:[#allocation1 + $0x177] sm:$0x2]   ;;  %v4259_v13 = vld [vmem:[#allocation1 + $0x633] sm:$0x40]   ;;  %v4253_v23 = vsel %vm4113_vm3, %v4251_v7, %v4249_v17  ;;  %v6810_v47 = vld [vmem:[%s8476_s0 + $0x37] sm:$0x1] }
  0x19   :  { %v4428_v57 = vld [vmem:[#allocation1 + $0x573] sm:$0x20]   ;;  %v4414_v60 = vsel %vm4101_vm0, %v4412_v56, %v4410_v55  ;;  %v4263_v14 = vld [vmem:[#allocation1 + $0x732] sm:$0x80]   ;;  %v4257_v30 = vsel %vm4117_vm4, %v4255_v12, %v4253_v23  ;;  %2069 = vst [vmem:[#allocation1 + $0x3f8] sm:$0x3] %v2066_v45  ;;  %v2706_v55 = vunpack.c.l.bf16 %v6778_v41  ;;  %v3090_v56 = vunpack.c.l.bf16 %v6802_v46 }
  0x1a   :  { %v4376_v58 = vld [vmem:[#allocation1 + $0x38] sm:$0x1]   ;;  %v4418_v2 = vsel %vm4105_vm1, %v4416_v51, %v4414_v60  ;;  %v4271_v18 = vld [vmem:[#allocation1 + $0x79] sm:$0x1]   ;;  %v4261_v37 = vsel %vm4121_vm5, %v4259_v13, %v4257_v30  ;;  %v2194_v51 = vunpack.c.l.bf16 %v6746_v39  ;;  %v6611_v62 = vld [vmem:[%s8476_s0 + $0xfe] sm:$0x1] }
  0x1b   :  { %v4394_v59 = vld [vmem:[#allocation1 + $0x533] sm:$0x20]   ;;  %v4380_v0 = vsel %vm4101_vm0, %v4378_v53, %v4376_v58  ;;  %v4422_v10 = vsel %vm4109_vm2, %v4420_v48, %v4418_v2  ;;  %v4273_v19 = vld [vmem:[#allocation1 + $0x178] sm:$0x2]   ;;  %v4265_v43 = vsel %vm4125_vm6, %v4263_v14, %v4261_v37  ;;  %v6834_v48 = vld [vmem:[%s8476_s0 + $0x1f] sm:$0x1]  ;;  %v34_v63 = vunpack.c.l.bf16 %v6611_v62 }
  0x1c   :  { %v4432_v61 = vld [vmem:[#allocation1 + $0x672] sm:$0x40]   ;;  %v4384_v8 = vsel %vm4105_vm1, %v4382_v49, %v4380_v0  ;;  %v4426_v16 = vsel %vm4113_vm3, %v4424_v52, %v4422_v10  ;;  %v4277_v20 = vld [vmem:[#allocation1 + $0x277] sm:$0x4]   ;;  %v4275_v24 = vsel %vm4101_vm0, %v4273_v19, %v4271_v18  ;;  %v2578_v52 = vunpack.c.l.bf16 %v6770_v40  ;;  %v6842_v53 = vld [vmem:[%s8476_s0 + $0x17] sm:$0x1] }
  0x1d   :  { %v4398_v1 = vld [vmem:[#allocation1 + $0x632] sm:$0x40]   ;;  %v4388_v15 = vsel %vm4109_vm2, %v4386_v50, %v4384_v8  ;;  %v4430_v22 = vsel %vm4117_vm4, %v4428_v57, %v4426_v16  ;;  %v4281_v25 = vld [vmem:[#allocation1 + $0x376] sm:$0x8]   ;;  %v4279_v31 = vsel %vm4105_vm1, %v4277_v20, %v4275_v24  ;;  %v3218_v57 = vunpack.c.l.bf16 %v6810_v47  ;;  %2197 = vst [vmem:[#allocation1 + $0x3b8] sm:$0x3] %v2194_v51 }
  0x1e   :  { %v4436_v3 = vld [vmem:[#allocation1 + $0x771] sm:$0x80]   ;;  %v4392_v21 = vsel %vm4113_vm3, %v4390_v54, %v4388_v15  ;;  %v4285_v26 = vld [vmem:[#allocation1 + $0x475] sm:$0x10]   ;;  %v4434_v29 = vsel %vm4121_vm5, %v4432_v61, %v4430_v22  ;;  %v4283_v38 = vsel %vm4109_vm2, %v4281_v25, %v4279_v31  ;;  %2581 = vst [vmem:[#allocation1 + $0x2f8] sm:$0x3] %v2578_v52  ;;  %v3730_v60 = vunpack.c.l.bf16 %v6842_v53 }
  0x1f   :  { %v4402_v9 = vld [vmem:[#allocation1 + $0x731] sm:$0x80]   ;;  %v4289_v27 = vld [vmem:[#allocation1 + $0x574] sm:$0x20]   ;;  %v4396_v28 = vsel %vm4117_vm4, %v4394_v59, %v4392_v21  ;;  %v4438_v36 = vsel %vm4125_vm6, %v4436_v3, %v4434_v29  ;;  %v4287_v44 = vsel %vm4113_vm3, %v4285_v26, %v4283_v38  ;;  %v3602_v59 = vunpack.c.l.bf16 %v6834_v48  ;;  %2709 = vst [vmem:[#allocation1 + $0x2b8] sm:$0x3] %v2706_v55 }
  0x20   :  { %v4293_v32 = vld [vmem:[#allocation1 + $0x673] sm:$0x40]   ;;  %v4400_v35 = vsel %vm4121_vm5, %v4398_v1, %v4396_v28  ;;  %v4291_v50 = vsel %vm4117_vm4, %v4289_v27, %v4287_v44  ;;  %3093 = vst [vmem:[#allocation1 + $0x1f8] sm:$0x3] %v3090_v56  ;;  %3221 = vst [vmem:[#allocation1 + $0x1b8] sm:$0x3] %v3218_v57 }
  0x21   :  { %v4297_v33 = vld [vmem:[#allocation1 + $0x772] sm:$0x80]   ;;  %v4404_v42 = vsel %vm4125_vm6, %v4402_v9, %v4400_v35  ;;  %v4295_v54 = vsel %vm4121_vm5, %v4293_v32, %v4291_v50  ;;  %3605 = vst [vmem:[#allocation1 + $0xf8] sm:$0x3] %v3602_v59  ;;  %3733 = vst [vmem:[#allocation1 + $0xb8] sm:$0x3] %v3730_v60 }
  0x22   :  { %v6904_v49 = vpack.i.bf16 %v4438_v36, %v4404_v42  ;;  %v4299_v58 = vsel %vm4125_vm6, %v4297_v33, %v4295_v54  ;;  %v6619_v0 = vld [vmem:[%s8476_s0 + $0xf6] sm:$0x1]  ;;  %v6643_v1 = vld [vmem:[%s8476_s0 + $0xde] sm:$0x1]  ;;  %37 = vst [vmem:[#allocation1 + $0x7f0] sm:$0x3] %v34_v63 }
  0x23   :  { %v6894_v61 = vpack.i.bf16 %v4299_v58, %v4265_v43  ;;  %v6651_v2 = vld [vmem:[%s8476_s0 + $0xd6] sm:$0x1]  ;;  %v162_v3 = vunpack.c.l.bf16 %v6619_v0  ;;  %v546_v4 = vunpack.c.l.bf16 %v6643_v1  ;;  %v6675_v6 = vld [vmem:[%s8476_s0 + $0xbe] sm:$0x1]  ;;  %v4490_v15 = vld [vmem:[#allocation1 + $0x3f5] sm:$0x8]  }
  0x24   :  { %6905 = vrot.lane.b32.xlu1 %v6904_v49, %s7044_s12  ;;  %v674_v5 = vunpack.c.l.bf16 %v6651_v2  ;;  %v6683_v7 = vld [vmem:[%s8476_s0 + $0xb6] sm:$0x1]  ;;  %v6707_v8 = vld [vmem:[%s8476_s0 + $0x9e] sm:$0x1]  ;;  %v1058_v9 = vunpack.c.l.bf16 %v6675_v6  ;;  %v4455_v13 = vld [vmem:[#allocation1 + $0x3b5] sm:$0x8]  }
  0x25   :  { %6895 = vrot.lane.b32.xlu0 %v6894_v61, %s7045_s13  ;;  %v1186_v10 = vunpack.c.l.bf16 %v6683_v7  ;;  %v1570_v11 = vunpack.c.l.bf16 %v6707_v8  ;;  %v6715_v12 = vld [vmem:[%s8476_s0 + $0x96] sm:$0x1]  ;;  %v4486_v14 = vld [vmem:[#allocation1 + $0x2f6] sm:$0x4]   ;;  %165 = vst [vmem:[#allocation1 + $0x7b0] sm:$0x3] %v162_v3 }
  0x26   :  { %549 = vst [vmem:[#allocation1 + $0x6f0] sm:$0x3] %v546_v4  ;;  %677 = vst [vmem:[#allocation1 + $0x6b0] sm:$0x3] %v674_v5  ;;  %v1698_v16 = vunpack.c.l.bf16 %v6715_v12  ;;  %v4451_v18 = vld [vmem:[#allocation1 + $0x2b6] sm:$0x4]  }
  0x27   :  { %v4447_v17 = vld [vmem:[#allocation1 + $0x1b7] sm:$0x2]   ;;  %v4316_v22 = vld [vmem:[#allocation1 + $0x3b6] sm:$0x8]   ;;  %1061 = vst [vmem:[#allocation1 + $0x5f0] sm:$0x3] %v1058_v9 }
  0x28   :  { %v4459_v19 = vld [vmem:[#allocation1 + $0x4b4] sm:$0x10]   ;;  %1189 = vst [vmem:[#allocation1 + $0x5b0] sm:$0x3] %v1186_v10  ;;  %1573 = vst [vmem:[#allocation1 + $0x4f0] sm:$0x3] %v1570_v11 }
  0x29   :  { %v4482_v20 = vld [vmem:[#allocation1 + $0x1f7] sm:$0x2]   ;;  %v4306_v27 = vld [vmem:[#allocation1 + $0xb9] sm:$0x1]   ;;  %1701 = vst [vmem:[#allocation1 + $0x4b0] sm:$0x3] %v1698_v16 }
  0x2a   :  { %v4494_v21 = vld [vmem:[#allocation1 + $0x4f4] sm:$0x10]   ;;  %v4320_v28 = vld [vmem:[#allocation1 + $0x4b5] sm:$0x10]   ;;  %v6739_v63 = vld [vmem:[%s8476_s0 + $0x7e] sm:$0x1] }
  0x2b   :  { %v4445_v23 = vld [vmem:[#allocation1 + $0xb8] sm:$0x1]   ;;  %v4308_v33 = vld [vmem:[#allocation1 + $0x1b8] sm:$0x2]   ;;  %v6747_v0 = vld [vmem:[%s8476_s0 + $0x76] sm:$0x1] }
  0x2c   :  { %v4463_v24 = vld [vmem:[#allocation1 + $0x5b3] sm:$0x20]   ;;  %v4449_v29 = vsel %vm4101_vm0, %v4447_v17, %v4445_v23  ;;  %v4312_v34 = vld [vmem:[#allocation1 + $0x2b7] sm:$0x4]   ;;  %v4310_v40 = vsel %vm4101_vm0, %v4308_v33, %v4306_v27  ;;  %v6771_v5 = vld [vmem:[%s8476_s0 + $0x5e] sm:$0x1]  ;;  %v2210_v23 = vunpack.c.l.bf16 %v6747_v0 }
  0x2d   :  { %v4480_v25 = vld [vmem:[#allocation1 + $0xf8] sm:$0x1]   ;;  %v4341_v35 = vld [vmem:[#allocation1 + $0xf9] sm:$0x1]   ;;  %v4453_v36 = vsel %vm4105_vm1, %v4451_v18, %v4449_v29  ;;  %v4314_v46 = vsel %vm4105_vm1, %v4312_v34, %v4310_v40  ;;  %v6779_v6 = vld [vmem:[%s8476_s0 + $0x56] sm:$0x1]  ;;  %v2082_v18 = vunpack.c.l.bf16 %v6739_v63 }
  0x2e   :  { %v4498_v26 = vld [vmem:[#allocation1 + $0x5f3] sm:$0x20]   ;;  %v4484_v31 = vsel %vm4101_vm0, %v4482_v20, %v4480_v25  ;;  %v4343_v41 = vld [vmem:[#allocation1 + $0x1f8] sm:$0x2]   ;;  %v4457_v44 = vsel %vm4109_vm2, %v4455_v13, %v4453_v36  ;;  %v4318_v53 = vsel %vm4109_vm2, %v4316_v22, %v4314_v46  ;;  %v6803_v7 = vld [vmem:[%s8476_s0 + $0x3e] sm:$0x1]  ;;  %v2722_v25 = vunpack.c.l.bf16 %v6779_v6 }
  0x2f   :  { %v4467_v30 = vld [vmem:[#allocation1 + $0x6b2] sm:$0x40]   ;;  %v4488_v38 = vsel %vm4105_vm1, %v4486_v14, %v4484_v31  ;;  %v4347_v42 = vld [vmem:[#allocation1 + $0x2f7] sm:$0x4]   ;;  %v4345_v49 = vsel %vm4101_vm0, %v4343_v41, %v4341_v35  ;;  %v4461_v51 = vsel %vm4113_vm3, %v4459_v19, %v4457_v44  ;;  %v4322_v60 = vsel %vm4113_vm3, %v4320_v28, %v4318_v53  ;;  %v6811_v12 = vld [vmem:[%s8476_s0 + $0x36] sm:$0x1] }
  0x30   :  { %v4502_v32 = vld [vmem:[#allocation1 + $0x6f2] sm:$0x40]   ;;  %v4351_v43 = vld [vmem:[#allocation1 + $0x3f6] sm:$0x8]   ;;  %v4492_v45 = vsel %vm4109_vm2, %v4490_v15, %v4488_v38  ;;  %v4349_v55 = vsel %vm4105_vm1, %v4347_v42, %v4345_v49  ;;  %v4465_v58 = vsel %vm4117_vm4, %v4463_v24, %v4461_v51  ;;  %v6835_v13 = vld [vmem:[%s8476_s0 + $0x1e] sm:$0x1]  ;;  %v2594_v24 = vunpack.c.l.bf16 %v6771_v5 }
  0x31   :  { %v4471_v37 = vld [vmem:[#allocation1 + $0x7b1] sm:$0x80]   ;;  %v4324_v47 = vld [vmem:[#allocation1 + $0x5b4] sm:$0x20]   ;;  %v4496_v52 = vsel %vm4113_vm3, %v4494_v21, %v4492_v45  ;;  %v4353_v61 = vsel %vm4109_vm2, %v4351_v43, %v4349_v55  ;;  %v4469_v1 = vsel %vm4121_vm5, %v4467_v30, %v4465_v58  ;;  %v6843_v14 = vld [vmem:[%s8476_s0 + $0x16] sm:$0x1]  ;;  %v3106_v30 = vunpack.c.l.bf16 %v6803_v7 }
  0x32   :  { %v4506_v39 = vld [vmem:[#allocation1 + $0x7f1] sm:$0x80]   ;;  %v4328_v48 = vld [vmem:[#allocation1 + $0x6b3] sm:$0x40]   ;;  %v4500_v59 = vsel %vm4117_vm4, %v4498_v26, %v4496_v52  ;;  %v4326_v3 = vsel %vm4117_vm4, %v4324_v47, %v4322_v60  ;;  %v4473_v8 = vsel %vm4125_vm6, %v4471_v37, %v4469_v1  ;;  %v6627_v19 = vld [vmem:[%s8476_s0 + $0xee] sm:$0x1]  ;;  %v3234_v31 = vunpack.c.l.bf16 %v6811_v12 }
  0x33   :  { %v4355_v50 = vld [vmem:[#allocation1 + $0x4f5] sm:$0x10]   ;;  %v4504_v2 = vsel %vm4121_vm5, %v4502_v32, %v4500_v59  ;;  %v4330_v10 = vsel %vm4121_vm5, %v4328_v48, %v4326_v3  ;;  %v6635_v20 = vld [vmem:[%s8476_s0 + $0xe6] sm:$0x1]  ;;  %v6659_v21 = vld [vmem:[%s8476_s0 + $0xce] sm:$0x1]  ;;  %v3618_v32 = vunpack.c.l.bf16 %v6835_v13  ;;  %v3746_v36 = vunpack.c.l.bf16 %v6843_v14 }
  0x34   :  { %v4332_v54 = vld [vmem:[#allocation1 + $0x7b2] sm:$0x80]   ;;  %v4357_v4 = vsel %vm4113_vm3, %v4355_v50, %v4353_v61  ;;  %v4508_v9 = vsel %vm4125_vm6, %v4506_v39, %v4504_v2  ;;  %v6667_v26 = vld [vmem:[%s8476_s0 + $0xc6] sm:$0x1]  ;;  %v6691_v27 = vld [vmem:[%s8476_s0 + $0xae] sm:$0x1]  ;;  %v290_v37 = vunpack.c.l.bf16 %v6627_v19  ;;  %v418_v38 = vunpack.c.l.bf16 %v6635_v20 }
  0x35   :  { %v4359_v56 = vld [vmem:[#allocation1 + $0x5f4] sm:$0x20]   ;;  %v6909_v15 = vpack.i.bf16 %v4508_v9, %v4473_v8  ;;  %v4334_v16 = vsel %vm4125_vm6, %v4332_v54, %v4330_v10  ;;  %v6699_v28 = vld [vmem:[%s8476_s0 + $0xa6] sm:$0x1]  ;;  %2085 = vst [vmem:[#allocation1 + $0x3f0] sm:$0x3] %v2082_v18  ;;  %v802_v39 = vunpack.c.l.bf16 %v6659_v21  ;;  %v930_v43 = vunpack.c.l.bf16 %v6667_v26 }
  0x36   :  { %v4363_v57 = vld [vmem:[#allocation1 + $0x6f3] sm:$0x40]   ;;  %v4361_v11 = vsel %vm4117_vm4, %v4359_v56, %v4357_v4  ;;  %v6723_v33 = vld [vmem:[%s8476_s0 + $0x8e] sm:$0x1]  ;;  %v6731_v34 = vld [vmem:[%s8476_s0 + $0x86] sm:$0x1]  ;;  %v1314_v44 = vunpack.c.l.bf16 %v6691_v27  ;;  %v1442_v45 = vunpack.c.l.bf16 %v6699_v28 }
  0x37   :  { %v4367_v62 = vld [vmem:[#allocation1 + $0x7f2] sm:$0x80]   ;;  %v4365_v17 = vsel %vm4121_vm5, %v4363_v57, %v4361_v11  ;;  %6910 = vrot.lane.b32.xlu1 %v6909_v15, %s7044_s12  ;;  %v6755_v35 = vld [vmem:[%s8476_s0 + $0x6e] sm:$0x1]  ;;  %2213 = vst [vmem:[#allocation1 + $0x3b0] sm:$0x3] %v2210_v23  ;;  %v1826_v46 = vunpack.c.l.bf16 %v6723_v33  ;;  %v1954_v50 = vunpack.c.l.bf16 %v6731_v34 }
  0x38   :  { %v4369_v22 = vsel %vm4125_vm6, %v4367_v62, %v4365_v17  ;;  %2597 = vst [vmem:[#allocation1 + $0x2f0] sm:$0x3] %v2594_v24  ;;  %2725 = vst [vmem:[#allocation1 + $0x2b0] sm:$0x3] %v2722_v25  ;;  %v6763_v40 = vld [vmem:[%s8476_s0 + $0x66] sm:$0x1]  ;;  %v2338_v51 = vunpack.c.l.bf16 %v6755_v35 }
  0x39   :  { %v6899_v29 = vpack.i.bf16 %v4369_v22, %v4334_v16  ;;  %v6787_v41 = vld [vmem:[%s8476_s0 + $0x4e] sm:$0x1]  ;;  %v6795_v42 = vld [vmem:[%s8476_s0 + $0x46] sm:$0x1]  ;;  %3109 = vst [vmem:[#allocation1 + $0x1f0] sm:$0x3] %v3106_v30  ;;  %v2466_v52 = vunpack.c.l.bf16 %v6763_v40 }
  0x3a   :  { %3237 = vst [vmem:[#allocation1 + $0x1b0] sm:$0x3] %v3234_v31  ;;  %3621 = vst [vmem:[#allocation1 + $0xf0] sm:$0x3] %v3618_v32  ;;  %v6819_v47 = vld [vmem:[%s8476_s0 + $0x2e] sm:$0x1]  ;;  %v2850_v53 = vunpack.c.l.bf16 %v6787_v41  ;;  %v2978_v55 = vunpack.c.l.bf16 %v6795_v42 }
  0x3b   :  { %6900 = vrot.lane.b32.xlu0 %v6899_v29, %s7045_s13  ;;  %v6827_v48 = vld [vmem:[%s8476_s0 + $0x26] sm:$0x1]  ;;  %v6851_v49 = vld [vmem:[%s8476_s0 + $0xe] sm:$0x1]  ;;  %3749 = vst [vmem:[#allocation1 + $0xb0] sm:$0x3] %v3746_v36  ;;  %v3362_v56 = vunpack.c.l.bf16 %v6819_v47 }
  0x3c   :  { %293 = vst [vmem:[#allocation1 + $0x770] sm:$0x3] %v290_v37  ;;  %421 = vst [vmem:[#allocation1 + $0x730] sm:$0x3] %v418_v38  ;;  %v6859_v54 = vld [vmem:[%s8476_s0 + $0x6] sm:$0x1]  ;;  %v3490_v57 = vunpack.c.l.bf16 %v6827_v48  ;;  %v3874_v58 = vunpack.c.l.bf16 %v6851_v49 }
  0x3d   :  { %805 = vst [vmem:[#allocation1 + $0x670] sm:$0x3] %v802_v39  ;;  %933 = vst [vmem:[#allocation1 + $0x630] sm:$0x3] %v930_v43  ;;  %v4002_v59 = vunpack.c.l.bf16 %v6859_v54  ;;  %v6612_v60 = vld [vmem:[%s8476_s0 + $0xfd] sm:$0x1] }
  0x3e   :  { %1317 = vst [vmem:[#allocation1 + $0x570] sm:$0x3] %v1314_v44  ;;  %1445 = vst [vmem:[#allocation1 + $0x530] sm:$0x3] %v1442_v45  ;;  %v6620_v61 = vld [vmem:[%s8476_s0 + $0xf5] sm:$0x1]  ;;  %v50_v63 = vunpack.c.l.bf16 %v6612_v60 }
  0x3f   :  { %1829 = vst [vmem:[#allocation1 + $0x470] sm:$0x3] %v1826_v46  ;;  %1957 = vst [vmem:[#allocation1 + $0x430] sm:$0x3] %v1954_v50  ;;  %v6644_v62 = vld [vmem:[%s8476_s0 + $0xdd] sm:$0x1]  ;;  %v178_v0 = vunpack.c.l.bf16 %v6620_v61 }
  0x40   :  { %2341 = vst [vmem:[#allocation1 + $0x370] sm:$0x3] %v2338_v51  ;;  %2469 = vst [vmem:[#allocation1 + $0x330] sm:$0x3] %v2466_v52  ;;  %v562_v1 = vunpack.c.l.bf16 %v6644_v62  ;;  %v6652_v2 = vld [vmem:[%s8476_s0 + $0xd5] sm:$0x1] }
  0x41   :  { %2853 = vst [vmem:[#allocation1 + $0x270] sm:$0x3] %v2850_v53  ;;  %2981 = vst [vmem:[#allocation1 + $0x230] sm:$0x3] %v2978_v55  ;;  %v4590_v3 = vld [vmem:[#allocation1 + $0x2af] sm:$0x4]   ;;  %v690_v6 = vunpack.c.l.bf16 %v6652_v2 }
  0x42   :  { %3365 = vst [vmem:[#allocation1 + $0x170] sm:$0x3] %v3362_v56  ;;  %3493 = vst [vmem:[#allocation1 + $0x130] sm:$0x3] %v3490_v57  ;;  %v4625_v4 = vld [vmem:[#allocation1 + $0x2ef] sm:$0x4]  }
  0x43   :  { %3877 = vst [vmem:[#allocation1 + $0x70] sm:$0x3] %v3874_v58  ;;  %4005 = vst [vmem:[#allocation1 + $0x30] sm:$0x3] %v4002_v59  ;;  %v4629_v5 = vld [vmem:[#allocation1 + $0x3ee] sm:$0x8]  }
  0x44   :  { %v4586_v7 = vld [vmem:[#allocation1 + $0x1b0] sm:$0x2]   ;;  %53 = vst [vmem:[#allocation1 + $0x7e8] sm:$0x3] %v50_v63  ;;  %181 = vst [vmem:[#allocation1 + $0x7a8] sm:$0x3] %v178_v0 }
  0x45   :  { %v4619_v8 = vld [vmem:[#allocation1 + $0xf1] sm:$0x1]   ;;  %565 = vst [vmem:[#allocation1 + $0x6e8] sm:$0x3] %v562_v1  ;;  %693 = vst [vmem:[#allocation1 + $0x6a8] sm:$0x3] %v690_v6 }
  0x46   :  { %v4621_v9 = vld [vmem:[#allocation1 + $0x1f0] sm:$0x2]   ;;  %v4723_v47 = vld [vmem:[#allocation1 + $0xb0] sm:$0x1]   ;;  %s7047_s26 = smov 96   ;;  %s7049_s18 = smov 80  }
  0x47   :  { %v4584_v10 = vld [vmem:[#allocation1 + $0xb1] sm:$0x1]   ;;  %v4623_v13 = vsel %vm4101_vm0, %v4621_v9, %v4619_v8  ;;  %v4737_v48 = vld [vmem:[#allocation1 + $0x4ac] sm:$0x10]   ;;  %s7050_s8 = smov 72   ;;  %s7051_s24 = smov 64  }
  0x48   :  { %v4594_v11 = vld [vmem:[#allocation1 + $0x3ae] sm:$0x8]   ;;  %v4588_v15 = vsel %vm4101_vm0, %v4586_v7, %v4584_v10  ;;  %v4627_v18 = vsel %vm4105_vm1, %v4625_v4, %v4623_v13  ;;  %v4725_v53 = vld [vmem:[#allocation1 + $0x1af] sm:$0x2]   ;;  %s7052_s17 = smov 56   ;;  %s7054_s25 = smov 40  }
  0x49   :  { %v4602_v12 = vld [vmem:[#allocation1 + $0x5ac] sm:$0x20]   ;;  %v4592_v21 = vsel %vm4105_vm1, %v4590_v3, %v4588_v15  ;;  %v4631_v23 = vsel %vm4109_vm2, %v4629_v5, %v4627_v18  ;;  %v4729_v54 = vld [vmem:[#allocation1 + $0x2ae] sm:$0x4]   ;;  %v4727_v60 = vsel %vm4101_vm0, %v4725_v53, %v4723_v47  ;;  %s7055_s6 = smov 32   ;;  %s7056_s3 = smov 24  }
  0x4a   :  { %v4633_v14 = vld [vmem:[#allocation1 + $0x4ed] sm:$0x10]   ;;  %v4596_v27 = vsel %vm4109_vm2, %v4594_v11, %v4592_v21  ;;  %v4733_v55 = vld [vmem:[#allocation1 + $0x3ad] sm:$0x8]   ;;  %v4731_v7 = vsel %vm4105_vm1, %v4729_v54, %v4727_v60  ;;  %v6708_v54 = vld [vmem:[%s8476_s0 + $0x9d] sm:$0x1] }
  0x4b   :  { %v4598_v16 = vld [vmem:[#allocation1 + $0x4ad] sm:$0x10]   ;;  %v4635_v28 = vsel %vm4113_vm3, %v4633_v14, %v4631_v23  ;;  %v4741_v56 = vld [vmem:[#allocation1 + $0x5ab] sm:$0x20]   ;;  %v4735_v13 = vsel %vm4109_vm2, %v4733_v55, %v4731_v7  ;;  %v6716_v55 = vld [vmem:[%s8476_s0 + $0x95] sm:$0x1] }
  0x4c   :  { %v4606_v17 = vld [vmem:[#allocation1 + $0x6ab] sm:$0x40]   ;;  %v4600_v33 = vsel %vm4113_vm3, %v4598_v16, %v4596_v27  ;;  %v4745_v61 = vld [vmem:[#allocation1 + $0x6aa] sm:$0x40]   ;;  %v4739_v21 = vsel %vm4113_vm3, %v4737_v48, %v4735_v13  ;;  %v6676_v48 = vld [vmem:[%s8476_s0 + $0xbd] sm:$0x1] }
  0x4d   :  { %v4637_v19 = vld [vmem:[#allocation1 + $0x5ec] sm:$0x20]   ;;  %v4604_v39 = vsel %vm4117_vm4, %v4602_v12, %v4600_v33  ;;  %v4758_v62 = vld [vmem:[#allocation1 + $0xf0] sm:$0x1]   ;;  %v1074_v53 = vunpack.c.l.bf16 %v6676_v48  ;;  %v6820_v48 = vld [vmem:[%s8476_s0 + $0x2d] sm:$0x1] }
  0x4e   :  { %v4641_v20 = vld [vmem:[#allocation1 + $0x6eb] sm:$0x40]   ;;  %v4639_v34 = vsel %vm4117_vm4, %v4637_v19, %v4635_v28  ;;  %v4608_v49 = vsel %vm4121_vm5, %v4606_v17, %v4604_v39  ;;  %v4760_v63 = vld [vmem:[#allocation1 + $0x1ef] sm:$0x2]   ;;  %vm4127_vm7 = vcmask 64512   ;;  %vm4268_vm8 = vcmask 1048512  }
  0x4f   :  { %v4610_v22 = vld [vmem:[#allocation1 + $0x7aa] sm:$0x80]   ;;  %v4643_v40 = vsel %vm4121_vm5, %v4641_v20, %v4639_v34  ;;  %v4764_v0 = vld [vmem:[#allocation1 + $0x2ee] sm:$0x4]   ;;  %v4762_v14 = vsel %vm4101_vm0, %v4760_v63, %v4758_v62  ;;  %v6748_v62 = vld [vmem:[%s8476_s0 + $0x75] sm:$0x1] }
  0x50   :  { %v4645_v24 = vld [vmem:[#allocation1 + $0x7ea] sm:$0x80]   ;;  %v4612_v57 = vsel %vm4125_vm6, %v4610_v22, %v4608_v49  ;;  %v4772_v1 = vld [vmem:[#allocation1 + $0x4ec] sm:$0x10]   ;;  %v4766_v22 = vsel %vm4105_vm1, %v4764_v0, %v4762_v14  ;;  %v6684_v49 = vld [vmem:[%s8476_s0 + $0xb5] sm:$0x1] }
  0x51   :  { %v4525_v25 = vld [vmem:[#allocation1 + $0x32e] sm:$0x8]   ;;  %v4647_v50 = vsel %vm4125_vm6, %v4645_v24, %v4643_v40  ;;  %v4749_v8 = vld [vmem:[#allocation1 + $0x7a9] sm:$0x80]   ;;  %v6772_v63 = vld [vmem:[%s8476_s0 + $0x5d] sm:$0x1] }
  0x52   :  { %v4555_v26 = vld [vmem:[#allocation1 + $0x26f] sm:$0x4]   ;;  %v6919_v2 = vpack.i.bf16 %v4647_v50, %v4612_v57  ;;  %v4768_v9 = vld [vmem:[#allocation1 + $0x3ed] sm:$0x8]   ;;  %1077 = vst [vmem:[#allocation1 + $0x5e8] sm:$0x3] %v1074_v53 }
  0x53   :  { %v4517_v29 = vld [vmem:[#allocation1 + $0x130] sm:$0x2]   ;;  %v4776_v10 = vld [vmem:[#allocation1 + $0x5eb] sm:$0x20]   ;;  %v6860_v53 = vld [vmem:[%s8476_s0 + $0x5] sm:$0x1] }
  0x54   :  { %v4521_v30 = vld [vmem:[#allocation1 + $0x22f] sm:$0x4]   ;;  %v4780_v15 = vld [vmem:[#allocation1 + $0x6ea] sm:$0x40]   ;;  %6920 = vrot.lane.b32.xlu1 %v6919_v2, %s7046_s30  ;;  %vm4407_vm9 = vcmask 982912   ;;  %vm4546_vm10 = vcmask 917312  }
  0x55   :  { %v4549_v31 = vld [vmem:[#allocation1 + $0x71] sm:$0x1]   ;;  %v4654_v16 = vld [vmem:[#allocation1 + $0x30] sm:$0x1]   ;;  %vm4685_vm11 = vcmask 851712   ;;  %vm4824_vm12 = vcmask 786112  }
  0x56   :  { %v4563_v32 = vld [vmem:[#allocation1 + $0x46d] sm:$0x10]   ;;  %v4656_v17 = vld [vmem:[#allocation1 + $0x12f] sm:$0x2]   ;;  %vm4963_vm13 = vcmask 720512   ;;  %vm5102_vm14 = vcmask 654912  }
  0x57   :  { %v4515_v35 = vld [vmem:[#allocation1 + $0x31] sm:$0x1]   ;;  %v4660_v18 = vld [vmem:[#allocation1 + $0x22e] sm:$0x4]   ;;  %vm5241_vm15 = vcmask 589312  }
  0x58   :  { %v4533_v36 = vld [vmem:[#allocation1 + $0x52c] sm:$0x20]   ;;  %v4519_v41 = vsel %vm4101_vm0, %v4517_v29, %v4515_v35  ;;  %v4784_v23 = vld [vmem:[#allocation1 + $0x7e9] sm:$0x80]   ;;  %v4743_v29 = vsel %vm4117_vm4, %v4741_v56, %v4739_v21  ;;  %v6740_v56 = vld [vmem:[%s8476_s0 + $0x7d] sm:$0x1] }
  0x59   :  { %v4551_v37 = vld [vmem:[#allocation1 + $0x170] sm:$0x2]   ;;  %v4523_v51 = vsel %vm4105_vm1, %v4521_v30, %v4519_v41  ;;  %v4664_v24 = vld [vmem:[#allocation1 + $0x32d] sm:$0x8]   ;;  %v4770_v30 = vsel %vm4109_vm2, %v4768_v9, %v4766_v22  ;;  %v4747_v35 = vsel %vm4121_vm5, %v4745_v61, %v4743_v29  ;;  %v1202_v61 = vunpack.c.l.bf16 %v6684_v49  ;;  %v6628_v21 = vld [vmem:[%s8476_s0 + $0xed] sm:$0x1] }
  0x5a   :  { %v4559_v38 = vld [vmem:[#allocation1 + $0x36e] sm:$0x8]   ;;  %v4553_v44 = vsel %vm4101_vm0, %v4551_v37, %v4549_v31  ;;  %v4527_v58 = vsel %vm4109_vm2, %v4525_v25, %v4523_v51  ;;  %v4668_v25 = vld [vmem:[#allocation1 + $0x42c] sm:$0x10]   ;;  %v4658_v37 = vsel %vm4101_vm0, %v4656_v17, %v4654_v16  ;;  %v1714_v9 = vunpack.c.l.bf16 %v6716_v55  ;;  %v6636_v22 = vld [vmem:[%s8476_s0 + $0xe5] sm:$0x1] }
  0x5b   :  { %v4529_v42 = vld [vmem:[#allocation1 + $0x42d] sm:$0x10]   ;;  %v4557_v52 = vsel %vm4105_vm1, %v4555_v26, %v4553_v44  ;;  %v4688_v26 = vld [vmem:[#allocation1 + $0x70] sm:$0x1]   ;;  %v4662_v44 = vsel %vm4105_vm1, %v4660_v18, %v4658_v37  ;;  %1205 = vst [vmem:[#allocation1 + $0x5a8] sm:$0x3] %v1202_v61  ;;  %v2610_v16 = vunpack.c.l.bf16 %v6772_v63  ;;  %v4018_v55 = vunpack.c.l.bf16 %v6860_v53 }
  0x5c   :  { %v4537_v43 = vld [vmem:[#allocation1 + $0x62b] sm:$0x40]   ;;  %v4561_v59 = vsel %vm4109_vm2, %v4559_v38, %v4557_v52  ;;  %v4531_v3 = vsel %vm4113_vm3, %v4529_v42, %v4527_v58  ;;  %v4672_v31 = vld [vmem:[#allocation1 + $0x52b] sm:$0x20]   ;;  %v4751_v42 = vsel %vm4125_vm6, %v4749_v8, %v4747_v35  ;;  %v4666_v51 = vsel %vm4109_vm2, %v4664_v24, %v4662_v44  ;;  %1717 = vst [vmem:[#allocation1 + $0x4a8] sm:$0x3] %v1714_v9 }
  0x5d   :  { %v4567_v45 = vld [vmem:[#allocation1 + $0x56c] sm:$0x20]   ;;  %v4565_v5 = vsel %vm4113_vm3, %v4563_v32, %v4561_v59  ;;  %v4535_v11 = vsel %vm4117_vm4, %v4533_v36, %v4531_v3  ;;  %v4690_v32 = vld [vmem:[#allocation1 + $0x16f] sm:$0x2]   ;;  %v4774_v36 = vsel %vm4113_vm3, %v4772_v1, %v4770_v30  ;;  %v4670_v58 = vsel %vm4113_vm3, %v4668_v25, %v4666_v51  ;;  %2613 = vst [vmem:[#allocation1 + $0x2e8] sm:$0x3] %v2610_v16 }
  0x5e   :  { %v4571_v46 = vld [vmem:[#allocation1 + $0x66b] sm:$0x40]   ;;  %v4569_v12 = vsel %vm4117_vm4, %v4567_v45, %v4565_v5  ;;  %v4539_v19 = vsel %vm4121_vm5, %v4537_v43, %v4535_v11  ;;  %v4694_v33 = vld [vmem:[#allocation1 + $0x26e] sm:$0x4]   ;;  %v4778_v43 = vsel %vm4117_vm4, %v4776_v10, %v4774_v36  ;;  %v4674_v1 = vsel %vm4117_vm4, %v4672_v31, %v4670_v58  ;;  %v6804_v5 = vld [vmem:[%s8476_s0 + $0x3d] sm:$0x1] }
  0x5f   :  { %v4541_v4 = vld [vmem:[#allocation1 + $0x72a] sm:$0x80]   ;;  %v4573_v20 = vsel %vm4121_vm5, %v4571_v46, %v4569_v12  ;;  %v4676_v38 = vld [vmem:[#allocation1 + $0x62a] sm:$0x40]   ;;  %v4692_v46 = vsel %vm4101_vm0, %v4690_v32, %v4688_v26  ;;  %v4782_v50 = vsel %vm4121_vm5, %v4780_v15, %v4778_v43  ;;  %v1586_v3 = vunpack.c.l.bf16 %v6708_v54  ;;  %v6836_v11 = vld [vmem:[%s8476_s0 + $0x1d] sm:$0x1] }
  0x60   :  { %v4575_v6 = vld [vmem:[#allocation1 + $0x76a] sm:$0x80]   ;;  %v4543_v27 = vsel %vm4125_vm6, %v4541_v4, %v4539_v19  ;;  %v4698_v39 = vld [vmem:[#allocation1 + $0x36d] sm:$0x8]   ;;  %v4696_v52 = vsel %vm4105_vm1, %v4694_v33, %v4692_v46  ;;  %v4786_v57 = vsel %vm4125_vm6, %v4784_v23, %v4782_v50  ;;  %v6780_v4 = vld [vmem:[%s8476_s0 + $0x55] sm:$0x1]  ;;  %v4678_v7 = vsel %vm4121_vm5, %v4676_v38, %v4674_v1 }
  0x61   :  { %v4577_v28 = vsel %vm4125_vm6, %v4575_v6, %v4573_v20  ;;  %v4702_v40 = vld [vmem:[#allocation1 + $0x46c] sm:$0x10]   ;;  %v4700_v59 = vsel %vm4109_vm2, %v4698_v39, %v4696_v52  ;;  %v6929_v0 = vpack.i.bf16 %v4786_v57, %v4751_v42  ;;  %v6812_v6 = vld [vmem:[%s8476_s0 + $0x35] sm:$0x1]  ;;  %v2098_v10 = vunpack.c.l.bf16 %v6740_v56  ;;  %1589 = vst [vmem:[#allocation1 + $0x4e8] sm:$0x3] %v1586_v3 }
  0x62   :  { %v6914_v34 = vpack.i.bf16 %v4577_v28, %v4543_v27  ;;  %v4706_v41 = vld [vmem:[#allocation1 + $0x56b] sm:$0x20]   ;;  %v4704_v2 = vsel %vm4113_vm3, %v4702_v40, %v4700_v59  ;;  %v6844_v12 = vld [vmem:[%s8476_s0 + $0x15] sm:$0x1]  ;;  %v2226_v15 = vunpack.c.l.bf16 %v6748_v62  ;;  %v2738_v18 = vunpack.c.l.bf16 %v6780_v4  ;;  %v6660_v23 = vld [vmem:[%s8476_s0 + $0xcd] sm:$0x1] }
  0x63   :  { %v4680_v45 = vld [vmem:[#allocation1 + $0x729] sm:$0x80]   ;;  %v4708_v8 = vsel %vm4117_vm4, %v4706_v41, %v4704_v2  ;;  %6930 = vrot.lane.b32.xlu1 %v6929_v0, %s7047_s26  ;;  %2101 = vst [vmem:[#allocation1 + $0x3e8] sm:$0x3] %v2098_v10  ;;  %v3122_v19 = vunpack.c.l.bf16 %v6804_v5  ;;  %v3250_v20 = vunpack.c.l.bf16 %v6812_v6  ;;  %v3634_v25 = vunpack.c.l.bf16 %v6836_v11  ;;  %v6668_v28 = vld [vmem:[%s8476_s0 + $0xc5] sm:$0x1] }
  0x64   :  { %v4710_v47 = vld [vmem:[#allocation1 + $0x66a] sm:$0x40]   ;;  %6915 = vrot.lane.b32.xlu0 %v6914_v34, %s7046_s30  ;;  %v4682_v13 = vsel %vm4125_vm6, %v4680_v45, %v4678_v7  ;;  %2229 = vst [vmem:[#allocation1 + $0x3a8] sm:$0x3] %v2226_v15  ;;  %v3762_v26 = vunpack.c.l.bf16 %v6844_v12  ;;  %v306_v27 = vunpack.c.l.bf16 %v6628_v21  ;;  %v6692_v29 = vld [vmem:[%s8476_s0 + $0xad] sm:$0x1]  ;;  %v434_v31 = vunpack.c.l.bf16 %v6636_v22 }
  0x65   :  { %v4714_v60 = vld [vmem:[#allocation1 + $0x769] sm:$0x80]   ;;  %v4712_v14 = vsel %vm4121_vm5, %v4710_v47, %v4708_v8  ;;  %v6700_v30 = vld [vmem:[%s8476_s0 + $0xa5] sm:$0x1]  ;;  %2741 = vst [vmem:[#allocation1 + $0x2a8] sm:$0x3] %v2738_v18  ;;  %v818_v32 = vunpack.c.l.bf16 %v6660_v23  ;;  %v946_v33 = vunpack.c.l.bf16 %v6668_v28  ;;  %v1330_v34 = vunpack.c.l.bf16 %v6692_v29 }
  0x66   :  { %v4716_v17 = vsel %vm4125_vm6, %v4714_v60, %v4712_v14  ;;  %3125 = vst [vmem:[#allocation1 + $0x1e8] sm:$0x3] %v3122_v19  ;;  %3253 = vst [vmem:[#allocation1 + $0x1a8] sm:$0x3] %v3250_v20  ;;  %v6724_v35 = vld [vmem:[%s8476_s0 + $0x8d] sm:$0x1]  ;;  %v1458_v38 = vunpack.c.l.bf16 %v6700_v30  ;;  %v3378_v50 = vunpack.c.l.bf16 %v6820_v48 }
  0x67   :  { %v6924_v24 = vpack.i.bf16 %v4716_v17, %v4682_v13  ;;  %v6732_v36 = vld [vmem:[%s8476_s0 + $0x85] sm:$0x1]  ;;  %v6756_v37 = vld [vmem:[%s8476_s0 + $0x6d] sm:$0x1]  ;;  %3637 = vst [vmem:[#allocation1 + $0xe8] sm:$0x3] %v3634_v25  ;;  %v1842_v39 = vunpack.c.l.bf16 %v6724_v35 }
  0x68   :  { %3765 = vst [vmem:[#allocation1 + $0xa8] sm:$0x3] %v3762_v26  ;;  %309 = vst [vmem:[#allocation1 + $0x768] sm:$0x3] %v306_v27  ;;  %v1970_v40 = vunpack.c.l.bf16 %v6732_v36  ;;  %v2354_v41 = vunpack.c.l.bf16 %v6756_v37  ;;  %v6764_v42 = vld [vmem:[%s8476_s0 + $0x65] sm:$0x1] }
  0x69   :  { %6925 = vrot.lane.b32.xlu0 %v6924_v24, %s7047_s26  ;;  %v6788_v43 = vld [vmem:[%s8476_s0 + $0x4d] sm:$0x1]  ;;  %v6796_v44 = vld [vmem:[%s8476_s0 + $0x45] sm:$0x1]  ;;  %437 = vst [vmem:[#allocation1 + $0x728] sm:$0x3] %v434_v31  ;;  %v2482_v45 = vunpack.c.l.bf16 %v6764_v42 }
  0x6a   :  { %821 = vst [vmem:[#allocation1 + $0x668] sm:$0x3] %v818_v32  ;;  %949 = vst [vmem:[#allocation1 + $0x628] sm:$0x3] %v946_v33  ;;  %v2866_v46 = vunpack.c.l.bf16 %v6788_v43  ;;  %v2994_v47 = vunpack.c.l.bf16 %v6796_v44  ;;  %v6828_v49 = vld [vmem:[%s8476_s0 + $0x25] sm:$0x1] }
  0x6b   :  { %1333 = vst [vmem:[#allocation1 + $0x568] sm:$0x3] %v1330_v34  ;;  %1461 = vst [vmem:[#allocation1 + $0x528] sm:$0x3] %v1458_v38  ;;  %v3506_v51 = vunpack.c.l.bf16 %v6828_v49  ;;  %v6852_v52 = vld [vmem:[%s8476_s0 + $0xd] sm:$0x1] }
  0x6c   :  { %1845 = vst [vmem:[#allocation1 + $0x468] sm:$0x3] %v1842_v39  ;;  %1973 = vst [vmem:[#allocation1 + $0x428] sm:$0x3] %v1970_v40  ;;  %v3890_v54 = vunpack.c.l.bf16 %v6852_v52  ;;  %v4903_v56 = vld [vmem:[#allocation1 + $0x2e7] sm:$0x4]  }
  0x6d   :  { %2357 = vst [vmem:[#allocation1 + $0x368] sm:$0x3] %v2354_v41  ;;  %2485 = vst [vmem:[#allocation1 + $0x328] sm:$0x3] %v2482_v45  ;;  %v4907_v57 = vld [vmem:[#allocation1 + $0x3e6] sm:$0x8]  }
  0x6e   :  { %2869 = vst [vmem:[#allocation1 + $0x268] sm:$0x3] %v2866_v46  ;;  %2997 = vst [vmem:[#allocation1 + $0x228] sm:$0x3] %v2994_v47  ;;  %v4864_v58 = vld [vmem:[#allocation1 + $0x1a8] sm:$0x2]  }
  0x6f   :  { %3381 = vst [vmem:[#allocation1 + $0x168] sm:$0x3] %v3378_v50  ;;  %3509 = vst [vmem:[#allocation1 + $0x128] sm:$0x3] %v3506_v51  ;;  %v4868_v59 = vld [vmem:[#allocation1 + $0x2a7] sm:$0x4]  }
  0x70   :  { %3893 = vst [vmem:[#allocation1 + $0x68] sm:$0x3] %v3890_v54  ;;  %4021 = vst [vmem:[#allocation1 + $0x28] sm:$0x3] %v4018_v55  ;;  %v4899_v60 = vld [vmem:[#allocation1 + $0x1e8] sm:$0x2]  }
  0x71   :  { %v4862_v61 = vld [vmem:[#allocation1 + $0xa9] sm:$0x1]   ;;  %v5011_v29 = vld [vmem:[#allocation1 + $0x3a5] sm:$0x8]   ;;  %s7048_s30 = smov 88  }
  0x72   :  { %v4872_v62 = vld [vmem:[#allocation1 + $0x3a6] sm:$0x8]   ;;  %v4866_v0 = vsel %vm4101_vm0, %v4864_v58, %v4862_v61  ;;  %v5001_v35 = vld [vmem:[#allocation1 + $0xa8] sm:$0x1]  }
  0x73   :  { %v4897_v63 = vld [vmem:[#allocation1 + $0xe9] sm:$0x1]   ;;  %v4870_v6 = vsel %vm4105_vm1, %v4868_v59, %v4866_v0  ;;  %v5003_v36 = vld [vmem:[#allocation1 + $0x1a7] sm:$0x2]  }
  0x74   :  { %v4876_v1 = vld [vmem:[#allocation1 + $0x4a5] sm:$0x10]   ;;  %v4901_v3 = vsel %vm4101_vm0, %v4899_v60, %v4897_v63  ;;  %v4874_v12 = vsel %vm4109_vm2, %v4872_v62, %v4870_v6  ;;  %v5007_v37 = vld [vmem:[#allocation1 + $0x2a6] sm:$0x4]   ;;  %v5005_v53 = vsel %vm4101_vm0, %v5003_v36, %v5001_v35 }
  0x75   :  { %v4884_v2 = vld [vmem:[#allocation1 + $0x6a3] sm:$0x40]   ;;  %v4905_v9 = vsel %vm4105_vm1, %v4903_v56, %v4901_v3  ;;  %v4878_v17 = vsel %vm4113_vm3, %v4876_v1, %v4874_v12  ;;  %v5015_v38 = vld [vmem:[#allocation1 + $0x4a4] sm:$0x10]   ;;  %v5009_v59 = vsel %vm4105_vm1, %v5007_v37, %v5005_v53 }
  0x76   :  { %v4911_v4 = vld [vmem:[#allocation1 + $0x4e5] sm:$0x10]   ;;  %v4909_v13 = vsel %vm4109_vm2, %v4907_v57, %v4905_v9  ;;  %v5019_v46 = vld [vmem:[#allocation1 + $0x5a3] sm:$0x20]  }
  0x77   :  { %v4919_v5 = vld [vmem:[#allocation1 + $0x6e3] sm:$0x40]   ;;  %v4913_v18 = vsel %vm4113_vm3, %v4911_v4, %v4909_v13  ;;  %v5036_v47 = vld [vmem:[#allocation1 + $0xe8] sm:$0x1]  }
  0x78   :  { %v4880_v7 = vld [vmem:[#allocation1 + $0x5a4] sm:$0x20]   ;;  %v5038_v48 = vld [vmem:[#allocation1 + $0x1e7] sm:$0x2]  }
  0x79   :  { %v4888_v8 = vld [vmem:[#allocation1 + $0x7a2] sm:$0x80]   ;;  %v4882_v23 = vsel %vm4117_vm4, %v4880_v7, %v4878_v17  ;;  %v5023_v54 = vld [vmem:[#allocation1 + $0x6a2] sm:$0x40]   ;;  %v5040_v61 = vsel %vm4101_vm0, %v5038_v48, %v5036_v47  ;;  %v6645_v47 = vld [vmem:[%s8476_s0 + $0xdc] sm:$0x1] }
  0x7a   :  { %v4915_v10 = vld [vmem:[#allocation1 + $0x5e4] sm:$0x20]   ;;  %v4886_v30 = vsel %vm4121_vm5, %v4884_v2, %v4882_v23  ;;  %v5042_v55 = vld [vmem:[#allocation1 + $0x2e6] sm:$0x4]   ;;  %v5013_v2 = vsel %vm4109_vm2, %v5011_v29, %v5009_v59  ;;  %v6653_v48 = vld [vmem:[%s8476_s0 + $0xd4] sm:$0x1]  ;;  %v578_v53 = vunpack.c.l.bf16 %v6645_v47 }
  0x7b   :  { %v4923_v11 = vld [vmem:[#allocation1 + $0x7e2] sm:$0x80]   ;;  %v4917_v24 = vsel %vm4117_vm4, %v4915_v10, %v4913_v18  ;;  %v4890_v39 = vsel %vm4125_vm6, %v4888_v8, %v4886_v30  ;;  %v5046_v56 = vld [vmem:[#allocation1 + $0x3e5] sm:$0x8]   ;;  %v5044_v3 = vsel %vm4105_vm1, %v5042_v55, %v5040_v61  ;;  %v5017_v9 = vsel %vm4113_vm3, %v5015_v38, %v5013_v2  ;;  %v6709_v55 = vld [vmem:[%s8476_s0 + $0x9c] sm:$0x1] }
  0x7c   :  { %v4799_v14 = vld [vmem:[#allocation1 + $0x227] sm:$0x4]   ;;  %v4921_v31 = vsel %vm4121_vm5, %v4919_v5, %v4917_v24  ;;  %v5027_v60 = vld [vmem:[#allocation1 + $0x7a1] sm:$0x80]   ;;  %v5048_v10 = vsel %vm4109_vm2, %v5046_v56, %v5044_v3  ;;  %v6717_v56 = vld [vmem:[%s8476_s0 + $0x94] sm:$0x1]  ;;  %v706_v59 = vunpack.c.l.bf16 %v6653_v48  ;;  %v1602_v3 = vunpack.c.l.bf16 %v6709_v55 }
  0x7d   :  { %v4803_v15 = vld [vmem:[#allocation1 + $0x326] sm:$0x8]   ;;  %v4925_v40 = vsel %vm4125_vm6, %v4923_v11, %v4921_v31  ;;  %v5050_v62 = vld [vmem:[#allocation1 + $0x4e4] sm:$0x10]   ;;  %v6741_v61 = vld [vmem:[%s8476_s0 + $0x7c] sm:$0x1] }
  0x7e   :  { %v4837_v16 = vld [vmem:[#allocation1 + $0x366] sm:$0x8]   ;;  %v6939_v49 = vpack.i.bf16 %v4925_v40, %v4890_v39  ;;  %v5054_v63 = vld [vmem:[#allocation1 + $0x5e3] sm:$0x20]   ;;  %v5052_v17 = vsel %vm4113_vm3, %v5050_v62, %v5048_v10  ;;  %v6749_v62 = vld [vmem:[%s8476_s0 + $0x74] sm:$0x1] }
  0x7f   :  { %v4795_v19 = vld [vmem:[#allocation1 + $0x128] sm:$0x2]   ;;  %v5058_v4 = vld [vmem:[#allocation1 + $0x6e2] sm:$0x40]   ;;  %v5056_v23 = vsel %vm4117_vm4, %v5054_v63, %v5052_v17  ;;  %v6773_v63 = vld [vmem:[%s8476_s0 + $0x5c] sm:$0x1]  ;;  %v2242_v10 = vunpack.c.l.bf16 %v6749_v62 }
  0x80   :  { %v4807_v20 = vld [vmem:[#allocation1 + $0x425] sm:$0x10]   ;;  %6940 = vrot.lane.b32.xlu1 %v6939_v49, %s7048_s30  ;;  %v4932_v5 = vld [vmem:[#allocation1 + $0x28] sm:$0x1]   ;;  %v5060_v30 = vsel %vm4121_vm5, %v5058_v4, %v5056_v23  ;;  %v6677_v49 = vld [vmem:[%s8476_s0 + $0xbc] sm:$0x1] }
  0x81   :  { %v4829_v21 = vld [vmem:[#allocation1 + $0x168] sm:$0x2]   ;;  %v4934_v6 = vld [vmem:[#allocation1 + $0x127] sm:$0x2]   ;;  %581 = vst [vmem:[#allocation1 + $0x6e0] sm:$0x3] %v578_v53 }
  0x82   :  { %v4833_v22 = vld [vmem:[#allocation1 + $0x267] sm:$0x4]   ;;  %v5062_v11 = vld [vmem:[#allocation1 + $0x7e1] sm:$0x80]   ;;  %v4936_v24 = vsel %vm4101_vm0, %v4934_v6, %v4932_v5  ;;  %v6781_v4 = vld [vmem:[%s8476_s0 + $0x54] sm:$0x1] }
  0x83   :  { %v4793_v25 = vld [vmem:[#allocation1 + $0x29] sm:$0x1]   ;;  %v4938_v12 = vld [vmem:[#allocation1 + $0x226] sm:$0x4]   ;;  %v5064_v37 = vsel %vm4125_vm6, %v5062_v11, %v5060_v30  ;;  %v6805_v5 = vld [vmem:[%s8476_s0 + $0x3c] sm:$0x1] }
  0x84   :  { %v4827_v26 = vld [vmem:[#allocation1 + $0x69] sm:$0x1]   ;;  %v4797_v32 = vsel %vm4101_vm0, %v4795_v19, %v4793_v25  ;;  %v4942_v13 = vld [vmem:[#allocation1 + $0x325] sm:$0x8]   ;;  %v4940_v31 = vsel %vm4105_vm1, %v4938_v12, %v4936_v24  ;;  %v6813_v6 = vld [vmem:[%s8476_s0 + $0x34] sm:$0x1] }
  0x85   :  { %v4841_v27 = vld [vmem:[#allocation1 + $0x465] sm:$0x10]   ;;  %v4831_v34 = vsel %vm4101_vm0, %v4829_v21, %v4827_v26  ;;  %v4801_v41 = vsel %vm4105_vm1, %v4799_v14, %v4797_v32  ;;  %v4946_v18 = vld [vmem:[#allocation1 + $0x424] sm:$0x10]   ;;  %v4944_v38 = vsel %vm4109_vm2, %v4942_v13, %v4940_v31  ;;  %709 = vst [vmem:[#allocation1 + $0x6a0] sm:$0x3] %v706_v59 }
  0x86   :  { %v4845_v28 = vld [vmem:[#allocation1 + $0x564] sm:$0x20]   ;;  %v4835_v44 = vsel %vm4105_vm1, %v4833_v22, %v4831_v34  ;;  %v4805_v50 = vsel %vm4109_vm2, %v4803_v15, %v4801_v41  ;;  %v4950_v19 = vld [vmem:[#allocation1 + $0x523] sm:$0x20]   ;;  %v6613_v41 = vld [vmem:[%s8476_s0 + $0xfc] sm:$0x1] }
  0x87   :  { %v4815_v33 = vld [vmem:[#allocation1 + $0x623] sm:$0x40]   ;;  %v4839_v51 = vsel %vm4109_vm2, %v4837_v16, %v4835_v44  ;;  %v4809_v57 = vsel %vm4113_vm3, %v4807_v20, %v4805_v50  ;;  %v5021_v16 = vsel %vm4117_vm4, %v5019_v46, %v5017_v9  ;;  %v4966_v20 = vld [vmem:[#allocation1 + $0x68] sm:$0x1]   ;;  %v4948_v44 = vsel %vm4113_vm3, %v4946_v18, %v4944_v38  ;;  %v6837_v11 = vld [vmem:[%s8476_s0 + $0x1c] sm:$0x1] }
  0x88   :  { %v4811_v42 = vld [vmem:[#allocation1 + $0x524] sm:$0x20]   ;;  %v4843_v58 = vsel %vm4113_vm3, %v4841_v27, %v4839_v51  ;;  %v5025_v22 = vsel %vm4121_vm5, %v5023_v54, %v5021_v16  ;;  %v4954_v25 = vld [vmem:[#allocation1 + $0x622] sm:$0x40]   ;;  %v66_v46 = vunpack.c.l.bf16 %v6613_v41  ;;  %v4952_v50 = vsel %vm4117_vm4, %v4950_v19, %v4948_v44  ;;  %v6685_v54 = vld [vmem:[%s8476_s0 + $0xb4] sm:$0x1] }
  0x89   :  { %v4819_v43 = vld [vmem:[#allocation1 + $0x722] sm:$0x80]   ;;  %v4813_v0 = vsel %vm4117_vm4, %v4811_v42, %v4809_v57  ;;  %v4847_v1 = vsel %vm4117_vm4, %v4845_v28, %v4843_v58  ;;  %v4968_v26 = vld [vmem:[#allocation1 + $0x167] sm:$0x2]   ;;  %v5029_v29 = vsel %vm4125_vm6, %v5027_v60, %v5025_v22  ;;  %v6621_v42 = vld [vmem:[%s8476_s0 + $0xf4] sm:$0x1]  ;;  %v4956_v57 = vsel %vm4121_vm5, %v4954_v25, %v4952_v50 }
  0x8a   :  { %v4853_v45 = vld [vmem:[#allocation1 + $0x762] sm:$0x80]   ;;  %v4817_v7 = vsel %vm4121_vm5, %v4815_v33, %v4813_v0  ;;  %v4972_v27 = vld [vmem:[#allocation1 + $0x266] sm:$0x4]   ;;  %v4970_v33 = vsel %vm4101_vm0, %v4968_v26, %v4966_v20  ;;  %69 = vst [vmem:[#allocation1 + $0x7e0] sm:$0x3] %v66_v46  ;;  %v1090_v60 = vunpack.c.l.bf16 %v6677_v49  ;;  %v1218_v2 = vunpack.c.l.bf16 %v6685_v54 }
  0x8b   :  { %v4849_v52 = vld [vmem:[#allocation1 + $0x663] sm:$0x40]   ;;  %v4821_v14 = vsel %vm4125_vm6, %v4819_v43, %v4817_v7  ;;  %v4976_v28 = vld [vmem:[#allocation1 + $0x365] sm:$0x8]   ;;  %v4974_v39 = vsel %vm4105_vm1, %v4972_v27, %v4970_v33  ;;  %v6949_v43 = vpack.i.bf16 %v5064_v37, %v5029_v29  ;;  %v2114_v9 = vunpack.c.l.bf16 %v6741_v61  ;;  %v6845_v12 = vld [vmem:[%s8476_s0 + $0x14] sm:$0x1] }
  0x8c   :  { %v4851_v8 = vsel %vm4121_vm5, %v4849_v52, %v4847_v1  ;;  %v4958_v32 = vld [vmem:[#allocation1 + $0x721] sm:$0x80]   ;;  %v194_v52 = vunpack.c.l.bf16 %v6621_v42  ;;  %1093 = vst [vmem:[#allocation1 + $0x5e0] sm:$0x3] %v1090_v60  ;;  %1221 = vst [vmem:[#allocation1 + $0x5a0] sm:$0x3] %v1218_v2  ;;  %v3138_v16 = vunpack.c.l.bf16 %v6805_v5  ;;  %v3266_v20 = vunpack.c.l.bf16 %v6813_v6 }
  0x8d   :  { %v4855_v15 = vsel %vm4125_vm6, %v4853_v45, %v4851_v8  ;;  %v4980_v34 = vld [vmem:[#allocation1 + $0x464] sm:$0x10]   ;;  %v4978_v45 = vsel %vm4109_vm2, %v4976_v28, %v4974_v39  ;;  %6950 = vrot.lane.b32.xlu1 %v6949_v43, %s7049_s18  ;;  %v4960_v0 = vsel %vm4125_vm6, %v4958_v32, %v4956_v57  ;;  %v1730_v8 = vunpack.c.l.bf16 %v6717_v56  ;;  %1605 = vst [vmem:[#allocation1 + $0x4e0] sm:$0x3] %v1602_v3  ;;  %v6629_v17 = vld [vmem:[%s8476_s0 + $0xec] sm:$0x1] }
  0x8e   :  { %v6934_v21 = vpack.i.bf16 %v4855_v15, %v4821_v14  ;;  %v4984_v35 = vld [vmem:[#allocation1 + $0x563] sm:$0x20]   ;;  %v4982_v51 = vsel %vm4113_vm3, %v4980_v34, %v4978_v45  ;;  %197 = vst [vmem:[#allocation1 + $0x7a0] sm:$0x3] %v194_v52  ;;  %v2626_v14 = vunpack.c.l.bf16 %v6773_v63  ;;  %v2754_v15 = vunpack.c.l.bf16 %v6781_v4  ;;  %v6637_v18 = vld [vmem:[%s8476_s0 + $0xe4] sm:$0x1] }
  0x8f   :  { %v4988_v36 = vld [vmem:[#allocation1 + $0x662] sm:$0x40]   ;;  %v4986_v58 = vsel %vm4117_vm4, %v4984_v35, %v4982_v51  ;;  %v6661_v19 = vld [vmem:[%s8476_s0 + $0xcc] sm:$0x1]  ;;  %1733 = vst [vmem:[#allocation1 + $0x4a0] sm:$0x3] %v1730_v8  ;;  %v3778_v22 = vunpack.c.l.bf16 %v6845_v12  ;;  %v322_v23 = vunpack.c.l.bf16 %v6629_v17  ;;  %v450_v27 = vunpack.c.l.bf16 %v6637_v18 }
  0x90   :  { %6935 = vrot.lane.b32.xlu0 %v6934_v21, %s7048_s30  ;;  %v4992_v40 = vld [vmem:[#allocation1 + $0x761] sm:$0x80]   ;;  %v4990_v1 = vsel %vm4121_vm5, %v4988_v36, %v4986_v58  ;;  %2117 = vst [vmem:[#allocation1 + $0x3e0] sm:$0x3] %v2114_v9  ;;  %2245 = vst [vmem:[#allocation1 + $0x3a0] sm:$0x3] %v2242_v10  ;;  %v3650_v21 = vunpack.c.l.bf16 %v6837_v11  ;;  %v834_v28 = vunpack.c.l.bf16 %v6661_v19 }
  0x91   :  { %v4994_v7 = vsel %vm4125_vm6, %v4992_v40, %v4990_v1  ;;  %v6669_v24 = vld [vmem:[%s8476_s0 + $0xc4] sm:$0x1]  ;;  %v6693_v25 = vld [vmem:[%s8476_s0 + $0xac] sm:$0x1]  ;;  %2629 = vst [vmem:[#allocation1 + $0x2e0] sm:$0x3] %v2626_v14 }
  0x92   :  { %v6944_v13 = vpack.i.bf16 %v4994_v7, %v4960_v0  ;;  %v6701_v26 = vld [vmem:[%s8476_s0 + $0xa4] sm:$0x1]  ;;  %2757 = vst [vmem:[#allocation1 + $0x2a0] sm:$0x3] %v2754_v15  ;;  %3141 = vst [vmem:[#allocation1 + $0x1e0] sm:$0x3] %v3138_v16  ;;  %v962_v29 = vunpack.c.l.bf16 %v6669_v24  ;;  %v1346_v30 = vunpack.c.l.bf16 %v6693_v25 }
  0x93   :  { %v6725_v31 = vld [vmem:[%s8476_s0 + $0x8c] sm:$0x1]  ;;  %v6733_v32 = vld [vmem:[%s8476_s0 + $0x84] sm:$0x1]  ;;  %3269 = vst [vmem:[#allocation1 + $0x1a0] sm:$0x3] %v3266_v20  ;;  %v1474_v34 = vunpack.c.l.bf16 %v6701_v26 }
  0x94   :  { %6945 = vrot.lane.b32.xlu0 %v6944_v13, %s7049_s18  ;;  %v6757_v33 = vld [vmem:[%s8476_s0 + $0x6c] sm:$0x1]  ;;  %3653 = vst [vmem:[#allocation1 + $0xe0] sm:$0x3] %v3650_v21  ;;  %3781 = vst [vmem:[#allocation1 + $0xa0] sm:$0x3] %v3778_v22  ;;  %v1858_v35 = vunpack.c.l.bf16 %v6725_v31  ;;  %v1986_v36 = vunpack.c.l.bf16 %v6733_v32 }
  0x95   :  { %325 = vst [vmem:[#allocation1 + $0x760] sm:$0x3] %v322_v23  ;;  %v2370_v37 = vunpack.c.l.bf16 %v6757_v33  ;;  %v6765_v38 = vld [vmem:[%s8476_s0 + $0x64] sm:$0x1]  ;;  %v6789_v39 = vld [vmem:[%s8476_s0 + $0x4c] sm:$0x1] }
  0x96   :  { %v6797_v40 = vld [vmem:[%s8476_s0 + $0x44] sm:$0x1]  ;;  %453 = vst [vmem:[#allocation1 + $0x720] sm:$0x3] %v450_v27  ;;  %837 = vst [vmem:[#allocation1 + $0x660] sm:$0x3] %v834_v28  ;;  %v2498_v41 = vunpack.c.l.bf16 %v6765_v38  ;;  %v2882_v42 = vunpack.c.l.bf16 %v6789_v39 }
  0x97   :  { %965 = vst [vmem:[#allocation1 + $0x620] sm:$0x3] %v962_v29  ;;  %1349 = vst [vmem:[#allocation1 + $0x560] sm:$0x3] %v1346_v30  ;;  %v3010_v43 = vunpack.c.l.bf16 %v6797_v40  ;;  %v6821_v44 = vld [vmem:[%s8476_s0 + $0x2c] sm:$0x1] }
  0x98   :  { %v6829_v45 = vld [vmem:[%s8476_s0 + $0x24] sm:$0x1]  ;;  %1477 = vst [vmem:[#allocation1 + $0x520] sm:$0x3] %v1474_v34  ;;  %1861 = vst [vmem:[#allocation1 + $0x460] sm:$0x3] %v1858_v35  ;;  %v3394_v46 = vunpack.c.l.bf16 %v6821_v44 }
  0x99   :  { %1989 = vst [vmem:[#allocation1 + $0x420] sm:$0x3] %v1986_v36  ;;  %2373 = vst [vmem:[#allocation1 + $0x360] sm:$0x3] %v2370_v37  ;;  %v3522_v47 = vunpack.c.l.bf16 %v6829_v45  ;;  %v6853_v48 = vld [vmem:[%s8476_s0 + $0xc] sm:$0x1] }
  0x9a   :  { %2501 = vst [vmem:[#allocation1 + $0x320] sm:$0x3] %v2498_v41  ;;  %2885 = vst [vmem:[#allocation1 + $0x260] sm:$0x3] %v2882_v42  ;;  %v3906_v49 = vunpack.c.l.bf16 %v6853_v48  ;;  %v6861_v50 = vld [vmem:[%s8476_s0 + $0x4] sm:$0x1] }
  0x9b   :  { %3013 = vst [vmem:[#allocation1 + $0x220] sm:$0x3] %v3010_v43  ;;  %3397 = vst [vmem:[#allocation1 + $0x160] sm:$0x3] %v3394_v46  ;;  %v4034_v51 = vunpack.c.l.bf16 %v6861_v50  ;;  %v5150_v52 = vld [vmem:[#allocation1 + $0x39e] sm:$0x8]  }
  0x9c   :  { %3525 = vst [vmem:[#allocation1 + $0x120] sm:$0x3] %v3522_v47  ;;  %v5185_v53 = vld [vmem:[#allocation1 + $0x3de] sm:$0x8]   ;;  %3909 = vst [vmem:[#allocation1 + $0x60] sm:$0x3] %v3906_v49 }
  0x9d   :  { %v5146_v54 = vld [vmem:[#allocation1 + $0x29f] sm:$0x4]   ;;  %4037 = vst [vmem:[#allocation1 + $0x20] sm:$0x3] %v4034_v51  ;;  %v5279_v30 = vld [vmem:[#allocation1 + $0xa0] sm:$0x1]  }
  0x9e   :  { %v5177_v55 = vld [vmem:[#allocation1 + $0x1e0] sm:$0x2]   ;;  %v5281_v31 = vld [vmem:[#allocation1 + $0x19f] sm:$0x2]   ;;  %s7053_s30 = smov 48  }
  0x9f   :  { %v5181_v56 = vld [vmem:[#allocation1 + $0x2df] sm:$0x4]   ;;  %v5285_v38 = vld [vmem:[#allocation1 + $0x29e] sm:$0x4]   ;;  %v5283_v45 = vsel %vm4101_vm0, %v5281_v31, %v5279_v30 }
  0xa0   :  { %v5140_v57 = vld [vmem:[#allocation1 + $0xa1] sm:$0x1]   ;;  %v5289_v39 = vld [vmem:[#allocation1 + $0x39d] sm:$0x8]   ;;  %v5287_v51 = vsel %vm4105_vm1, %v5285_v38, %v5283_v45  ;;  %v6614_v38 = vld [vmem:[%s8476_s0 + $0xfb] sm:$0x1] }
  0xa1   :  { %v5142_v58 = vld [vmem:[#allocation1 + $0x1a0] sm:$0x2]   ;;  %v5297_v40 = vld [vmem:[#allocation1 + $0x59b] sm:$0x20]   ;;  %v6654_v45 = vld [vmem:[%s8476_s0 + $0xd3] sm:$0x1] }
  0xa2   :  { %v5175_v59 = vld [vmem:[#allocation1 + $0xe1] sm:$0x1]   ;;  %v5144_v60 = vsel %vm4101_vm0, %v5142_v58, %v5140_v57  ;;  %v5293_v46 = vld [vmem:[#allocation1 + $0x49c] sm:$0x10]   ;;  %v5291_v57 = vsel %vm4109_vm2, %v5289_v39, %v5287_v51  ;;  %v6686_v51 = vld [vmem:[%s8476_s0 + $0xb3] sm:$0x1] }
  0xa3   :  { %v5154_v61 = vld [vmem:[#allocation1 + $0x49d] sm:$0x10]   ;;  %v5179_v62 = vsel %vm4101_vm0, %v5177_v55, %v5175_v59  ;;  %v5148_v0 = vsel %vm4105_vm1, %v5146_v54, %v5144_v60  ;;  %v5301_v47 = vld [vmem:[#allocation1 + $0x69a] sm:$0x40]  }
  0xa4   :  { %v5189_v63 = vld [vmem:[#allocation1 + $0x4dd] sm:$0x10]   ;;  %v5183_v3 = vsel %vm4105_vm1, %v5181_v56, %v5179_v62  ;;  %v5152_v7 = vsel %vm4109_vm2, %v5150_v52, %v5148_v0  ;;  %v5314_v48 = vld [vmem:[#allocation1 + $0xe0] sm:$0x1]   ;;  %v5295_v0 = vsel %vm4113_vm3, %v5293_v46, %v5291_v57  ;;  %v6718_v57 = vld [vmem:[%s8476_s0 + $0x93] sm:$0x1] }
  0xa5   :  { %v5158_v1 = vld [vmem:[#allocation1 + $0x59c] sm:$0x20]   ;;  %v5187_v9 = vsel %vm4109_vm2, %v5185_v53, %v5183_v3  ;;  %v5156_v12 = vsel %vm4113_vm3, %v5154_v61, %v5152_v7  ;;  %v5316_v52 = vld [vmem:[#allocation1 + $0x1df] sm:$0x2]   ;;  %v5299_v7 = vsel %vm4117_vm4, %v5297_v40, %v5295_v0  ;;  %v6774_v0 = vld [vmem:[%s8476_s0 + $0x5b] sm:$0x1] }
  0xa6   :  { %v5166_v2 = vld [vmem:[#allocation1 + $0x79a] sm:$0x80]   ;;  %v5191_v13 = vsel %vm4113_vm3, %v5189_v63, %v5187_v9  ;;  %v5160_v17 = vsel %vm4117_vm4, %v5158_v1, %v5156_v12  ;;  %v5320_v53 = vld [vmem:[#allocation1 + $0x2de] sm:$0x4]   ;;  %v5318_v59 = vsel %vm4101_vm0, %v5316_v52, %v5314_v48  ;;  %v6710_v52 = vld [vmem:[%s8476_s0 + $0x9b] sm:$0x1] }
  0xa7   :  { %v5193_v4 = vld [vmem:[#allocation1 + $0x5dc] sm:$0x20]   ;;  %v5324_v54 = vld [vmem:[#allocation1 + $0x3dd] sm:$0x8]   ;;  %v5322_v1 = vsel %vm4105_vm1, %v5320_v53, %v5318_v59  ;;  %v6750_v59 = vld [vmem:[%s8476_s0 + $0x73] sm:$0x1] }
  0xa8   :  { %v5197_v5 = vld [vmem:[#allocation1 + $0x6db] sm:$0x40]   ;;  %v5195_v18 = vsel %vm4117_vm4, %v5193_v4, %v5191_v13  ;;  %v5305_v58 = vld [vmem:[#allocation1 + $0x799] sm:$0x80]   ;;  %v5303_v13 = vsel %vm4121_vm5, %v5301_v47, %v5299_v7  ;;  %v6814_v7 = vld [vmem:[%s8476_s0 + $0x33] sm:$0x1] }
  0xa9   :  { %v5201_v6 = vld [vmem:[#allocation1 + $0x7da] sm:$0x80]   ;;  %v5199_v25 = vsel %vm4121_vm5, %v5197_v5, %v5195_v18  ;;  %v5328_v60 = vld [vmem:[#allocation1 + $0x4dc] sm:$0x10]  }
  0xaa   :  { %v5162_v8 = vld [vmem:[#allocation1 + $0x69b] sm:$0x40]   ;;  %v5203_v33 = vsel %vm4125_vm6, %v5201_v6, %v5199_v25  ;;  %v5332_v61 = vld [vmem:[#allocation1 + $0x5db] sm:$0x20]  }
  0xab   :  { %v5077_v10 = vld [vmem:[#allocation1 + $0x21f] sm:$0x4]   ;;  %v5164_v24 = vsel %vm4121_vm5, %v5162_v8, %v5160_v17  ;;  %v5210_v3 = vld [vmem:[#allocation1 + $0x20] sm:$0x1]   ;;  %v5326_v8 = vsel %vm4109_vm2, %v5324_v54, %v5322_v1  ;;  %v6782_v1 = vld [vmem:[%s8476_s0 + $0x53] sm:$0x1] }
  0xac   :  { %v5115_v11 = vld [vmem:[#allocation1 + $0x35e] sm:$0x8]   ;;  %v5168_v32 = vsel %vm4125_vm6, %v5166_v2, %v5164_v24  ;;  %v5336_v2 = vld [vmem:[#allocation1 + $0x6da] sm:$0x40]  }
  0xad   :  { %v5073_v14 = vld [vmem:[#allocation1 + $0x120] sm:$0x2]   ;;  %v6959_v41 = vpack.i.bf16 %v5203_v33, %v5168_v32  ;;  %v5212_v4 = vld [vmem:[#allocation1 + $0x11f] sm:$0x2]  }
  0xae   :  { %v5107_v15 = vld [vmem:[#allocation1 + $0x160] sm:$0x2]   ;;  %v5340_v9 = vld [vmem:[#allocation1 + $0x7d9] sm:$0x80]  }
  0xaf   :  { %v5111_v16 = vld [vmem:[#allocation1 + $0x25f] sm:$0x4]   ;;  %6960 = vrot.lane.b32.xlu1 %v6959_v41, %s7050_s8  ;;  %v5228_v17 = vld [vmem:[#allocation1 + $0x51b] sm:$0x20]  }
  0xb0   :  { %v5081_v19 = vld [vmem:[#allocation1 + $0x31e] sm:$0x8]   ;;  %v5232_v18 = vld [vmem:[#allocation1 + $0x61a] sm:$0x40]  }
  0xb1   :  { %v5085_v20 = vld [vmem:[#allocation1 + $0x41d] sm:$0x10]   ;;  %v5244_v24 = vld [vmem:[#allocation1 + $0x60] sm:$0x1]  }
  0xb2   :  { %v5105_v21 = vld [vmem:[#allocation1 + $0x61] sm:$0x1]   ;;  %v5246_v25 = vld [vmem:[#allocation1 + $0x15f] sm:$0x2]  }
  0xb3   :  { %v5119_v22 = vld [vmem:[#allocation1 + $0x45d] sm:$0x10]   ;;  %v5109_v28 = vsel %vm4101_vm0, %v5107_v15, %v5105_v21  ;;  %v5214_v15 = vsel %vm4101_vm0, %v5212_v4, %v5210_v3  ;;  %v5254_v30 = vld [vmem:[#allocation1 + $0x35d] sm:$0x8]  }
  0xb4   :  { %v5123_v23 = vld [vmem:[#allocation1 + $0x55c] sm:$0x20]   ;;  %v5113_v36 = vsel %vm4105_vm1, %v5111_v16, %v5109_v28  ;;  %v5224_v16 = vld [vmem:[#allocation1 + $0x41c] sm:$0x10]  }
  0xb5   :  { %v5071_v26 = vld [vmem:[#allocation1 + $0x21] sm:$0x1]   ;;  %v5117_v44 = vsel %vm4109_vm2, %v5115_v11, %v5113_v36  ;;  %v5220_v11 = vld [vmem:[#allocation1 + $0x31d] sm:$0x8]  }
  0xb6   :  { %v5089_v27 = vld [vmem:[#allocation1 + $0x51c] sm:$0x20]   ;;  %v5075_v34 = vsel %vm4101_vm0, %v5073_v14, %v5071_v26  ;;  %v5121_v50 = vsel %vm4113_vm3, %v5119_v22, %v5117_v44  ;;  %v5330_v14 = vsel %vm4113_vm3, %v5328_v60, %v5326_v8  ;;  %v5250_v26 = vld [vmem:[#allocation1 + $0x25e] sm:$0x4]   ;;  %v6646_v44 = vld [vmem:[%s8476_s0 + $0xdb] sm:$0x1] }
  0xb7   :  { %v5127_v29 = vld [vmem:[#allocation1 + $0x65b] sm:$0x40]   ;;  %v5079_v42 = vsel %vm4105_vm1, %v5077_v10, %v5075_v34  ;;  %v5125_v56 = vsel %vm4117_vm4, %v5123_v23, %v5121_v50  ;;  %v5216_v10 = vld [vmem:[#allocation1 + $0x21e] sm:$0x4]   ;;  %v5334_v21 = vsel %vm4117_vm4, %v5332_v61, %v5330_v14  ;;  %v6678_v50 = vld [vmem:[%s8476_s0 + $0xbb] sm:$0x1]  ;;  %v1234_v61 = vunpack.c.l.bf16 %v6686_v51 }
  0xb8   :  { %v5093_v35 = vld [vmem:[#allocation1 + $0x61b] sm:$0x40]   ;;  %v5083_v49 = vsel %vm4109_vm2, %v5081_v19, %v5079_v42  ;;  %v5129_v63 = vsel %vm4121_vm5, %v5127_v29, %v5125_v56  ;;  %v5218_v22 = vsel %vm4105_vm1, %v5216_v10, %v5214_v15  ;;  %v5236_v23 = vld [vmem:[#allocation1 + $0x719] sm:$0x80]   ;;  %v5248_v29 = vsel %vm4101_vm0, %v5246_v25, %v5244_v24  ;;  %v6838_v8 = vld [vmem:[%s8476_s0 + $0x1b] sm:$0x1] }
  0xb9   :  { %v5131_v37 = vld [vmem:[#allocation1 + $0x75a] sm:$0x80]   ;;  %v5087_v55 = vsel %vm4113_vm3, %v5085_v20, %v5083_v49  ;;  %v5307_v20 = vsel %vm4125_vm6, %v5305_v58, %v5303_v13  ;;  %v5222_v28 = vsel %vm4109_vm2, %v5220_v11, %v5218_v22  ;;  %v5258_v31 = vld [vmem:[#allocation1 + $0x45c] sm:$0x10]   ;;  %v82_v42 = vunpack.c.l.bf16 %v6614_v38  ;;  %v6742_v58 = vld [vmem:[%s8476_s0 + $0x7b] sm:$0x1] }
  0xba   :  { %v5097_v43 = vld [vmem:[#allocation1 + $0x71a] sm:$0x80]   ;;  %v5091_v62 = vsel %vm4117_vm4, %v5089_v27, %v5087_v55  ;;  %v5133_v6 = vsel %vm4125_vm6, %v5131_v37, %v5129_v63  ;;  %v5338_v27 = vsel %vm4121_vm5, %v5336_v2, %v5334_v21  ;;  %v5262_v32 = vld [vmem:[#allocation1 + $0x55b] sm:$0x20]   ;;  %v5226_v34 = vsel %vm4113_vm3, %v5224_v16, %v5222_v28  ;;  %v6806_v2 = vld [vmem:[%s8476_s0 + $0x3b] sm:$0x1] }
  0xbb   :  { %v5095_v5 = vsel %vm4121_vm5, %v5093_v35, %v5091_v62  ;;  %v5342_v33 = vsel %vm4125_vm6, %v5340_v9, %v5338_v27  ;;  %v5252_v35 = vsel %vm4105_vm1, %v5250_v26, %v5248_v29  ;;  %v5266_v36 = vld [vmem:[#allocation1 + $0x65a] sm:$0x40]   ;;  %v5230_v40 = vsel %vm4117_vm4, %v5228_v17, %v5226_v34  ;;  %85 = vst [vmem:[#allocation1 + $0x7d8] sm:$0x3] %v82_v42  ;;  %v6846_v9 = vld [vmem:[%s8476_s0 + $0x13] sm:$0x1] }
  0xbc   :  { %v5099_v12 = vsel %vm4125_vm6, %v5097_v43, %v5095_v5  ;;  %v5270_v37 = vld [vmem:[#allocation1 + $0x759] sm:$0x80]   ;;  %v6969_v39 = vpack.i.bf16 %v5342_v33, %v5307_v20  ;;  %v5256_v41 = vsel %vm4109_vm2, %v5254_v30, %v5252_v35  ;;  %v6622_v43 = vld [vmem:[%s8476_s0 + $0xf3] sm:$0x1]  ;;  %v5234_v46 = vsel %vm4121_vm5, %v5232_v18, %v5230_v40  ;;  %1237 = vst [vmem:[#allocation1 + $0x598] sm:$0x3] %v1234_v61  ;;  %v7780_v40 = vpop.permute.xlu1 %6905 }
  0xbd   :  { %v6954_v19 = vpack.i.bf16 %v5133_v6, %v5099_v12  ;;  %v5260_v47 = vsel %vm4113_vm3, %v5258_v31, %v5256_v41  ;;  %v210_v48 = vunpack.c.l.bf16 %v6622_v43  ;;  %v594_v49 = vunpack.c.l.bf16 %v6646_v44  ;;  %v6630_v14 = vld [vmem:[%s8476_s0 + $0xeb] sm:$0x1]  ;;  %v6638_v15 = vld [vmem:[%s8476_s0 + $0xe3] sm:$0x1] }
  0xbe   :  { %6970 = vrot.lane.b32.xlu1 %v6969_v39, %s7051_s24  ;;  %v5238_v53 = vsel %vm4125_vm6, %v5236_v23, %v5234_v46  ;;  %v5264_v54 = vsel %vm4117_vm4, %v5262_v32, %v5260_v47  ;;  %v722_v55 = vunpack.c.l.bf16 %v6654_v45  ;;  %v1106_v56 = vunpack.c.l.bf16 %v6678_v50  ;;  %v6662_v20 = vld [vmem:[%s8476_s0 + $0xcb] sm:$0x1]  ;;  %v6670_v21 = vld [vmem:[%s8476_s0 + $0xc3] sm:$0x1]  ;;  %v7788_v46 = vpop.permute.xlu0 %6895 }
  0xbf   :  { %6955 = vrot.lane.b32.xlu0 %v6954_v19, %s7050_s8  ;;  %v5268_v60 = vsel %vm4121_vm5, %v5266_v36, %v5264_v54  ;;  %213 = vst [vmem:[#allocation1 + $0x798] sm:$0x3] %v210_v48  ;;  %597 = vst [vmem:[#allocation1 + $0x6d8] sm:$0x3] %v594_v49  ;;  %v1618_v62 = vunpack.c.l.bf16 %v6710_v52  ;;  %v1746_v63 = vunpack.c.l.bf16 %v6718_v57  ;;  %v2130_v4 = vunpack.c.l.bf16 %v6742_v58  ;;  %v6694_v22 = vld [vmem:[%s8476_s0 + $0xab] sm:$0x1] }
  0xc0   :  { %v5272_v3 = vsel %vm4125_vm6, %v5270_v37, %v5268_v60  ;;  %725 = vst [vmem:[#allocation1 + $0x698] sm:$0x3] %v722_v55  ;;  %1109 = vst [vmem:[#allocation1 + $0x5d8] sm:$0x3] %v1106_v56  ;;  %v2258_v5 = vunpack.c.l.bf16 %v6750_v59  ;;  %v2642_v6 = vunpack.c.l.bf16 %v6774_v0  ;;  %v2770_v11 = vunpack.c.l.bf16 %v6782_v1  ;;  %v6702_v26 = vld [vmem:[%s8476_s0 + $0xa3] sm:$0x1] }
  0xc1   :  { %v6964_v10 = vpack.i.bf16 %v5272_v3, %v5238_v53  ;;  %1621 = vst [vmem:[#allocation1 + $0x4d8] sm:$0x3] %v1618_v62  ;;  %1749 = vst [vmem:[#allocation1 + $0x498] sm:$0x3] %v1746_v63  ;;  %v3154_v12 = vunpack.c.l.bf16 %v6806_v2  ;;  %v3282_v13 = vunpack.c.l.bf16 %v6814_v7  ;;  %v3666_v16 = vunpack.c.l.bf16 %v6838_v8  ;;  %v6726_v27 = vld [vmem:[%s8476_s0 + $0x8b] sm:$0x1] }
  0xc2   :  { %2133 = vst [vmem:[#allocation1 + $0x3d8] sm:$0x3] %v2130_v4  ;;  %2261 = vst [vmem:[#allocation1 + $0x398] sm:$0x3] %v2258_v5  ;;  %v3794_v17 = vunpack.c.l.bf16 %v6846_v9  ;;  %v338_v18 = vunpack.c.l.bf16 %v6630_v14  ;;  %v466_v19 = vunpack.c.l.bf16 %v6638_v15  ;;  %v850_v23 = vunpack.c.l.bf16 %v6662_v20  ;;  %v6734_v28 = vld [vmem:[%s8476_s0 + $0x83] sm:$0x1] }
  0xc3   :  { %2645 = vst [vmem:[#allocation1 + $0x2d8] sm:$0x3] %v2642_v6  ;;  %6965 = vrot.lane.b32.xlu0 %v6964_v10, %s7051_s24  ;;  %2773 = vst [vmem:[#allocation1 + $0x298] sm:$0x3] %v2770_v11  ;;  %v978_v24 = vunpack.c.l.bf16 %v6670_v21  ;;  %v1362_v25 = vunpack.c.l.bf16 %v6694_v22  ;;  %v1490_v29 = vunpack.c.l.bf16 %v6702_v26  ;;  %v1874_v30 = vunpack.c.l.bf16 %v6726_v27  ;;  %v6758_v32 = vld [vmem:[%s8476_s0 + $0x6b] sm:$0x1] }
  0xc4   :  { %3157 = vst [vmem:[#allocation1 + $0x1d8] sm:$0x3] %v3154_v12  ;;  %3285 = vst [vmem:[#allocation1 + $0x198] sm:$0x3] %v3282_v13  ;;  %v2002_v31 = vunpack.c.l.bf16 %v6734_v28  ;;  %v6766_v33 = vld [vmem:[%s8476_s0 + $0x63] sm:$0x1]  ;;  %v2386_v35 = vunpack.c.l.bf16 %v6758_v32 }
  0xc5   :  { %3669 = vst [vmem:[#allocation1 + $0xd8] sm:$0x3] %v3666_v16  ;;  %3797 = vst [vmem:[#allocation1 + $0x98] sm:$0x3] %v3794_v17  ;;  %v6790_v34 = vld [vmem:[%s8476_s0 + $0x4b] sm:$0x1]  ;;  %v2514_v36 = vunpack.c.l.bf16 %v6766_v33 }
  0xc6   :  { %341 = vst [vmem:[#allocation1 + $0x758] sm:$0x3] %v338_v18  ;;  %469 = vst [vmem:[#allocation1 + $0x718] sm:$0x3] %v466_v19  ;;  %v2898_v37 = vunpack.c.l.bf16 %v6790_v34  ;;  %v6798_v38 = vld [vmem:[%s8476_s0 + $0x43] sm:$0x1] }
  0xc7   :  { %853 = vst [vmem:[#allocation1 + $0x658] sm:$0x3] %v850_v23  ;;  %981 = vst [vmem:[#allocation1 + $0x618] sm:$0x3] %v978_v24  ;;  %v6822_v39 = vld [vmem:[%s8476_s0 + $0x2b] sm:$0x1]  ;;  %v3026_v41 = vunpack.c.l.bf16 %v6798_v38 }
  0xc8   :  { %1365 = vst [vmem:[#allocation1 + $0x558] sm:$0x3] %v1362_v25  ;;  %1493 = vst [vmem:[#allocation1 + $0x518] sm:$0x3] %v1490_v29  ;;  %v3410_v42 = vunpack.c.l.bf16 %v6822_v39  ;;  %v6830_v43 = vld [vmem:[%s8476_s0 + $0x23] sm:$0x1] }
  0xc9   :  { %1877 = vst [vmem:[#allocation1 + $0x458] sm:$0x3] %v1874_v30  ;;  %2005 = vst [vmem:[#allocation1 + $0x418] sm:$0x3] %v2002_v31  ;;  %v3538_v44 = vunpack.c.l.bf16 %v6830_v43  ;;  %v6854_v45 = vld [vmem:[%s8476_s0 + $0xb] sm:$0x1] }
  0xca   :  { %2389 = vst [vmem:[#allocation1 + $0x358] sm:$0x3] %v2386_v35  ;;  %2517 = vst [vmem:[#allocation1 + $0x318] sm:$0x3] %v2514_v36  ;;  %v3922_v47 = vunpack.c.l.bf16 %v6854_v45  ;;  %v5428_v48 = vld [vmem:[#allocation1 + $0x396] sm:$0x8]  }
  0xcb   :  { %2901 = vst [vmem:[#allocation1 + $0x258] sm:$0x3] %v2898_v37  ;;  %3029 = vst [vmem:[#allocation1 + $0x218] sm:$0x3] %v3026_v41  ;;  %v5459_v49 = vld [vmem:[#allocation1 + $0x2d7] sm:$0x4]  }
  0xcc   :  { %3413 = vst [vmem:[#allocation1 + $0x158] sm:$0x3] %v3410_v42  ;;  %v5463_v50 = vld [vmem:[#allocation1 + $0x3d6] sm:$0x8]   ;;  %3541 = vst [vmem:[#allocation1 + $0x118] sm:$0x3] %v3538_v44 }
  0xcd   :  { %v5420_v51 = vld [vmem:[#allocation1 + $0x198] sm:$0x2]   ;;  %3925 = vst [vmem:[#allocation1 + $0x58] sm:$0x3] %v3922_v47  ;;  %v6862_v56 = vld [vmem:[%s8476_s0 + $0x3] sm:$0x1] }
  0xce   :  { %v5424_v52 = vld [vmem:[#allocation1 + $0x297] sm:$0x4]   ;;  %v4050_v61 = vunpack.c.l.bf16 %v6862_v56  ;;  %v5557_v16 = vld [vmem:[#allocation1 + $0x98] sm:$0x1]  }
  0xcf   :  { %v5455_v53 = vld [vmem:[#allocation1 + $0x1d8] sm:$0x2]   ;;  %v5559_v21 = vld [vmem:[#allocation1 + $0x197] sm:$0x2]  }
  0xd0   :  { %v5418_v54 = vld [vmem:[#allocation1 + $0x99] sm:$0x1]   ;;  %4053 = vst [vmem:[#allocation1 + $0x18] sm:$0x3] %v4050_v61  ;;  %v5563_v22 = vld [vmem:[#allocation1 + $0x296] sm:$0x4]   ;;  %v5561_v29 = vsel %vm4101_vm0, %v5559_v21, %v5557_v16  ;;  %v7834_v21 = vpop.permute.xlu0 %6900 }
  0xd1   :  { %v5453_v55 = vld [vmem:[#allocation1 + $0xd9] sm:$0x1]   ;;  %v5422_v57 = vsel %vm4101_vm0, %v5420_v51, %v5418_v54  ;;  %v5567_v30 = vld [vmem:[#allocation1 + $0x395] sm:$0x8]   ;;  %v5565_v36 = vsel %vm4105_vm1, %v5563_v22, %v5561_v29 }
  0xd2   :  { %v5432_v58 = vld [vmem:[#allocation1 + $0x495] sm:$0x10]   ;;  %v5457_v59 = vsel %vm4101_vm0, %v5455_v53, %v5453_v55  ;;  %v5426_v62 = vsel %vm4105_vm1, %v5424_v52, %v5422_v57  ;;  %v5571_v31 = vld [vmem:[#allocation1 + $0x494] sm:$0x10]   ;;  %v5569_v43 = vsel %vm4109_vm2, %v5567_v30, %v5565_v36 }
  0xd3   :  { %v5467_v60 = vld [vmem:[#allocation1 + $0x4d5] sm:$0x10]   ;;  %v5461_v0 = vsel %vm4105_vm1, %v5459_v49, %v5457_v59  ;;  %v5430_v2 = vsel %vm4109_vm2, %v5428_v48, %v5426_v62  ;;  %v5575_v37 = vld [vmem:[#allocation1 + $0x593] sm:$0x20]   ;;  %v5573_v51 = vsel %vm4113_vm3, %v5571_v31, %v5569_v43  ;;  %v6623_v43 = vld [vmem:[%s8476_s0 + $0xf2] sm:$0x1] }
  0xd4   :  { %v5436_v63 = vld [vmem:[#allocation1 + $0x594] sm:$0x20]   ;;  %v5465_v4 = vsel %vm4109_vm2, %v5463_v50, %v5461_v0  ;;  %v5434_v6 = vsel %vm4113_vm3, %v5432_v58, %v5430_v2  ;;  %v5579_v38 = vld [vmem:[#allocation1 + $0x692] sm:$0x40]   ;;  %v5577_v58 = vsel %vm4117_vm4, %v5575_v37, %v5573_v51  ;;  %v6679_v51 = vld [vmem:[%s8476_s0 + $0xba] sm:$0x1] }
  0xd5   :  { %v5471_v1 = vld [vmem:[#allocation1 + $0x5d4] sm:$0x20]   ;;  %v5469_v8 = vsel %vm4113_vm3, %v5467_v60, %v5465_v4  ;;  %v5438_v11 = vsel %vm4117_vm4, %v5436_v63, %v5434_v6  ;;  %v5592_v39 = vld [vmem:[#allocation1 + $0xd8] sm:$0x1]   ;;  %v5581_v2 = vsel %vm4121_vm5, %v5579_v38, %v5577_v58  ;;  %v6719_v58 = vld [vmem:[%s8476_s0 + $0x92] sm:$0x1] }
  0xd6   :  { %v5440_v3 = vld [vmem:[#allocation1 + $0x693] sm:$0x40]   ;;  %v5473_v12 = vsel %vm4117_vm4, %v5471_v1, %v5469_v8  ;;  %v5594_v44 = vld [vmem:[#allocation1 + $0x1d7] sm:$0x2]  }
  0xd7   :  { %v5475_v5 = vld [vmem:[#allocation1 + $0x6d3] sm:$0x40]   ;;  %v5442_v17 = vsel %vm4121_vm5, %v5440_v3, %v5438_v11  ;;  %v5598_v45 = vld [vmem:[#allocation1 + $0x2d6] sm:$0x4]   ;;  %v5596_v53 = vsel %vm4101_vm0, %v5594_v44, %v5592_v39  ;;  %v6647_v44 = vld [vmem:[%s8476_s0 + $0xda] sm:$0x1] }
  0xd8   :  { %v5444_v7 = vld [vmem:[#allocation1 + $0x792] sm:$0x80]   ;;  %v5477_v18 = vsel %vm4121_vm5, %v5475_v5, %v5473_v12  ;;  %v5602_v47 = vld [vmem:[#allocation1 + $0x3d5] sm:$0x8]   ;;  %v5600_v59 = vsel %vm4105_vm1, %v5598_v45, %v5596_v53 }
  0xd9   :  { %v5479_v9 = vld [vmem:[#allocation1 + $0x7d2] sm:$0x80]   ;;  %v5446_v23 = vsel %vm4125_vm6, %v5444_v7, %v5442_v17  ;;  %v5583_v52 = vld [vmem:[#allocation1 + $0x791] sm:$0x80]   ;;  %v5604_v3 = vsel %vm4109_vm2, %v5602_v47, %v5600_v59  ;;  %v7825_v7 = vpop.permute.xlu1 %6910  ;;  %v6743_v59 = vld [vmem:[%s8476_s0 + $0x7a] sm:$0x1] }
  0xda   :  { %v5385_v10 = vld [vmem:[#allocation1 + $0x158] sm:$0x2]   ;;  %v5481_v24 = vsel %vm4125_vm6, %v5479_v9, %v5477_v18  ;;  %v5606_v54 = vld [vmem:[#allocation1 + $0x4d4] sm:$0x10]  }
  0xdb   :  { %v5389_v13 = vld [vmem:[#allocation1 + $0x257] sm:$0x4]   ;;  %v6979_v32 = vpack.i.bf16 %v5481_v24, %v5446_v23  ;;  %v5610_v60 = vld [vmem:[#allocation1 + $0x5d3] sm:$0x20]  }
  0xdc   :  { %v5393_v14 = vld [vmem:[#allocation1 + $0x356] sm:$0x8]   ;;  %v5614_v61 = vld [vmem:[#allocation1 + $0x6d2] sm:$0x40]  }
  0xdd   :  { %v5397_v15 = vld [vmem:[#allocation1 + $0x455] sm:$0x10]   ;;  %6980 = vrot.lane.b32.xlu1 %v6979_v32, %s7052_s17  ;;  %v5488_v62 = vld [vmem:[#allocation1 + $0x18] sm:$0x1]  }
  0xde   :  { %v5383_v19 = vld [vmem:[#allocation1 + $0x59] sm:$0x1]   ;;  %v5618_v4 = vld [vmem:[#allocation1 + $0x7d1] sm:$0x80]  }
  0xdf   :  { %v5401_v20 = vld [vmem:[#allocation1 + $0x554] sm:$0x20]   ;;  %v5387_v27 = vsel %vm4101_vm0, %v5385_v10, %v5383_v19  ;;  %v5490_v5 = vld [vmem:[#allocation1 + $0x117] sm:$0x2]   ;;  %v5608_v10 = vsel %vm4113_vm3, %v5606_v54, %v5604_v3 }
  0xe0   :  { %v5351_v25 = vld [vmem:[#allocation1 + $0x118] sm:$0x2]   ;;  %v5391_v34 = vsel %vm4105_vm1, %v5389_v13, %v5387_v27  ;;  %v5494_v6 = vld [vmem:[#allocation1 + $0x216] sm:$0x4]   ;;  %v5612_v16 = vsel %vm4117_vm4, %v5610_v60, %v5608_v10  ;;  %v5492_v17 = vsel %vm4101_vm0, %v5490_v5, %v5488_v62  ;;  %v6839_v10 = vld [vmem:[%s8476_s0 + $0x1a] sm:$0x1] }
  0xe1   :  { %v5355_v26 = vld [vmem:[#allocation1 + $0x217] sm:$0x4]   ;;  %v5395_v42 = vsel %vm4109_vm2, %v5393_v14, %v5391_v34  ;;  %v5498_v11 = vld [vmem:[#allocation1 + $0x315] sm:$0x8]   ;;  %v5616_v23 = vsel %vm4121_vm5, %v5614_v61, %v5612_v16  ;;  %v5496_v24 = vsel %vm4105_vm1, %v5494_v6, %v5492_v17  ;;  %v1762_v6 = vunpack.c.l.bf16 %v6719_v58  ;;  %v6631_v16 = vld [vmem:[%s8476_s0 + $0xea] sm:$0x1] }
  0xe2   :  { %v5405_v28 = vld [vmem:[#allocation1 + $0x653] sm:$0x40]   ;;  %v5399_v50 = vsel %vm4113_vm3, %v5397_v15, %v5395_v42  ;;  %v5502_v12 = vld [vmem:[#allocation1 + $0x414] sm:$0x10]   ;;  %v5585_v15 = vsel %vm4125_vm6, %v5583_v52, %v5581_v2  ;;  %v5620_v31 = vsel %vm4125_vm6, %v5618_v4, %v5616_v23  ;;  %v5500_v32 = vsel %vm4109_vm2, %v5498_v11, %v5496_v24  ;;  %v6615_v42 = vld [vmem:[%s8476_s0 + $0xfa] sm:$0x1] }
  0xe3   :  { %v5359_v33 = vld [vmem:[#allocation1 + $0x316] sm:$0x8]   ;;  %v5403_v57 = vsel %vm4117_vm4, %v5401_v20, %v5399_v50  ;;  %v5506_v13 = vld [vmem:[#allocation1 + $0x513] sm:$0x20]   ;;  %v6989_v38 = vpack.i.bf16 %v5620_v31, %v5585_v15  ;;  %v5504_v39 = vsel %vm4113_vm3, %v5502_v12, %v5500_v32  ;;  %v6655_v50 = vld [vmem:[%s8476_s0 + $0xd2] sm:$0x1]  ;;  %v2146_v12 = vunpack.c.l.bf16 %v6743_v59 }
  0xe4   :  { %v5409_v35 = vld [vmem:[#allocation1 + $0x752] sm:$0x80]   ;;  %v5407_v1 = vsel %vm4121_vm5, %v5405_v28, %v5403_v57  ;;  %v5510_v18 = vld [vmem:[#allocation1 + $0x612] sm:$0x40]   ;;  %v5508_v47 = vsel %vm4117_vm4, %v5506_v13, %v5504_v39  ;;  %v6687_v52 = vld [vmem:[%s8476_s0 + $0xb2] sm:$0x1]  ;;  %v738_v62 = vunpack.c.l.bf16 %v6655_v50 }
  0xe5   :  { %v5363_v41 = vld [vmem:[#allocation1 + $0x415] sm:$0x10]   ;;  %v5411_v9 = vsel %vm4125_vm6, %v5409_v35, %v5407_v1  ;;  %v5522_v19 = vld [vmem:[#allocation1 + $0x58] sm:$0x1]   ;;  %6990 = vrot.lane.b32.xlu1 %v6989_v38, %s7053_s30  ;;  %v5512_v53 = vsel %vm4121_vm5, %v5510_v18, %v5508_v47  ;;  %v6711_v57 = vld [vmem:[%s8476_s0 + $0x9a] sm:$0x1]  ;;  %v1250_v4 = vunpack.c.l.bf16 %v6687_v52 }
  0xe6   :  { %v5349_v48 = vld [vmem:[#allocation1 + $0x19] sm:$0x1]   ;;  %v5524_v20 = vld [vmem:[#allocation1 + $0x157] sm:$0x2]   ;;  %v6775_v1 = vld [vmem:[%s8476_s0 + $0x5a] sm:$0x1]  ;;  %v1634_v5 = vunpack.c.l.bf16 %v6711_v57 }
  0xe7   :  { %v5367_v49 = vld [vmem:[#allocation1 + $0x514] sm:$0x20]   ;;  %v5353_v55 = vsel %vm4101_vm0, %v5351_v25, %v5349_v48  ;;  %v5514_v25 = vld [vmem:[#allocation1 + $0x711] sm:$0x80]   ;;  %v6783_v2 = vld [vmem:[%s8476_s0 + $0x52] sm:$0x1] }
  0xe8   :  { %v5371_v56 = vld [vmem:[#allocation1 + $0x613] sm:$0x40]   ;;  %v5357_v63 = vsel %vm4105_vm1, %v5355_v26, %v5353_v55  ;;  %v5526_v26 = vsel %vm4101_vm0, %v5524_v20, %v5522_v19  ;;  %v5528_v27 = vld [vmem:[#allocation1 + $0x256] sm:$0x4]   ;;  %v226_v55 = vunpack.c.l.bf16 %v6623_v43  ;;  %v5516_v60 = vsel %vm4125_vm6, %v5514_v25, %v5512_v53  ;;  %741 = vst [vmem:[#allocation1 + $0x690] sm:$0x3] %v738_v62 }
  0xe9   :  { %v5375_v0 = vld [vmem:[#allocation1 + $0x712] sm:$0x80]   ;;  %v5361_v8 = vsel %vm4109_vm2, %v5359_v33, %v5357_v63  ;;  %v5532_v28 = vld [vmem:[#allocation1 + $0x355] sm:$0x8]   ;;  %v5530_v33 = vsel %vm4105_vm1, %v5528_v27, %v5526_v26  ;;  %v1122_v63 = vunpack.c.l.bf16 %v6679_v51  ;;  %v6847_v15 = vld [vmem:[%s8476_s0 + $0x12] sm:$0x1]  ;;  %v2786_v17 = vunpack.c.l.bf16 %v6783_v2 }
  0xea   :  { %v5365_v14 = vsel %vm4113_vm3, %v5363_v41, %v5361_v8  ;;  %v5536_v29 = vld [vmem:[#allocation1 + $0x454] sm:$0x10]   ;;  %v5534_v41 = vsel %vm4109_vm2, %v5532_v28, %v5530_v33  ;;  %229 = vst [vmem:[#allocation1 + $0x790] sm:$0x3] %v226_v55  ;;  %v6807_v8 = vld [vmem:[%s8476_s0 + $0x3a] sm:$0x1]  ;;  %v3682_v20 = vunpack.c.l.bf16 %v6839_v10  ;;  %v3810_v25 = vunpack.c.l.bf16 %v6847_v15 }
  0xeb   :  { %v5369_v22 = vsel %vm4117_vm4, %v5367_v49, %v5365_v14  ;;  %v5540_v34 = vld [vmem:[#allocation1 + $0x553] sm:$0x20]   ;;  %v5538_v48 = vsel %vm4113_vm3, %v5536_v29, %v5534_v41  ;;  %v98_v49 = vunpack.c.l.bf16 %v6615_v42  ;;  %1125 = vst [vmem:[#allocation1 + $0x5d0] sm:$0x3] %v1122_v63  ;;  %v2658_v14 = vunpack.c.l.bf16 %v6775_v1  ;;  %1253 = vst [vmem:[#allocation1 + $0x590] sm:$0x3] %v1250_v4 }
  0xec   :  { %v5373_v30 = vsel %vm4121_vm5, %v5371_v56, %v5369_v22  ;;  %v5544_v35 = vld [vmem:[#allocation1 + $0x652] sm:$0x40]   ;;  %v5542_v54 = vsel %vm4117_vm4, %v5540_v34, %v5538_v48  ;;  %v610_v56 = vunpack.c.l.bf16 %v6647_v44  ;;  %1637 = vst [vmem:[#allocation1 + $0x4d0] sm:$0x3] %v1634_v5  ;;  %1765 = vst [vmem:[#allocation1 + $0x490] sm:$0x3] %v1762_v6  ;;  %v3170_v18 = vunpack.c.l.bf16 %v6807_v8 }
  0xed   :  { %v5548_v36 = vld [vmem:[#allocation1 + $0x751] sm:$0x80]   ;;  %v5377_v37 = vsel %vm4125_vm6, %v5375_v0, %v5373_v30  ;;  %v5546_v61 = vsel %vm4121_vm5, %v5544_v35, %v5542_v54  ;;  %101 = vst [vmem:[#allocation1 + $0x7d0] sm:$0x3] %v98_v49  ;;  %v6751_v0 = vld [vmem:[%s8476_s0 + $0x72] sm:$0x1]  ;;  %v354_v26 = vunpack.c.l.bf16 %v6631_v16 }
  0xee   :  { %v6974_v45 = vpack.i.bf16 %v5411_v9, %v5377_v37  ;;  %v5550_v3 = vsel %vm4125_vm6, %v5548_v36, %v5546_v61  ;;  %613 = vst [vmem:[#allocation1 + $0x6d0] sm:$0x3] %v610_v56  ;;  %v6815_v9 = vld [vmem:[%s8476_s0 + $0x32] sm:$0x1]  ;;  %v2274_v13 = vunpack.c.l.bf16 %v6751_v0  ;;  %v6639_v22 = vld [vmem:[%s8476_s0 + $0xe2] sm:$0x1]  ;;  %v7953_v61 = vpop.permute.xlu1 %6920 }
  0xef   :  { %v6984_v11 = vpack.i.bf16 %v5550_v3, %v5516_v60  ;;  %v3298_v19 = vunpack.c.l.bf16 %v6815_v9  ;;  %v6663_v23 = vld [vmem:[%s8476_s0 + $0xca] sm:$0x1]  ;;  %v6671_v24 = vld [vmem:[%s8476_s0 + $0xc2] sm:$0x1]  ;;  %2149 = vst [vmem:[#allocation1 + $0x3d0] sm:$0x3] %v2146_v12  ;;  %v482_v27 = vunpack.c.l.bf16 %v6639_v22  ;;  %v7961_v22 = vpop.permute.xlu0 %6915 }
  0xf0   :  { %6975 = vrot.lane.b32.xlu0 %v6974_v45, %s7052_s17  ;;  %2277 = vst [vmem:[#allocation1 + $0x390] sm:$0x3] %v2274_v13  ;;  %2661 = vst [vmem:[#allocation1 + $0x2d0] sm:$0x3] %v2658_v14  ;;  %v866_v28 = vunpack.c.l.bf16 %v6663_v23  ;;  %v6695_v29 = vld [vmem:[%s8476_s0 + $0xaa] sm:$0x1]  ;;  %v994_v32 = vunpack.c.l.bf16 %v6671_v24 }
  0xf1   :  { %v6703_v30 = vld [vmem:[%s8476_s0 + $0xa2] sm:$0x1]  ;;  %v6727_v31 = vld [vmem:[%s8476_s0 + $0x8a] sm:$0x1]  ;;  %2789 = vst [vmem:[#allocation1 + $0x290] sm:$0x3] %v2786_v17  ;;  %v1378_v33 = vunpack.c.l.bf16 %v6695_v29 }
  0xf2   :  { %3173 = vst [vmem:[#allocation1 + $0x1d0] sm:$0x3] %v3170_v18  ;;  %3301 = vst [vmem:[#allocation1 + $0x190] sm:$0x3] %v3298_v19  ;;  %v1506_v34 = vunpack.c.l.bf16 %v6703_v30  ;;  %v1890_v35 = vunpack.c.l.bf16 %v6727_v31  ;;  %v6735_v36 = vld [vmem:[%s8476_s0 + $0x82] sm:$0x1] }
  0xf3   :  { %3685 = vst [vmem:[#allocation1 + $0xd0] sm:$0x3] %v3682_v20  ;;  %v6759_v37 = vld [vmem:[%s8476_s0 + $0x6a] sm:$0x1]  ;;  %v6767_v38 = vld [vmem:[%s8476_s0 + $0x62] sm:$0x1]  ;;  %v2018_v39 = vunpack.c.l.bf16 %v6735_v36 }
  0xf4   :  { %6985 = vrot.lane.b32.xlu0 %v6984_v11, %s7053_s30  ;;  %3813 = vst [vmem:[#allocation1 + $0x90] sm:$0x3] %v3810_v25  ;;  %357 = vst [vmem:[#allocation1 + $0x750] sm:$0x3] %v354_v26  ;;  %v2402_v41 = vunpack.c.l.bf16 %v6759_v37  ;;  %v2530_v42 = vunpack.c.l.bf16 %v6767_v38  ;;  %v6791_v43 = vld [vmem:[%s8476_s0 + $0x4a] sm:$0x1] }
  0xf5   :  { %485 = vst [vmem:[#allocation1 + $0x710] sm:$0x3] %v482_v27  ;;  %869 = vst [vmem:[#allocation1 + $0x650] sm:$0x3] %v866_v28  ;;  %v6799_v44 = vld [vmem:[%s8476_s0 + $0x42] sm:$0x1]  ;;  %v2914_v47 = vunpack.c.l.bf16 %v6791_v43 }
  0xf6   :  { %v6823_v45 = vld [vmem:[%s8476_s0 + $0x2a] sm:$0x1]  ;;  %997 = vst [vmem:[#allocation1 + $0x610] sm:$0x3] %v994_v32  ;;  %1381 = vst [vmem:[#allocation1 + $0x550] sm:$0x3] %v1378_v33  ;;  %v3042_v48 = vunpack.c.l.bf16 %v6799_v44 }
  0xf7   :  { %1509 = vst [vmem:[#allocation1 + $0x510] sm:$0x3] %v1506_v34  ;;  %1893 = vst [vmem:[#allocation1 + $0x450] sm:$0x3] %v1890_v35  ;;  %v3426_v49 = vunpack.c.l.bf16 %v6823_v45  ;;  %v6831_v50 = vld [vmem:[%s8476_s0 + $0x22] sm:$0x1] }
  0xf8   :  { %v6855_v51 = vld [vmem:[%s8476_s0 + $0xa] sm:$0x1]  ;;  %2021 = vst [vmem:[#allocation1 + $0x410] sm:$0x3] %v2018_v39  ;;  %2405 = vst [vmem:[#allocation1 + $0x350] sm:$0x3] %v2402_v41  ;;  %v3554_v52 = vunpack.c.l.bf16 %v6831_v50 }
  0xf9   :  { %2533 = vst [vmem:[#allocation1 + $0x310] sm:$0x3] %v2530_v42  ;;  %v3938_v53 = vunpack.c.l.bf16 %v6855_v51  ;;  %v6863_v54 = vld [vmem:[%s8476_s0 + $0x2] sm:$0x1]  ;;  %2917 = vst [vmem:[#allocation1 + $0x250] sm:$0x3] %v2914_v47 }
  0xfa   :  { %3045 = vst [vmem:[#allocation1 + $0x210] sm:$0x3] %v3042_v48  ;;  %3429 = vst [vmem:[#allocation1 + $0x150] sm:$0x3] %v3426_v49  ;;  %v4066_v55 = vunpack.c.l.bf16 %v6863_v54  ;;  %v5706_v56 = vld [vmem:[#allocation1 + $0x38e] sm:$0x8]   ;;  %v7976_v54 = vpop.permute.xlu1 %6930 }
  0xfb   :  { %3557 = vst [vmem:[#allocation1 + $0x110] sm:$0x3] %v3554_v52  ;;  %3941 = vst [vmem:[#allocation1 + $0x50] sm:$0x3] %v3938_v53  ;;  %v5737_v57 = vld [vmem:[#allocation1 + $0x2cf] sm:$0x4]  }
  0xfc   :  { %4069 = vst [vmem:[#allocation1 + $0x10] sm:$0x3] %v4066_v55  ;;  %v5698_v58 = vld [vmem:[#allocation1 + $0x190] sm:$0x2]   ;;  %v5835_v42 = vld [vmem:[#allocation1 + $0x90] sm:$0x1]  }
  0xfd   :  { %v5702_v59 = vld [vmem:[#allocation1 + $0x28f] sm:$0x4]   ;;  %v5837_v43 = vld [vmem:[#allocation1 + $0x18f] sm:$0x2]  }
  0xfe   :  { %v5731_v60 = vld [vmem:[#allocation1 + $0xd1] sm:$0x1]   ;;  %v5841_v44 = vld [vmem:[#allocation1 + $0x28e] sm:$0x4]  }
  0xff   :  { %v5696_v62 = vld [vmem:[#allocation1 + $0x91] sm:$0x1]   ;;  %v5845_v52 = vld [vmem:[#allocation1 + $0x38d] sm:$0x8]  }
 0x100   :  { %v5733_v63 = vld [vmem:[#allocation1 + $0x1d0] sm:$0x2]   ;;  %v5700_v1 = vsel %vm4101_vm0, %v5698_v58, %v5696_v62  ;;  %v5849_v53 = vld [vmem:[#allocation1 + $0x48c] sm:$0x10]   ;;  %v5839_v58 = vsel %vm4101_vm0, %v5837_v43, %v5835_v42 }
 0x101   :  { %v5741_v0 = vld [vmem:[#allocation1 + $0x3ce] sm:$0x8]   ;;  %v5735_v3 = vsel %vm4101_vm0, %v5733_v63, %v5731_v60  ;;  %v5704_v6 = vsel %vm4105_vm1, %v5702_v59, %v5700_v1  ;;  %v5853_v59 = vld [vmem:[#allocation1 + $0x58b] sm:$0x20]  }
 0x102   :  { %v5710_v2 = vld [vmem:[#allocation1 + $0x48d] sm:$0x10]   ;;  %v5739_v11 = vsel %vm4105_vm1, %v5737_v57, %v5735_v3  ;;  %v5708_v14 = vsel %vm4109_vm2, %v5706_v56, %v5704_v6  ;;  %v5857_v60 = vld [vmem:[#allocation1 + $0x68a] sm:$0x40]  }
 0x103   :  { %v5745_v4 = vld [vmem:[#allocation1 + $0x4cd] sm:$0x10]   ;;  %v5743_v15 = vsel %vm4109_vm2, %v5741_v0, %v5739_v11  ;;  %v5712_v23 = vsel %vm4113_vm3, %v5710_v2, %v5708_v14  ;;  %v5870_v62 = vld [vmem:[#allocation1 + $0xd0] sm:$0x1]   ;;  %v5843_v2 = vsel %vm4105_vm1, %v5841_v44, %v5839_v58 }
 0x104   :  { %v5753_v5 = vld [vmem:[#allocation1 + $0x6cb] sm:$0x40]   ;;  %v5747_v24 = vsel %vm4113_vm3, %v5745_v4, %v5743_v15  ;;  %v5872_v63 = vld [vmem:[#allocation1 + $0x1cf] sm:$0x2]   ;;  %v5847_v11 = vsel %vm4109_vm2, %v5845_v52, %v5843_v2  ;;  %v6648_v2 = vld [vmem:[%s8476_s0 + $0xd9] sm:$0x1] }
 0x105   :  { %v5714_v8 = vld [vmem:[#allocation1 + $0x58c] sm:$0x20]   ;;  %v5861_v3 = vld [vmem:[#allocation1 + $0x789] sm:$0x80]   ;;  %v5874_v4 = vsel %vm4101_vm0, %v5872_v63, %v5870_v62 }
 0x106   :  { %v5718_v9 = vld [vmem:[#allocation1 + $0x68b] sm:$0x40]   ;;  %v5716_v29 = vsel %vm4117_vm4, %v5714_v8, %v5712_v23  ;;  %v5880_v6 = vld [vmem:[#allocation1 + $0x3cd] sm:$0x8]  }
 0x107   :  { %v5722_v10 = vld [vmem:[#allocation1 + $0x78a] sm:$0x80]   ;;  %v5720_v36 = vsel %vm4121_vm5, %v5718_v9, %v5716_v29  ;;  %v5884_v8 = vld [vmem:[#allocation1 + $0x4cc] sm:$0x10]  }
 0x108   :  { %v5749_v12 = vld [vmem:[#allocation1 + $0x5cc] sm:$0x20]   ;;  %v5724_v45 = vsel %vm4125_vm6, %v5722_v10, %v5720_v36  ;;  %v5892_v14 = vld [vmem:[#allocation1 + $0x6ca] sm:$0x40]  }
 0x109   :  { %v5757_v13 = vld [vmem:[#allocation1 + $0x7ca] sm:$0x80]   ;;  %v5751_v30 = vsel %vm4117_vm4, %v5749_v12, %v5747_v24  ;;  %v5896_v15 = vld [vmem:[#allocation1 + $0x7c9] sm:$0x80]  }
 0x10a   :  { %v5637_v16 = vld [vmem:[#allocation1 + $0x30e] sm:$0x8]   ;;  %v5755_v37 = vsel %vm4121_vm5, %v5753_v5, %v5751_v30  ;;  %v5876_v5 = vld [vmem:[#allocation1 + $0x2ce] sm:$0x4]  }
 0x10b   :  { %v5663_v17 = vld [vmem:[#allocation1 + $0x150] sm:$0x2]   ;;  %v5759_v47 = vsel %vm4125_vm6, %v5757_v13, %v5755_v37  ;;  %v5878_v12 = vsel %vm4105_vm1, %v5876_v5, %v5874_v4  ;;  %v5888_v13 = vld [vmem:[#allocation1 + $0x5cb] sm:$0x20]   ;;  %v6680_v4 = vld [vmem:[%s8476_s0 + $0xb9] sm:$0x1] }
 0x10c   :  { %v5667_v18 = vld [vmem:[#allocation1 + $0x24f] sm:$0x4]   ;;  %v6999_v55 = vpack.i.bf16 %v5759_v47, %v5724_v45  ;;  %v5768_v23 = vld [vmem:[#allocation1 + $0x10f] sm:$0x2]  }
 0x10d   :  { %v5671_v19 = vld [vmem:[#allocation1 + $0x34e] sm:$0x8]   ;;  %v5772_v24 = vld [vmem:[#allocation1 + $0x20e] sm:$0x4]  }
 0x10e   :  { %v5675_v20 = vld [vmem:[#allocation1 + $0x44d] sm:$0x10]   ;;  %7000 = vrot.lane.b32.xlu1 %v6999_v55, %s7054_s25  ;;  %v5776_v30 = vld [vmem:[#allocation1 + $0x30d] sm:$0x8]  }
 0x10f   :  { %v5629_v25 = vld [vmem:[#allocation1 + $0x110] sm:$0x2]   ;;  %v5788_v37 = vld [vmem:[#allocation1 + $0x60a] sm:$0x40]  }
 0x110   :  { %v5633_v26 = vld [vmem:[#allocation1 + $0x20f] sm:$0x4]   ;;  %v5802_v44 = vld [vmem:[#allocation1 + $0x14f] sm:$0x2]  }
 0x111   :  { %v5641_v27 = vld [vmem:[#allocation1 + $0x40d] sm:$0x10]   ;;  %v5806_v45 = vld [vmem:[#allocation1 + $0x24e] sm:$0x4]  }
 0x112   :  { %v5661_v28 = vld [vmem:[#allocation1 + $0x51] sm:$0x1]   ;;  %v5810_v47 = vld [vmem:[#allocation1 + $0x34d] sm:$0x8]  }
 0x113   :  { %v5627_v31 = vld [vmem:[#allocation1 + $0x11] sm:$0x1]   ;;  %v5665_v33 = vsel %vm4101_vm0, %v5663_v17, %v5661_v28  ;;  %v5818_v52 = vld [vmem:[#allocation1 + $0x54b] sm:$0x20]  }
 0x114   :  { %v5645_v32 = vld [vmem:[#allocation1 + $0x50c] sm:$0x20]   ;;  %v5631_v38 = vsel %vm4101_vm0, %v5629_v25, %v5627_v31  ;;  %v5669_v41 = vsel %vm4105_vm1, %v5667_v18, %v5665_v33  ;;  %v5851_v18 = vsel %vm4113_vm3, %v5849_v53, %v5847_v11  ;;  %v7994_v25 = vpop.permute.xlu0 %6925  ;;  %v5780_v31 = vld [vmem:[#allocation1 + $0x40c] sm:$0x10]   ;;  %v6712_v11 = vld [vmem:[%s8476_s0 + $0x99] sm:$0x1] }
 0x115   :  { %v5679_v34 = vld [vmem:[#allocation1 + $0x54c] sm:$0x20]   ;;  %v5635_v48 = vsel %vm4105_vm1, %v5633_v26, %v5631_v38  ;;  %v5673_v50 = vsel %vm4109_vm2, %v5671_v19, %v5669_v41  ;;  %v5882_v19 = vsel %vm4109_vm2, %v5880_v6, %v5878_v12  ;;  %v5792_v38 = vld [vmem:[#allocation1 + $0x709] sm:$0x80]  }
 0x116   :  { %v5683_v35 = vld [vmem:[#allocation1 + $0x64b] sm:$0x40]   ;;  %v5639_v56 = vsel %vm4109_vm2, %v5637_v16, %v5635_v48  ;;  %v5677_v57 = vsel %vm4113_vm3, %v5675_v20, %v5673_v50  ;;  %v5766_v20 = vld [vmem:[#allocation1 + $0x10] sm:$0x1]   ;;  %v5886_v28 = vsel %vm4113_vm3, %v5884_v8, %v5882_v19  ;;  %v626_v8 = vunpack.c.l.bf16 %v6648_v2  ;;  %v6776_v19 = vld [vmem:[%s8476_s0 + $0x59] sm:$0x1] }
 0x117   :  { %v5649_v39 = vld [vmem:[#allocation1 + $0x60b] sm:$0x40]   ;;  %v5643_v0 = vsel %vm4113_vm3, %v5641_v27, %v5639_v56  ;;  %v5681_v1 = vsel %vm4117_vm4, %v5679_v34, %v5677_v57  ;;  %v5855_v27 = vsel %vm4117_vm4, %v5853_v59, %v5851_v18  ;;  %v5770_v29 = vsel %vm4101_vm0, %v5768_v23, %v5766_v20  ;;  %v5822_v53 = vld [vmem:[#allocation1 + $0x64a] sm:$0x40]   ;;  %v6616_v59 = vld [vmem:[%s8476_s0 + $0xf9] sm:$0x1] }
 0x118   :  { %v5653_v49 = vld [vmem:[#allocation1 + $0x70a] sm:$0x80]   ;;  %v5647_v9 = vsel %vm4117_vm4, %v5645_v32, %v5643_v0  ;;  %v5685_v10 = vsel %vm4121_vm5, %v5683_v35, %v5681_v1  ;;  %v5784_v32 = vld [vmem:[#allocation1 + $0x50b] sm:$0x20]   ;;  %v5859_v34 = vsel %vm4121_vm5, %v5857_v60, %v5855_v27  ;;  %v5890_v35 = vsel %vm4117_vm4, %v5888_v13, %v5886_v28  ;;  %629 = vst [vmem:[#allocation1 + $0x6c8] sm:$0x3] %v626_v8 }
 0x119   :  { %v5687_v51 = vld [vmem:[#allocation1 + $0x74a] sm:$0x80]   ;;  %v5651_v16 = vsel %vm4121_vm5, %v5649_v39, %v5647_v9  ;;  %v5774_v36 = vsel %vm4105_vm1, %v5772_v24, %v5770_v29  ;;  %v5800_v39 = vld [vmem:[#allocation1 + $0x50] sm:$0x1]   ;;  %v5863_v41 = vsel %vm4125_vm6, %v5861_v3, %v5859_v34  ;;  %v5894_v42 = vsel %vm4121_vm5, %v5892_v14, %v5890_v35  ;;  %v6808_v28 = vld [vmem:[%s8476_s0 + $0x39] sm:$0x1] }
 0x11a   :  { %v5689_v17 = vsel %vm4125_vm6, %v5687_v51, %v5685_v10  ;;  %v5655_v26 = vsel %vm4125_vm6, %v5653_v49, %v5651_v16  ;;  %v5778_v43 = vsel %vm4109_vm2, %v5776_v30, %v5774_v36  ;;  %v5898_v48 = vsel %vm4125_vm6, %v5896_v15, %v5894_v42  ;;  %v5814_v51 = vld [vmem:[#allocation1 + $0x44c] sm:$0x10]   ;;  %v6624_v60 = vld [vmem:[%s8476_s0 + $0xf1] sm:$0x1]  ;;  %v6840_v34 = vld [vmem:[%s8476_s0 + $0x19] sm:$0x1] }
 0x11b   :  { %v6994_v33 = vpack.i.bf16 %v5689_v17, %v5655_v26  ;;  %v5782_v49 = vsel %vm4113_vm3, %v5780_v31, %v5778_v43  ;;  %v5804_v50 = vsel %vm4101_vm0, %v5802_v44, %v5800_v39  ;;  %v7009_v55 = vpack.i.bf16 %v5898_v48, %v5863_v41  ;;  %v5826_v58 = vld [vmem:[#allocation1 + $0x749] sm:$0x80]   ;;  %v6656_v3 = vld [vmem:[%s8476_s0 + $0xd1] sm:$0x1]  ;;  %v6744_v17 = vld [vmem:[%s8476_s0 + $0x79] sm:$0x1] }
 0x11c   :  { %v5786_v56 = vsel %vm4117_vm4, %v5784_v32, %v5782_v49  ;;  %v5808_v57 = vsel %vm4105_vm1, %v5806_v45, %v5804_v50  ;;  %v114_v0 = vunpack.c.l.bf16 %v6616_v59  ;;  %v242_v1 = vunpack.c.l.bf16 %v6624_v60  ;;  %v6688_v10 = vld [vmem:[%s8476_s0 + $0xb1] sm:$0x1]  ;;  %v6632_v41 = vld [vmem:[%s8476_s0 + $0xe9] sm:$0x1]  ;;  %v6640_v42 = vld [vmem:[%s8476_s0 + $0xe1] sm:$0x1] }
 0x11d   :  { %6995 = vrot.lane.b32.xlu0 %v6994_v33, %s7054_s25  ;;  %v5790_v62 = vsel %vm4121_vm5, %v5788_v37, %v5786_v56  ;;  %v5812_v63 = vsel %vm4109_vm2, %v5810_v47, %v5808_v57  ;;  %7010 = vrot.lane.b32.xlu1 %v7009_v55, %s7055_s6  ;;  %v754_v9 = vunpack.c.l.bf16 %v6656_v3  ;;  %v6720_v12 = vld [vmem:[%s8476_s0 + $0x91] sm:$0x1]  ;;  %v1138_v14 = vunpack.c.l.bf16 %v6680_v4  ;;  %v6664_v43 = vld [vmem:[%s8476_s0 + $0xc9] sm:$0x1] }
 0x11e   :  { %v5794_v5 = vsel %vm4125_vm6, %v5792_v38, %v5790_v62  ;;  %v5816_v6 = vsel %vm4113_vm3, %v5814_v51, %v5812_v63  ;;  %117 = vst [vmem:[#allocation1 + $0x7c8] sm:$0x3] %v114_v0  ;;  %245 = vst [vmem:[#allocation1 + $0x788] sm:$0x3] %v242_v1  ;;  %v1266_v15 = vunpack.c.l.bf16 %v6688_v10  ;;  %v1650_v16 = vunpack.c.l.bf16 %v6712_v11  ;;  %v6752_v18 = vld [vmem:[%s8476_s0 + $0x71] sm:$0x1] }
 0x11f   :  { %v5820_v13 = vsel %vm4117_vm4, %v5818_v52, %v5816_v6  ;;  %757 = vst [vmem:[#allocation1 + $0x688] sm:$0x3] %v754_v9  ;;  %v1778_v23 = vunpack.c.l.bf16 %v6720_v12  ;;  %v2162_v24 = vunpack.c.l.bf16 %v6744_v17  ;;  %v2290_v26 = vunpack.c.l.bf16 %v6752_v18  ;;  %v6784_v27 = vld [vmem:[%s8476_s0 + $0x51] sm:$0x1]  ;;  %1141 = vst [vmem:[#allocation1 + $0x5c8] sm:$0x3] %v1138_v14  ;;  %v8111_v9 = vpop.permute.xlu1 %6940 }
 0x120   :  { %v5824_v20 = vsel %vm4121_vm5, %v5822_v53, %v5820_v13  ;;  %v6816_v29 = vld [vmem:[%s8476_s0 + $0x31] sm:$0x1]  ;;  %1269 = vst [vmem:[#allocation1 + $0x588] sm:$0x3] %v1266_v15  ;;  %1653 = vst [vmem:[#allocation1 + $0x4c8] sm:$0x3] %v1650_v16  ;;  %v2674_v31 = vunpack.c.l.bf16 %v6776_v19  ;;  %v2802_v32 = vunpack.c.l.bf16 %v6784_v27  ;;  %v3186_v33 = vunpack.c.l.bf16 %v6808_v28 }
 0x121   :  { %v5828_v30 = vsel %vm4125_vm6, %v5826_v58, %v5824_v20  ;;  %v6848_v35 = vld [vmem:[%s8476_s0 + $0x11] sm:$0x1]  ;;  %1781 = vst [vmem:[#allocation1 + $0x488] sm:$0x3] %v1778_v23  ;;  %2165 = vst [vmem:[#allocation1 + $0x3c8] sm:$0x3] %v2162_v24  ;;  %v3314_v37 = vunpack.c.l.bf16 %v6816_v29  ;;  %v3698_v38 = vunpack.c.l.bf16 %v6840_v34  ;;  %v370_v44 = vunpack.c.l.bf16 %v6632_v41 }
 0x122   :  { %v7004_v36 = vpack.i.bf16 %v5828_v30, %v5794_v5  ;;  %2293 = vst [vmem:[#allocation1 + $0x388] sm:$0x3] %v2290_v26  ;;  %v3826_v39 = vunpack.c.l.bf16 %v6848_v35  ;;  %2677 = vst [vmem:[#allocation1 + $0x2c8] sm:$0x3] %v2674_v31  ;;  %v498_v45 = vunpack.c.l.bf16 %v6640_v42  ;;  %v882_v47 = vunpack.c.l.bf16 %v6664_v43  ;;  %v6672_v48 = vld [vmem:[%s8476_s0 + $0xc1] sm:$0x1] }
 0x123   :  { %2805 = vst [vmem:[#allocation1 + $0x288] sm:$0x3] %v2802_v32  ;;  %3189 = vst [vmem:[#allocation1 + $0x1c8] sm:$0x3] %v3186_v33  ;;  %v6696_v49 = vld [vmem:[%s8476_s0 + $0xa9] sm:$0x1]  ;;  %v1010_v51 = vunpack.c.l.bf16 %v6672_v48  ;;  %v8123_v33 = vpop.permute.xlu0 %6935 }
 0x124   :  { %v6704_v50 = vld [vmem:[%s8476_s0 + $0xa1] sm:$0x1]  ;;  %7005 = vrot.lane.b32.xlu0 %v7004_v36, %s7055_s6  ;;  %3317 = vst [vmem:[#allocation1 + $0x188] sm:$0x3] %v3314_v37  ;;  %3701 = vst [vmem:[#allocation1 + $0xc8] sm:$0x3] %v3698_v38  ;;  %v1394_v52 = vunpack.c.l.bf16 %v6696_v49 }
 0x125   :  { %3829 = vst [vmem:[#allocation1 + $0x88] sm:$0x3] %v3826_v39  ;;  %v1522_v53 = vunpack.c.l.bf16 %v6704_v50  ;;  %v6728_v55 = vld [vmem:[%s8476_s0 + $0x89] sm:$0x1]  ;;  %v6736_v56 = vld [vmem:[%s8476_s0 + $0x81] sm:$0x1] }
 0x126   :  { %v6760_v57 = vld [vmem:[%s8476_s0 + $0x69] sm:$0x1]  ;;  %373 = vst [vmem:[#allocation1 + $0x748] sm:$0x3] %v370_v44  ;;  %501 = vst [vmem:[#allocation1 + $0x708] sm:$0x3] %v498_v45  ;;  %v1906_v58 = vunpack.c.l.bf16 %v6728_v55  ;;  %v2034_v59 = vunpack.c.l.bf16 %v6736_v56  ;;  %v8131_v45 = vpop.permute.xlu1 %6950 }
 0x127   :  { %885 = vst [vmem:[#allocation1 + $0x648] sm:$0x3] %v882_v47  ;;  %v2418_v60 = vunpack.c.l.bf16 %v6760_v57  ;;  %v6768_v62 = vld [vmem:[%s8476_s0 + $0x61] sm:$0x1]  ;;  %v6792_v63 = vld [vmem:[%s8476_s0 + $0x49] sm:$0x1] }
 0x128   :  { %v6800_v0 = vld [vmem:[%s8476_s0 + $0x41] sm:$0x1]  ;;  %1013 = vst [vmem:[#allocation1 + $0x608] sm:$0x3] %v1010_v51  ;;  %1397 = vst [vmem:[#allocation1 + $0x548] sm:$0x3] %v1394_v52  ;;  %v2546_v1 = vunpack.c.l.bf16 %v6768_v62  ;;  %v2930_v2 = vunpack.c.l.bf16 %v6792_v63 }
 0x129   :  { %1525 = vst [vmem:[#allocation1 + $0x508] sm:$0x3] %v1522_v53  ;;  %v3058_v3 = vunpack.c.l.bf16 %v6800_v0  ;;  %v6824_v4 = vld [vmem:[%s8476_s0 + $0x29] sm:$0x1]  ;;  %1909 = vst [vmem:[#allocation1 + $0x448] sm:$0x3] %v1906_v58 }
 0x12a   :  { %2037 = vst [vmem:[#allocation1 + $0x408] sm:$0x3] %v2034_v59  ;;  %2421 = vst [vmem:[#allocation1 + $0x348] sm:$0x3] %v2418_v60  ;;  %v3442_v5 = vunpack.c.l.bf16 %v6824_v4  ;;  %v6832_v6 = vld [vmem:[%s8476_s0 + $0x21] sm:$0x1] }
 0x12b   :  { %2549 = vst [vmem:[#allocation1 + $0x308] sm:$0x3] %v2546_v1  ;;  %2933 = vst [vmem:[#allocation1 + $0x248] sm:$0x3] %v2930_v2  ;;  %v3570_v8 = vunpack.c.l.bf16 %v6832_v6  ;;  %v5984_v10 = vld [vmem:[#allocation1 + $0x386] sm:$0x8]  }
 0x12c   :  { %3061 = vst [vmem:[#allocation1 + $0x208] sm:$0x3] %v3058_v3  ;;  %v6019_v11 = vld [vmem:[#allocation1 + $0x3c6] sm:$0x8]   ;;  %3445 = vst [vmem:[#allocation1 + $0x148] sm:$0x3] %v3442_v5 }
 0x12d   :  { %v5980_v12 = vld [vmem:[#allocation1 + $0x287] sm:$0x4]   ;;  %3573 = vst [vmem:[#allocation1 + $0x108] sm:$0x3] %v3570_v8  ;;  %v6864_v26 = vld [vmem:[%s8476_s0 + $0x1] sm:$0x1] }
 0x12e   :  { %v6011_v13 = vld [vmem:[#allocation1 + $0x1c8] sm:$0x2]   ;;  %v4081_v32 = vunpack.c.l.bf16 %v6864_v26  ;;  %v6113_v49 = vld [vmem:[#allocation1 + $0x88] sm:$0x1]   ;;  %s7057_s6 = smov 16  }
 0x12f   :  { %v6015_v14 = vld [vmem:[#allocation1 + $0x2c7] sm:$0x4]   ;;  %v6115_v50 = vld [vmem:[#allocation1 + $0x187] sm:$0x2]  }
 0x130   :  { %v6023_v15 = vld [vmem:[#allocation1 + $0x4c5] sm:$0x10]   ;;  %4084 = vst [vmem:[#allocation1 + $0x8] sm:$0x3] %v4081_v32  ;;  %v6117_v55 = vsel %vm4101_vm0, %v6115_v50, %v6113_v49  ;;  %v6119_v56 = vld [vmem:[#allocation1 + $0x286] sm:$0x4]  }
 0x131   :  { %v5974_v16 = vld [vmem:[#allocation1 + $0x89] sm:$0x1]   ;;  %v6123_v57 = vld [vmem:[#allocation1 + $0x385] sm:$0x8]   ;;  %v6121_v0 = vsel %vm4105_vm1, %v6119_v56, %v6117_v55 }
 0x132   :  { %v5976_v17 = vld [vmem:[#allocation1 + $0x188] sm:$0x2]   ;;  %v6127_v58 = vld [vmem:[#allocation1 + $0x484] sm:$0x10]   ;;  %v6125_v5 = vsel %vm4109_vm2, %v6123_v57, %v6121_v0 }
 0x133   :  { %v6009_v18 = vld [vmem:[#allocation1 + $0xc9] sm:$0x1]   ;;  %v5978_v19 = vsel %vm4101_vm0, %v5976_v17, %v5974_v16  ;;  %v6131_v1 = vld [vmem:[#allocation1 + $0x583] sm:$0x20]  }
 0x134   :  { %v5988_v20 = vld [vmem:[#allocation1 + $0x485] sm:$0x10]   ;;  %v6013_v23 = vsel %vm4101_vm0, %v6011_v13, %v6009_v18  ;;  %v5982_v27 = vsel %vm4105_vm1, %v5980_v12, %v5978_v19  ;;  %v6135_v2 = vld [vmem:[#allocation1 + $0x682] sm:$0x40]   ;;  %v6129_v13 = vsel %vm4113_vm3, %v6127_v58, %v6125_v5  ;;  %v8143_v18 = vpop.permute.xlu0 %6945 }
 0x135   :  { %v6856_v24 = vld [vmem:[%s8476_s0 + $0x9] sm:$0x1]  ;;  %v6017_v29 = vsel %vm4105_vm1, %v6015_v14, %v6013_v23  ;;  %v5986_v34 = vsel %vm4109_vm2, %v5984_v10, %v5982_v27  ;;  %v6148_v6 = vld [vmem:[#allocation1 + $0xc8] sm:$0x1]   ;;  %v6133_v26 = vsel %vm4117_vm4, %v6131_v1, %v6129_v13 }
 0x136   :  { %v5992_v28 = vld [vmem:[#allocation1 + $0x584] sm:$0x20]   ;;  %v3954_v31 = vunpack.c.l.bf16 %v6856_v24  ;;  %v6021_v36 = vsel %vm4109_vm2, %v6019_v11, %v6017_v29  ;;  %v5990_v38 = vsel %vm4113_vm3, %v5988_v20, %v5986_v34  ;;  %v6150_v8 = vld [vmem:[#allocation1 + $0x1c7] sm:$0x2]   ;;  %v6137_v34 = vsel %vm4121_vm5, %v6135_v2, %v6133_v26 }
 0x137   :  { %v6027_v30 = vld [vmem:[#allocation1 + $0x5c4] sm:$0x20]   ;;  %v6025_v41 = vsel %vm4113_vm3, %v6023_v15, %v6021_v36  ;;  %v5994_v43 = vsel %vm4117_vm4, %v5992_v28, %v5990_v38  ;;  %v6154_v10 = vld [vmem:[#allocation1 + $0x2c6] sm:$0x4]   ;;  %v6152_v15 = vsel %vm4101_vm0, %v6150_v8, %v6148_v6 }
 0x138   :  { %v5996_v35 = vld [vmem:[#allocation1 + $0x683] sm:$0x40]   ;;  %3957 = vst [vmem:[#allocation1 + $0x48] sm:$0x3] %v3954_v31  ;;  %v6029_v44 = vsel %vm4117_vm4, %v6027_v30, %v6025_v41  ;;  %v6139_v14 = vld [vmem:[#allocation1 + $0x781] sm:$0x80]   ;;  %v6156_v27 = vsel %vm4105_vm1, %v6154_v10, %v6152_v15 }
 0x139   :  { %v6031_v37 = vld [vmem:[#allocation1 + $0x6c3] sm:$0x40]   ;;  %v5998_v47 = vsel %vm4121_vm5, %v5996_v35, %v5994_v43  ;;  %v6158_v16 = vld [vmem:[#allocation1 + $0x3c5] sm:$0x8]   ;;  %v6141_v43 = vsel %vm4125_vm6, %v6139_v14, %v6137_v34 }
 0x13a   :  { %v6000_v39 = vld [vmem:[#allocation1 + $0x782] sm:$0x80]   ;;  %v6033_v48 = vsel %vm4121_vm5, %v6031_v37, %v6029_v44  ;;  %v6162_v17 = vld [vmem:[#allocation1 + $0x4c4] sm:$0x10]   ;;  %v6160_v35 = vsel %vm4109_vm2, %v6158_v16, %v6156_v27  ;;  %v6625_v27 = vld [vmem:[%s8476_s0 + $0xf0] sm:$0x1] }
 0x13b   :  { %v6035_v42 = vld [vmem:[#allocation1 + $0x7c2] sm:$0x80]   ;;  %v6002_v51 = vsel %vm4125_vm6, %v6000_v39, %v5998_v47  ;;  %v6166_v28 = vld [vmem:[#allocation1 + $0x5c3] sm:$0x20]   ;;  %v6164_v44 = vsel %vm4113_vm3, %v6162_v17, %v6160_v35  ;;  %v6617_v17 = vld [vmem:[%s8476_s0 + $0xf8] sm:$0x1] }
 0x13c   :  { %v6037_v52 = vsel %vm4125_vm6, %v6035_v42, %v6033_v48  ;;  %v5941_v53 = vld [vmem:[#allocation1 + $0x148] sm:$0x2]   ;;  %v6170_v36 = vld [vmem:[#allocation1 + $0x6c2] sm:$0x40]   ;;  %v130_v35 = vunpack.c.l.bf16 %v6617_v17 }
 0x13d   :  { %v7019_v59 = vpack.i.bf16 %v6037_v52, %v6002_v51  ;;  %v5907_v60 = vld [vmem:[#allocation1 + $0x108] sm:$0x2]   ;;  %v6044_v37 = vld [vmem:[#allocation1 + $0x8] sm:$0x1]  }
 0x13e   :  { %v5911_v62 = vld [vmem:[#allocation1 + $0x207] sm:$0x4]   ;;  %v6046_v38 = vld [vmem:[#allocation1 + $0x107] sm:$0x2]   ;;  %133 = vst [vmem:[#allocation1 + $0x7c0] sm:$0x3] %v130_v35 }
 0x13f   :  { %v5945_v63 = vld [vmem:[#allocation1 + $0x247] sm:$0x4]   ;;  %7020 = vrot.lane.b32.xlu1 %v7019_v59, %s7056_s3  ;;  %v6174_v47 = vld [vmem:[#allocation1 + $0x7c1] sm:$0x80]   ;;  %v6048_v55 = vsel %vm4101_vm0, %v6046_v38, %v6044_v37  ;;  %v6657_v37 = vld [vmem:[%s8476_s0 + $0xd0] sm:$0x1] }
 0x140   :  { %v5915_v3 = vld [vmem:[#allocation1 + $0x306] sm:$0x8]   ;;  %v6050_v48 = vld [vmem:[#allocation1 + $0x206] sm:$0x4]   ;;  %v6833_v35 = vld [vmem:[%s8476_s0 + $0x20] sm:$0x1] }
 0x141   :  { %v5949_v4 = vld [vmem:[#allocation1 + $0x346] sm:$0x8]   ;;  %v6054_v49 = vld [vmem:[#allocation1 + $0x305] sm:$0x8]  }
 0x142   :  { %v5919_v11 = vld [vmem:[#allocation1 + $0x405] sm:$0x10]   ;;  %v6058_v56 = vld [vmem:[#allocation1 + $0x404] sm:$0x10]  }
 0x143   :  { %v5953_v12 = vld [vmem:[#allocation1 + $0x445] sm:$0x10]   ;;  %v6062_v57 = vld [vmem:[#allocation1 + $0x503] sm:$0x20]  }
 0x144   :  { %v5905_v19 = vld [vmem:[#allocation1 + $0x9] sm:$0x1]   ;;  %v6078_v0 = vld [vmem:[#allocation1 + $0x48] sm:$0x1]  }
 0x145   :  { %v5923_v20 = vld [vmem:[#allocation1 + $0x504] sm:$0x20]   ;;  %v5909_v29 = vsel %vm4101_vm0, %v5907_v60, %v5905_v19  ;;  %v6080_v1 = vld [vmem:[#allocation1 + $0x147] sm:$0x2]  }
 0x146   :  { %v5939_v23 = vld [vmem:[#allocation1 + $0x49] sm:$0x1]   ;;  %v5913_v39 = vsel %vm4105_vm1, %v5911_v62, %v5909_v29  ;;  %v6052_v62 = vsel %vm4105_vm1, %v6050_v48, %v6048_v55  ;;  %v6070_v6 = vld [vmem:[#allocation1 + $0x701] sm:$0x80]   ;;  %v6641_v29 = vld [vmem:[%s8476_s0 + $0xe0] sm:$0x1] }
 0x147   :  { %v5957_v24 = vld [vmem:[#allocation1 + $0x544] sm:$0x20]   ;;  %v5943_v31 = vsel %vm4101_vm0, %v5941_v53, %v5939_v23  ;;  %v5917_v50 = vsel %vm4109_vm2, %v5915_v3, %v5913_v39  ;;  %v6168_v53 = vsel %vm4117_vm4, %v6166_v28, %v6164_v44  ;;  %v6056_v5 = vsel %vm4109_vm2, %v6054_v49, %v6052_v62  ;;  %v6084_v8 = vld [vmem:[#allocation1 + $0x246] sm:$0x4]   ;;  %v6673_v44 = vld [vmem:[%s8476_s0 + $0xc0] sm:$0x1] }
 0x148   :  { %v5927_v30 = vld [vmem:[#allocation1 + $0x603] sm:$0x40]   ;;  %v5947_v42 = vsel %vm4105_vm1, %v5945_v63, %v5943_v31  ;;  %v5921_v58 = vsel %vm4113_vm3, %v5919_v11, %v5917_v50  ;;  %v6172_v60 = vsel %vm4121_vm5, %v6170_v36, %v6168_v53  ;;  %v6066_v63 = vld [vmem:[#allocation1 + $0x602] sm:$0x40]   ;;  %v6060_v14 = vsel %vm4113_vm3, %v6058_v56, %v6056_v5  ;;  %v6649_v36 = vld [vmem:[%s8476_s0 + $0xd8] sm:$0x1] }
 0x149   :  { %v5961_v32 = vld [vmem:[#allocation1 + $0x643] sm:$0x40]   ;;  %v5951_v51 = vsel %vm4109_vm2, %v5949_v4, %v5947_v42  ;;  %v5925_v2 = vsel %vm4117_vm4, %v5923_v20, %v5921_v58  ;;  %v6176_v4 = vsel %vm4125_vm6, %v6174_v47, %v6172_v60  ;;  %v6088_v10 = vld [vmem:[#allocation1 + $0x345] sm:$0x8]   ;;  %v6064_v23 = vsel %vm4117_vm4, %v6062_v57, %v6060_v14  ;;  %v6681_v47 = vld [vmem:[%s8476_s0 + $0xb8] sm:$0x1] }
 0x14a   :  { %v5931_v41 = vld [vmem:[#allocation1 + $0x702] sm:$0x80]   ;;  %v5955_v59 = vsel %vm4113_vm3, %v5953_v12, %v5951_v51  ;;  %v5929_v11 = vsel %vm4121_vm5, %v5927_v30, %v5925_v2  ;;  %v7029_v13 = vpack.i.bf16 %v6176_v4, %v6141_v43  ;;  %v6092_v15 = vld [vmem:[#allocation1 + $0x444] sm:$0x10]   ;;  %v6068_v31 = vsel %vm4121_vm5, %v6066_v63, %v6064_v23  ;;  %v6689_v48 = vld [vmem:[%s8476_s0 + $0xb0] sm:$0x1] }
 0x14b   :  { %v5965_v52 = vld [vmem:[#allocation1 + $0x742] sm:$0x80]   ;;  %v5959_v3 = vsel %vm4117_vm4, %v5957_v24, %v5955_v59  ;;  %v6096_v16 = vld [vmem:[#allocation1 + $0x543] sm:$0x20]   ;;  %v5933_v19 = vsel %vm4125_vm6, %v5931_v41, %v5929_v11  ;;  %v6082_v24 = vsel %vm4101_vm0, %v6080_v1, %v6078_v0  ;;  %v8199_v39 = vsel %vm4125_vm6, %v6070_v6, %v6068_v31  ;;  %v6705_v55 = vld [vmem:[%s8476_s0 + $0xa0] sm:$0x1] }
 0x14c   :  { %v5963_v12 = vsel %vm4121_vm5, %v5961_v32, %v5959_v3  ;;  %v6100_v26 = vld [vmem:[#allocation1 + $0x642] sm:$0x40]   ;;  %7030 = vrot.lane.b32.xlu1 %v7029_v13, %s7057_s6  ;;  %v6086_v32 = vsel %vm4105_vm1, %v6084_v8, %v6082_v24  ;;  %v258_v42 = vunpack.c.l.bf16 %v6625_v27  ;;  %v514_v50 = vunpack.c.l.bf16 %v6641_v29  ;;  %v6713_v56 = vld [vmem:[%s8476_s0 + $0x98] sm:$0x1]  ;;  %v6721_v62 = vld [vmem:[%s8476_s0 + $0x90] sm:$0x1] }
 0x14d   :  { %v5967_v20 = vsel %vm4125_vm6, %v5965_v52, %v5963_v12  ;;  %v6633_v28 = vld [vmem:[%s8476_s0 + $0xe8] sm:$0x1]  ;;  %v6090_v41 = vsel %vm4109_vm2, %v6088_v10, %v6086_v32  ;;  %v642_v51 = vunpack.c.l.bf16 %v6649_v36  ;;  %v770_v52 = vunpack.c.l.bf16 %v6657_v37  ;;  %v6737_v0 = vld [vmem:[%s8476_s0 + $0x80] sm:$0x1]  ;;  %v6745_v5 = vld [vmem:[%s8476_s0 + $0x78] sm:$0x1] }
 0x14e   :  { %v7014_v30 = vpack.i.bf16 %v5967_v20, %v5933_v19  ;;  %v6104_v34 = vld [vmem:[#allocation1 + $0x741] sm:$0x80]   ;;  %v386_v43 = vunpack.c.l.bf16 %v6633_v28  ;;  %v6094_v49 = vsel %vm4113_vm3, %v6092_v15, %v6090_v41  ;;  %261 = vst [vmem:[#allocation1 + $0x780] sm:$0x3] %v258_v42  ;;  %v1026_v59 = vunpack.c.l.bf16 %v6673_v44  ;;  %517 = vst [vmem:[#allocation1 + $0x700] sm:$0x3] %v514_v50 }
 0x14f   :  { %v6665_v38 = vld [vmem:[%s8476_s0 + $0xc8] sm:$0x1]  ;;  %v6098_v57 = vsel %vm4117_vm4, %v6096_v16, %v6094_v49  ;;  %v1154_v60 = vunpack.c.l.bf16 %v6681_v47  ;;  %645 = vst [vmem:[#allocation1 + $0x6c0] sm:$0x3] %v642_v51  ;;  %773 = vst [vmem:[#allocation1 + $0x680] sm:$0x3] %v770_v52  ;;  %v1282_v2 = vunpack.c.l.bf16 %v6689_v48  ;;  %v1538_v4 = vunpack.c.l.bf16 %v6705_v55  ;;  %v8284_v51 = vpop.permute.xlu1 %6960 }
 0x150   :  { %7015 = vrot.lane.b32.xlu0 %v7014_v30, %s7056_s3  ;;  %v6697_v53 = vld [vmem:[%s8476_s0 + $0xa8] sm:$0x1]  ;;  %389 = vst [vmem:[#allocation1 + $0x740] sm:$0x3] %v386_v43  ;;  %v898_v58 = vunpack.c.l.bf16 %v6665_v38  ;;  %v6102_v1 = vsel %vm4121_vm5, %v6100_v26, %v6098_v57  ;;  %v6753_v6 = vld [vmem:[%s8476_s0 + $0x70] sm:$0x1]  ;;  %v1666_v11 = vunpack.c.l.bf16 %v6713_v56  ;;  %v1794_v12 = vunpack.c.l.bf16 %v6721_v62 }
 0x151   :  { %v6729_v63 = vld [vmem:[%s8476_s0 + $0x88] sm:$0x1]  ;;  %v1410_v3 = vunpack.c.l.bf16 %v6697_v53  ;;  %v6106_v10 = vsel %vm4125_vm6, %v6104_v34, %v6102_v1  ;;  %1029 = vst [vmem:[#allocation1 + $0x600] sm:$0x3] %v1026_v59  ;;  %1157 = vst [vmem:[#allocation1 + $0x5c0] sm:$0x3] %v1154_v60  ;;  %v2050_v19 = vunpack.c.l.bf16 %v6737_v0  ;;  %v2178_v20 = vunpack.c.l.bf16 %v6745_v5 }
 0x152   :  { %v6761_v8 = vld [vmem:[%s8476_s0 + $0x68] sm:$0x1]  ;;  %901 = vst [vmem:[#allocation1 + $0x640] sm:$0x3] %v898_v58  ;;  %v1922_v13 = vunpack.c.l.bf16 %v6729_v63  ;;  %v6769_v14 = vld [vmem:[%s8476_s0 + $0x60] sm:$0x1]  ;;  %v7024_v17 = vpack.i.bf16 %v6106_v10, %v8199_v39  ;;  %v2306_v23 = vunpack.c.l.bf16 %v6753_v6  ;;  %v3586_v47 = vunpack.c.l.bf16 %v6833_v35 }
 0x153   :  { %v6777_v15 = vld [vmem:[%s8476_s0 + $0x58] sm:$0x1]  ;;  %v6785_v16 = vld [vmem:[%s8476_s0 + $0x50] sm:$0x1]  ;;  %1285 = vst [vmem:[#allocation1 + $0x580] sm:$0x3] %v1282_v2  ;;  %v2434_v28 = vunpack.c.l.bf16 %v6761_v8  ;;  %v2562_v29 = vunpack.c.l.bf16 %v6769_v14  ;;  %v6908_v56 = vunpack.i.h.bf16 %v7780_v40  ;;  %v6907_v57 = vunpack.i.l.bf16 %v7780_v40 }
 0x154   :  { %1413 = vst [vmem:[#allocation1 + $0x540] sm:$0x3] %v1410_v3  ;;  %1541 = vst [vmem:[#allocation1 + $0x500] sm:$0x3] %v1538_v4  ;;  %v6793_v24 = vld [vmem:[%s8476_s0 + $0x48] sm:$0x1]  ;;  %v2690_v30 = vunpack.c.l.bf16 %v6777_v15  ;;  %v2818_v31 = vunpack.c.l.bf16 %v6785_v16  ;;  %7025 = vrot.lane.b32.xlu0 %v7024_v17, %s7057_s6  ;;  %v6898_v62 = vunpack.i.h.bf16 %v7788_v46  ;;  %v6897_v63 = vunpack.i.l.bf16 %v7788_v46 }
 0x155   :  { %v6801_v26 = vld [vmem:[%s8476_s0 + $0x40] sm:$0x1]  ;;  %v6809_v27 = vld [vmem:[%s8476_s0 + $0x38] sm:$0x1]  ;;  %1669 = vst [vmem:[#allocation1 + $0x4c0] sm:$0x3] %v1666_v11  ;;  %v2946_v36 = vunpack.c.l.bf16 %v6793_v24  ;;  %v6913_v0 = vunpack.i.h.bf16 %v7825_v7  ;;  %v6912_v1 = vunpack.i.l.bf16 %v7825_v7  ;;  %v6903_v3 = vunpack.i.h.bf16 %v7834_v21 }
 0x156   :  { %1797 = vst [vmem:[#allocation1 + $0x480] sm:$0x3] %v1794_v12  ;;  %1925 = vst [vmem:[#allocation1 + $0x440] sm:$0x3] %v1922_v13  ;;  %v6817_v32 = vld [vmem:[%s8476_s0 + $0x30] sm:$0x1]  ;;  %v3074_v37 = vunpack.c.l.bf16 %v6801_v26  ;;  %v3202_v38 = vunpack.c.l.bf16 %v6809_v27  ;;  %v6902_v4 = vunpack.i.l.bf16 %v7834_v21  ;;  %v6923_v5 = vunpack.i.h.bf16 %v7953_v61 }
 0x157   :  { %v6825_v34 = vld [vmem:[%s8476_s0 + $0x28] sm:$0x1]  ;;  %2053 = vst [vmem:[#allocation1 + $0x400] sm:$0x3] %v2050_v19  ;;  %2181 = vst [vmem:[#allocation1 + $0x3c0] sm:$0x3] %v2178_v20  ;;  %v3330_v39 = vunpack.c.l.bf16 %v6817_v32  ;;  %v6922_v12 = vunpack.i.l.bf16 %v7953_v61  ;;  %v6918_v13 = vunpack.i.h.bf16 %v7961_v22  ;;  %v6917_v14 = vunpack.i.l.bf16 %v7961_v22 }
 0x158   :  { %2309 = vst [vmem:[#allocation1 + $0x380] sm:$0x3] %v2306_v23  ;;  %v6841_v41 = vld [vmem:[%s8476_s0 + $0x18] sm:$0x1]  ;;  %v6849_v42 = vld [vmem:[%s8476_s0 + $0x10] sm:$0x1]  ;;  %v3458_v44 = vunpack.c.l.bf16 %v6825_v34  ;;  %v6933_v19 = vunpack.i.h.bf16 %v7976_v54  ;;  %v6932_v20 = vunpack.i.l.bf16 %v7976_v54  ;;  %v8303_v23 = vpop.permute.xlu0 %6955 }
 0x159   :  { %v6857_v43 = vld [vmem:[%s8476_s0 + $0x8] sm:$0x1]  ;;  %2437 = vst [vmem:[#allocation1 + $0x340] sm:$0x3] %v2434_v28  ;;  %2565 = vst [vmem:[#allocation1 + $0x300] sm:$0x3] %v2562_v29  ;;  %v3714_v48 = vunpack.c.l.bf16 %v6841_v41  ;;  %v3842_v49 = vunpack.c.l.bf16 %v6849_v42  ;;  %v6928_v29 = vunpack.i.h.bf16 %v7994_v25  ;;  %v6938_v41 = vunpack.i.h.bf16 %v8123_v33 }
 0x15a   :  { %2693 = vst [vmem:[#allocation1 + $0x2c0] sm:$0x3] %v2690_v30  ;;  %2821 = vst [vmem:[#allocation1 + $0x280] sm:$0x3] %v2818_v31  ;;  %v4094_v50 = vld [vmem:[%s8476_s0] sm:$0x1]  ;;  %v3970_v52 = vunpack.c.l.bf16 %v6857_v43  ;;  %v6927_v30 = vunpack.i.l.bf16 %v7994_v25  ;;  %v6943_v31 = vunpack.i.h.bf16 %v8111_v9 }
 0x15b   :  { %2949 = vst [vmem:[#allocation1 + $0x240] sm:$0x3] %v2946_v36  ;;  %3077 = vst [vmem:[#allocation1 + $0x200] sm:$0x3] %v3074_v37  ;;  %v4095_v53 = vunpack.c.l.bf16 %v4094_v50  ;;  %v4208_v55 = vld [vmem:[#allocation1 + $0x67e] sm:$0x4]   ;;  %v6937_v50 = vunpack.i.l.bf16 %v8123_v33 }
 0x15c   :  { %3205 = vst [vmem:[#allocation1 + $0x1c0] sm:$0x3] %v3202_v38  ;;  %3333 = vst [vmem:[#allocation1 + $0x180] sm:$0x3] %v3330_v39  ;;  %v4202_v58 = vld [vmem:[#allocation1 + $0x600] sm:$0x1]   ;;  %v6942_v39 = vunpack.i.l.bf16 %v8111_v9 }
 0x15d   :  { %3461 = vst [vmem:[#allocation1 + $0x140] sm:$0x3] %v3458_v44  ;;  %3589 = vst [vmem:[#allocation1 + $0x100] sm:$0x3] %v3586_v47  ;;  %v4204_v59 = vld [vmem:[#allocation1 + $0x63f] sm:$0x2]  }
 0x15e   :  { %3717 = vst [vmem:[#allocation1 + $0xc0] sm:$0x3] %v3714_v48  ;;  %3845 = vst [vmem:[#allocation1 + $0x80] sm:$0x3] %v3842_v49  ;;  %v4212_v60 = vld [vmem:[#allocation1 + $0x6bd] sm:$0x8]   ;;  %v4206_v2 = vsel %vm4101_vm0, %v4204_v59, %v4202_v58 }
 0x15f   :  { %3973 = vst [vmem:[#allocation1 + $0x40] sm:$0x3] %v3970_v52  ;;  %4097 = vst [vmem:[#allocation1] sm:$0x3] %v4095_v53  ;;  %v4169_v6 = vld [vmem:[#allocation1 + $0x43f] sm:$0x2]   ;;  %v4210_v10 = vsel %vm4105_vm1, %v4208_v55, %v4206_v2  ;;  %v6953_v52 = vunpack.i.h.bf16 %v8131_v45  ;;  %v6952_v53 = vunpack.i.l.bf16 %v8131_v45  ;;  %v8317_v55 = vpop.permute.xlu1 %6970 }
 0x160   :  { %v4173_v8 = vld [vmem:[#allocation1 + $0x47e] sm:$0x4]   ;;  %v4214_v17 = vsel %vm4109_vm2, %v4212_v60, %v4210_v10  ;;  %v6947_v10 = vunpack.i.l.bf16 %v8143_v18  ;;  %v6973_v46 = vunpack.i.h.bf16 %v8317_v55  ;;  %v6972_v21 = vunpack.i.l.bf16 %v8317_v55  ;;  %v6231_v55 = vld [vmem:[#allocation1 + $0x43d] sm:$0x10]   ;;  %s7058_s0 = smov 8  }
 0x161   :  { %v4216_v11 = vld [vmem:[#allocation1 + $0x6fc] sm:$0x10]  }
 0x162   :  { %v4167_v15 = vld [vmem:[#allocation1 + $0x400] sm:$0x1]   ;;  %v4218_v38 = vsel %vm4113_vm3, %v4216_v11, %v4214_v17  ;;  %v6963_v11 = vunpack.i.h.bf16 %v8284_v51 }
 0x163   :  { %v4177_v16 = vld [vmem:[#allocation1 + $0x4bd] sm:$0x8]   ;;  %v4171_v24 = vsel %vm4101_vm0, %v4169_v6, %v4167_v15  ;;  %v6981_v45 = vpop.permute.xlu1 %6980 }
 0x164   :  { %v4181_v26 = vld [vmem:[#allocation1 + $0x4fc] sm:$0x10]   ;;  %v4175_v35 = vsel %vm4105_vm1, %v4173_v8, %v4171_v24  ;;  %v6948_v8 = vunpack.i.h.bf16 %v8143_v18  ;;  %v6983_v18 = vunpack.i.h.bf16 %v6981_v45 }
 0x165   :  { %v4185_v27 = vld [vmem:[#allocation1 + $0x53b] sm:$0x20]   ;;  %v4179_v48 = vsel %vm4109_vm2, %v4177_v16, %v4175_v35  ;;  %v6962_v35 = vunpack.i.l.bf16 %v8284_v51  ;;  %v6982_v51 = vunpack.i.l.bf16 %v6981_v45 }
 0x166   :  { %v4220_v28 = vld [vmem:[#allocation1 + $0x73b] sm:$0x20]   ;;  %v4183_v6 = vsel %vm4113_vm3, %v4181_v26, %v4179_v48 }
 0x167   :  { %v4132_v32 = vld [vmem:[#allocation1 + $0x200] sm:$0x1]   ;;  %v4187_v26 = vsel %vm4117_vm4, %v4185_v27, %v4183_v6  ;;  %v4222_v27 = vsel %vm4117_vm4, %v4220_v28, %v4218_v38  ;;  %v6252_v28 = vld [vmem:[#allocation1 + $0x81] sm:$0x1]  }
 0x168   :  { %v4138_v34 = vld [vmem:[#allocation1 + $0x27e] sm:$0x4]   ;;  %v6262_v6 = vld [vmem:[#allocation1 + $0x37e] sm:$0x8]  }
 0x169   :  { %v4189_v36 = vld [vmem:[#allocation1 + $0x57a] sm:$0x40]  }
 0x16a   :  { %v4193_v37 = vld [vmem:[#allocation1 + $0x5b9] sm:$0x80]   ;;  %v4191_v36 = vsel %vm4121_vm5, %v4189_v36, %v4187_v26 }
 0x16b   :  { %v4104_v42 = vld [vmem:[#allocation1 + $0x7e] sm:$0x4]   ;;  %v4195_v37 = vsel %vm4125_vm6, %v4193_v37, %v4191_v36  ;;  %v6278_v36 = vld [vmem:[#allocation1 + $0x77a] sm:$0x80]  }
 0x16c   :  { %v4108_v43 = vld [vmem:[#allocation1 + $0xbd] sm:$0x8]   ;;  %4198 = vst.msk [vmem:[#allocation0 + $0x4] ss:$8 sm:$0xf] %vm4127_vm7, %v4195_v37  }
 0x16d   :  { %v4112_v44 = vld [vmem:[#allocation1 + $0xfc] sm:$0x10]   ;;  %4200 = vst.msk [vmem:[#allocation0 - $0x1b] ss:$8 sm:$0xf0] %vm4127_vm7, %v4195_v37  }
 0x16e   :  { %v4142_v47 = vld [vmem:[#allocation1 + $0x2bd] sm:$0x8]   ;;  %v6293_v37 = vld [vmem:[#allocation1 + $0x2bf] sm:$0x4]  }
 0x16f   :  { %v4224_v49 = vld [vmem:[#allocation1 + $0x77a] sm:$0x40]  }
 0x170   :  { %v4098_v58 = vld [vmem:[#allocation1] sm:$0x1]   ;;  %v4226_v49 = vsel %vm4121_vm5, %v4224_v49, %v4222_v27 }
 0x171   :  { %v4100_v59 = vld [vmem:[#allocation1 + $0x3f] sm:$0x2]  }
 0x172   :  { %v4116_v60 = vld [vmem:[#allocation1 + $0x13b] sm:$0x20]   ;;  %v4102_v15 = vsel %vm4101_vm0, %v4100_v59, %v4098_v58  ;;  %v6254_v58 = vld [vmem:[#allocation1 + $0x180] sm:$0x2]  }
 0x173   :  { %v4146_v2 = vld [vmem:[#allocation1 + $0x2fc] sm:$0x10]   ;;  %v4106_v38 = vsel %vm4105_vm1, %v4104_v42, %v4102_v15  ;;  %v6258_v59 = vld [vmem:[#allocation1 + $0x27f] sm:$0x4]   ;;  %v6958_v15 = vunpack.i.h.bf16 %v8303_v23  ;;  %v6256_v26 = vsel %vm4101_vm0, %v6254_v58, %v6252_v28 }
 0x174   :  { %v4120_v16 = vld [vmem:[#allocation1 + $0x17a] sm:$0x40]   ;;  %v4110_v43 = vsel %vm4109_vm2, %v4108_v43, %v4106_v38  ;;  %v6266_v28 = vld [vmem:[#allocation1 + $0x47d] sm:$0x10]   ;;  %v6260_v27 = vsel %vm4105_vm1, %v6258_v59, %v6256_v26 }
 0x175   :  { %v4134_v17 = vld [vmem:[#allocation1 + $0x23f] sm:$0x2]   ;;  %v6270_v38 = vld [vmem:[#allocation1 + $0x57c] sm:$0x20]   ;;  %v4114_v44 = vsel %vm4113_vm3, %v4112_v44, %v4110_v43  ;;  %v8341_v43 = vpop.permute.xlu0 %6965  ;;  %v6264_v6 = vsel %vm4109_vm2, %v6262_v6, %v6260_v27 }
 0x176   :  { %v4150_v24 = vld [vmem:[#allocation1 + $0x33b] sm:$0x20]   ;;  %v4136_v32 = vsel %vm4101_vm0, %v4134_v17, %v4132_v32  ;;  %v6287_v58 = vld [vmem:[#allocation1 + $0xc1] sm:$0x1]   ;;  %v4118_v60 = vsel %vm4117_vm4, %v4116_v60, %v4114_v44  ;;  %v6268_v28 = vsel %vm4113_vm3, %v6266_v28, %v6264_v6  ;;  %v6967_v54 = vunpack.i.l.bf16 %v8341_v43 }
 0x177   :  { %v4124_v42 = vld [vmem:[#allocation1 + $0x1b9] sm:$0x80]   ;;  %v4140_v34 = vsel %vm4105_vm1, %v4138_v34, %v4136_v32  ;;  %v6274_v32 = vld [vmem:[#allocation1 + $0x67b] sm:$0x40]   ;;  %v4122_v16 = vsel %vm4121_vm5, %v4120_v16, %v4118_v60  ;;  %v6272_v38 = vsel %vm4117_vm4, %v6270_v38, %v6268_v28 }
 0x178   :  { %v4154_v48 = vld [vmem:[#allocation1 + $0x37a] sm:$0x40]   ;;  %v4144_v47 = vsel %vm4109_vm2, %v4142_v47, %v4140_v34  ;;  %v6289_v59 = vld [vmem:[#allocation1 + $0x1c0] sm:$0x2]   ;;  %v4126_v42 = vsel %vm4125_vm6, %v4124_v42, %v4122_v16  ;;  %v6276_v32 = vsel %vm4121_vm5, %v6274_v32, %v6272_v38 }
 0x179   :  { %v4158_v17 = vld [vmem:[#allocation1 + $0x3b9] sm:$0x80]   ;;  %v4148_v2 = vsel %vm4113_vm3, %v4146_v2, %v4144_v47  ;;  %v6291_v34 = vsel %vm4101_vm0, %v6289_v59, %v6287_v58  ;;  %v6297_v26 = vld [vmem:[#allocation1 + $0x3be] sm:$0x8]   ;;  %v6280_v36 = vsel %vm4125_vm6, %v6278_v36, %v6276_v32 }
 0x17a   :  { %v6301_v44 = vld [vmem:[#allocation1 + $0x4bd] sm:$0x10]   ;;  %v4152_v24 = vsel %vm4117_vm4, %v4150_v24, %v4148_v2  ;;  %v6295_v47 = vsel %vm4105_vm1, %v6293_v37, %v6291_v34  ;;  %v4228_v59 = vld [vmem:[#allocation1 + $0x7b9] sm:$0x80]  }
 0x17b   :  { %v6305_v27 = vld [vmem:[#allocation1 + $0x5bc] sm:$0x20]   ;;  %v4156_v48 = vsel %vm4121_vm5, %v4154_v48, %v4152_v24  ;;  %v6299_v60 = vsel %vm4109_vm2, %v6297_v26, %v6295_v47  ;;  %4128 = vst.msk [vmem:[#allocation0] ss:$8 sm:$0xf] %vm4127_vm7, %v4126_v42   ;;  %v4230_v49 = vsel %vm4125_vm6, %v4228_v59, %v4226_v49  ;;  %v6957_v59 = vunpack.i.l.bf16 %v8303_v23 }
 0x17c   :  { %v6309_v58 = vld [vmem:[#allocation1 + $0x6bb] sm:$0x40]   ;;  %4130 = vst.msk [vmem:[#allocation0 - $0x1f] ss:$8 sm:$0xf0] %vm4127_vm7, %v4126_v42   ;;  %v4160_v17 = vsel %vm4125_vm6, %v4158_v17, %v4156_v48  ;;  %v6303_v37 = vsel %vm4113_vm3, %v6301_v44, %v6299_v60 }
 0x17d   :  { %v6183_v2 = vld [vmem:[#allocation1 + $0x1] sm:$0x1]   ;;  %4163 = vst.msk [vmem:[#allocation0 + $0x2] ss:$8 sm:$0xf] %vm4127_vm7, %v4160_v17   ;;  %v6307_v16 = vsel %vm4117_vm4, %v6305_v27, %v6303_v37 }
 0x17e   :  { %v6185_v6 = vld [vmem:[#allocation1 + $0x100] sm:$0x2]   ;;  %4165 = vst.msk [vmem:[#allocation0 - $0x1d] ss:$8 sm:$0xf0] %vm4127_vm7, %v4160_v17   ;;  %v6311_v58 = vsel %vm4121_vm5, %v6309_v58, %v6307_v16 }
 0x17f   :  { %v6189_v34 = vld [vmem:[#allocation1 + $0x1ff] sm:$0x4]   ;;  %4233 = vst.msk [vmem:[#allocation0 + $0x6] ss:$8 sm:$0xf] %vm4127_vm7, %v4230_v49   ;;  %v6187_v24 = vsel %vm4101_vm0, %v6185_v6, %v6183_v2  ;;  %v6968_v2 = vunpack.i.h.bf16 %v8341_v43 }
 0x180   :  { %v6313_v26 = vld [vmem:[#allocation1 + $0x7ba] sm:$0x80]   ;;  %4235 = vst.msk [vmem:[#allocation0 - $0x19] ss:$8 sm:$0xf0] %vm4127_vm7, %v4230_v49   ;;  %v6191_v42 = vsel %vm4105_vm1, %v6189_v34, %v6187_v24 }
 0x181   :  { %v6193_v44 = vld [vmem:[#allocation1 + $0x2fe] sm:$0x8]   ;;  %4269 = vst.msk [vmem:[#allocation0] sm:$0xff] %vm4268_vm8, %v6897_v63   ;;  %4304 = vst.msk [vmem:[#allocation0 + $0x8] sm:$0xff] %vm4268_vm8, %v6898_v62   ;;  %v6315_v62 = vsel %vm4125_vm6, %v6313_v26, %v6311_v58 }
 0x182   :  { %v6197_v28 = vld [vmem:[#allocation1 + $0x3fd] sm:$0x10]   ;;  %4339 = vst.msk [vmem:[#allocation0 + $0x10] sm:$0xff] %vm4268_vm8, %v6902_v4   ;;  %4374 = vst.msk [vmem:[#allocation0 + $0x18] sm:$0xff] %vm4268_vm8, %v6903_v3   ;;  %v6195_v63 = vsel %vm4109_vm2, %v6193_v44, %v6191_v42  ;;  %v7039_v6 = vpack.i.bf16 %v6315_v62, %v6280_v36 }
 0x183   :  { %v6201_v47 = vld [vmem:[#allocation1 + $0x4fc] sm:$0x20]   ;;  %v6199_v34 = vsel %vm4113_vm3, %v6197_v28, %v6195_v63  ;;  %4408 = vst.msk [vmem:[#allocation0] sm:$0xff] %vm4407_vm9, %v6907_v57   ;;  %4443 = vst.msk [vmem:[#allocation0 + $0x8] sm:$0xff] %vm4407_vm9, %v6908_v56   ;;  %v6991_v57 = vpop.permute.xlu1 %6990 }
 0x184   :  { %v6217_v27 = vld [vmem:[#allocation1 + $0x41] sm:$0x1]   ;;  %v6203_v26 = vsel %vm4117_vm4, %v6201_v47, %v6199_v34  ;;  %4478 = vst.msk [vmem:[#allocation0 + $0x10] sm:$0xff] %vm4407_vm9, %v6912_v1   ;;  %4513 = vst.msk [vmem:[#allocation0 + $0x18] sm:$0xff] %vm4407_vm9, %v6913_v0   ;;  %7040 = vrot.lane.b32.xlu1 %v7039_v6, %s7058_s0  ;;  %v6976_v0 = vpop.permute.xlu0 %6975  ;;  %v6993_v1 = vunpack.i.h.bf16 %v6991_v57 }
 0x185   :  { %v6219_v48 = vld [vmem:[#allocation1 + $0x140] sm:$0x2]   ;;  %4617 = vst.msk [vmem:[#allocation0 + $0x10] sm:$0xff] %vm4546_vm10, %v6922_v12   ;;  %4652 = vst.msk [vmem:[#allocation0 + $0x18] sm:$0xff] %vm4546_vm10, %v6923_v5   ;;  %v6992_v5 = vunpack.i.l.bf16 %v6991_v57  ;;  %v6978_v12 = vunpack.i.h.bf16 %v6976_v0 }
 0x186   :  { %v6223_v38 = vld [vmem:[#allocation1 + $0x23f] sm:$0x4]   ;;  %v6221_v4 = vsel %vm4101_vm0, %v6219_v48, %v6217_v27  ;;  %4582 = vst.msk [vmem:[#allocation0 + $0x8] sm:$0xff] %vm4546_vm10, %v6918_v13   ;;  %4547 = vst.msk [vmem:[#allocation0] sm:$0xff] %vm4546_vm10, %v6917_v14   ;;  %vm5380_vm0 = vcmask 523712   ;;  %v6977_v13 = vunpack.i.l.bf16 %v6976_v0 }
 0x187   :  { %v6227_v60 = vld [vmem:[#allocation1 + $0x33e] sm:$0x8]   ;;  %v6225_v32 = vsel %vm4105_vm1, %v6223_v38, %v6221_v4  ;;  %4756 = vst.msk [vmem:[#allocation0 + $0x10] sm:$0xff] %vm4685_vm11, %v6932_v20   ;;  %4791 = vst.msk [vmem:[#allocation0 + $0x18] sm:$0xff] %vm4685_vm11, %v6933_v19   ;;  %vm5519_vm1 = vcmask 458112   ;;  %v7001_v23 = vpop.permute.xlu1 %7000 }
 0x188   :  { %v6205_v3 = vld [vmem:[#allocation1 + $0x5fb] sm:$0x40]   ;;  %v6229_v49 = vsel %vm4109_vm2, %v6227_v60, %v6225_v32  ;;  %4686 = vst.msk [vmem:[#allocation0] sm:$0xff] %vm4685_vm11, %v6927_v30   ;;  %4721 = vst.msk [vmem:[#allocation0 + $0x8] sm:$0xff] %vm4685_vm11, %v6928_v29   ;;  %v6986_v14 = vpop.permute.xlu0 %6985  ;;  %vm5658_vm2 = vcmask 392512   ;;  %v7003_v29 = vunpack.i.h.bf16 %v7001_v23  ;;  %v7002_v30 = vunpack.i.l.bf16 %v7001_v23 }
 0x189   :  { %v6209_v17 = vld [vmem:[#allocation1 + $0x6fa] sm:$0x80]   ;;  %v6207_v40 = vsel %vm4121_vm5, %v6205_v3, %v6203_v26  ;;  %v6233_v7 = vsel %vm4113_vm3, %v6231_v55, %v6229_v49  ;;  %4895 = vst.msk [vmem:[#allocation0 + $0x10] sm:$0xff] %vm4824_vm12, %v6942_v39   ;;  %4930 = vst.msk [vmem:[#allocation0 + $0x18] sm:$0xff] %vm4824_vm12, %v6943_v31   ;;  %v6988_v19 = vunpack.i.h.bf16 %v6986_v14  ;;  %v6987_v20 = vunpack.i.l.bf16 %v6986_v14 }
 0x18a   :  { %v6235_v37 = vld [vmem:[#allocation1 + $0x53c] sm:$0x20]   ;;  %v6211_v61 = vsel %vm4125_vm6, %v6209_v17, %v6207_v40  ;;  %4825 = vst.msk [vmem:[#allocation0] sm:$0xff] %vm4824_vm12, %v6937_v50   ;;  %4860 = vst.msk [vmem:[#allocation0 + $0x8] sm:$0xff] %vm4824_vm12, %v6938_v41   ;;  %vm5797_vm3 = vcmask 326912  }
 0x18b   :  { %v6239_v44 = vld [vmem:[#allocation1 + $0x63b] sm:$0x40]   ;;  %v6237_v22 = vsel %vm4117_vm4, %v6235_v37, %v6233_v7  ;;  %5034 = vst.msk [vmem:[#allocation0 + $0x10] sm:$0xff] %vm4963_vm13, %v6952_v53   ;;  %5069 = vst.msk [vmem:[#allocation0 + $0x18] sm:$0xff] %vm4963_vm13, %v6953_v52   ;;  %vm5936_vm4 = vcmask 261312  }
 0x18c   :  { %v6243_v56 = vld [vmem:[#allocation1 + $0x73a] sm:$0x80]   ;;  %v6241_v25 = vsel %vm4121_vm5, %v6239_v44, %v6237_v22  ;;  %4964 = vst.msk [vmem:[#allocation0] sm:$0xff] %vm4963_vm13, %v6947_v10   ;;  %4999 = vst.msk [vmem:[#allocation0 + $0x8] sm:$0xff] %vm4963_vm13, %v6948_v8   ;;  %vm6075_vm5 = vcmask 195712  }
 0x18d   :  { %v6245_v9 = vsel %vm4125_vm6, %v6243_v56, %v6241_v25  ;;  %5173 = vst.msk [vmem:[#allocation0 + $0x10] sm:$0xff] %vm5102_vm14, %v6962_v35   ;;  %5208 = vst.msk [vmem:[#allocation0 + $0x18] sm:$0xff] %vm5102_vm14, %v6963_v11   ;;  %vm6214_vm6 = vcmask 130112  }
 0x18e   :  { %v7034_v33 = vpack.i.bf16 %v6245_v9, %v6211_v61  ;;  %5103 = vst.msk [vmem:[#allocation0] sm:$0xff] %vm5102_vm14, %v6957_v59   ;;  %5138 = vst.msk [vmem:[#allocation0 + $0x8] sm:$0xff] %vm5102_vm14, %v6958_v15  }
 0x18f   :  { %5312 = vst.msk [vmem:[#allocation0 + $0x10] sm:$0xff] %vm5241_vm15, %v6972_v21   ;;  %5347 = vst.msk [vmem:[#allocation0 + $0x18] sm:$0xff] %vm5241_vm15, %v6973_v46   ;;  %v6996_v31 = vpop.permute.xlu0 %6995  ;;  %v7011_v50 = vpop.permute.xlu1 %7010 }
 0x190   :  { %5242 = vst.msk [vmem:[#allocation0] sm:$0xff] %vm5241_vm15, %v6967_v54   ;;  %5277 = vst.msk [vmem:[#allocation0 + $0x8] sm:$0xff] %vm5241_vm15, %v6968_v2   ;;  %7035 = vrot.lane.b32.xlu0 %v7034_v33, %s7058_s0  ;;  %v6998_v39 = vunpack.i.h.bf16 %v6996_v31  ;;  %v6997_v41 = vunpack.i.l.bf16 %v6996_v31  ;;  %v7013_v52 = vunpack.i.h.bf16 %v7011_v50  ;;  %v7012_v53 = vunpack.i.l.bf16 %v7011_v50 }
 0x191   :  { %5451 = vst.msk [vmem:[#allocation0 + $0x10] sm:$0xff] %vm5380_vm0, %v6982_v51   ;;  %5486 = vst.msk [vmem:[#allocation0 + $0x18] sm:$0xff] %vm5380_vm0, %v6983_v18  }
 0x192   :  { %5590 = vst.msk [vmem:[#allocation0 + $0x10] sm:$0xff] %vm5519_vm1, %v6992_v5   ;;  %5625 = vst.msk [vmem:[#allocation0 + $0x18] sm:$0xff] %vm5519_vm1, %v6993_v1  }
 0x193   :  { %5381 = vst.msk [vmem:[#allocation0] sm:$0xff] %vm5380_vm0, %v6977_v13   ;;  %5416 = vst.msk [vmem:[#allocation0 + $0x8] sm:$0xff] %vm5380_vm0, %v6978_v12  }
 0x194   :  { %5520 = vst.msk [vmem:[#allocation0] sm:$0xff] %vm5519_vm1, %v6987_v20   ;;  %5555 = vst.msk [vmem:[#allocation0 + $0x8] sm:$0xff] %vm5519_vm1, %v6988_v19  }
 0x195   :  { %5729 = vst.msk [vmem:[#allocation0 + $0x10] sm:$0xff] %vm5658_vm2, %v7002_v30   ;;  %5764 = vst.msk [vmem:[#allocation0 + $0x18] sm:$0xff] %vm5658_vm2, %v7003_v29  }
 0x196   :  { %5659 = vst.msk [vmem:[#allocation0] sm:$0xff] %vm5658_vm2, %v6997_v41   ;;  %5694 = vst.msk [vmem:[#allocation0 + $0x8] sm:$0xff] %vm5658_vm2, %v6998_v39   ;;  %v7006_v8 = vpop.permute.xlu0 %7005 }
 0x197   :  { %5868 = vst.msk [vmem:[#allocation0 + $0x10] sm:$0xff] %vm5797_vm3, %v7012_v53   ;;  %5903 = vst.msk [vmem:[#allocation0 + $0x18] sm:$0xff] %vm5797_vm3, %v7013_v52   ;;  %v7008_v10 = vunpack.i.h.bf16 %v7006_v8  ;;  %v7007_v11 = vunpack.i.l.bf16 %v7006_v8 }
 0x199   :  { %5798 = vst.msk [vmem:[#allocation0] sm:$0xff] %vm5797_vm3, %v7007_v11   ;;  %5833 = vst.msk [vmem:[#allocation0 + $0x8] sm:$0xff] %vm5797_vm3, %v7008_v10  }
 0x1b1   :  { %v7021_v35 = vpop.permute.xlu1 %7020 }
 0x1b2   :  { %v7023_v15 = vunpack.i.h.bf16 %v7021_v35  ;;  %v7022_v43 = vunpack.i.l.bf16 %v7021_v35 }
 0x1b4   :  { %6007 = vst.msk [vmem:[#allocation0 + $0x10] sm:$0xff] %vm5936_vm4, %v7022_v43   ;;  %6042 = vst.msk [vmem:[#allocation0 + $0x18] sm:$0xff] %vm5936_vm4, %v7023_v15  }
 0x1be   :  { %v7031_v36 = vpop.permute.xlu1 %7030 }
 0x1bf   :  { %v7033_v16 = vunpack.i.h.bf16 %v7031_v36  ;;  %v7032_v24 = vunpack.i.l.bf16 %v7031_v36 }
 0x1c1   :  { %6146 = vst.msk [vmem:[#allocation0 + $0x10] sm:$0xff] %vm6075_vm5, %v7032_v24   ;;  %6181 = vst.msk [vmem:[#allocation0 + $0x18] sm:$0xff] %vm6075_vm5, %v7033_v16  }
 0x1c2   :  { %v7016_v28 = vpop.permute.xlu0 %7015 }
 0x1c3   :  { %v7018_v47 = vunpack.i.h.bf16 %v7016_v28  ;;  %v7017_v27 = vunpack.i.l.bf16 %v7016_v28 }
 0x1c5   :  { %5937 = vst.msk [vmem:[#allocation0] sm:$0xff] %vm5936_vm4, %v7017_v27   ;;  %5972 = vst.msk [vmem:[#allocation0 + $0x8] sm:$0xff] %vm5936_vm4, %v7018_v47  }
 0x1c6   :  { %v7026_v59 = vpop.permute.xlu0 %7025 }
 0x1c7   :  { %v7028_v58 = vunpack.i.h.bf16 %v7026_v59  ;;  %v7027_v42 = vunpack.i.l.bf16 %v7026_v59 }
 0x1c9   :  { %6076 = vst.msk [vmem:[#allocation0] sm:$0xff] %vm6075_vm5, %v7027_v42   ;;  %6111 = vst.msk [vmem:[#allocation0 + $0x8] sm:$0xff] %vm6075_vm5, %v7028_v58  }
 0x1f6   :  { %v7041_v48 = vpop.permute.xlu1 %7040 }
 0x1f7   :  { %v7043_v38 = vunpack.i.h.bf16 %v7041_v48  ;;  %v7042_v60 = vunpack.i.l.bf16 %v7041_v48 }
 0x1f9   :  { %6285 = vst.msk [vmem:[#allocation0 + $0x10] sm:$0xff] %vm6214_vm6, %v7042_v60   ;;  %6320 = vst.msk [vmem:[#allocation0 + $0x18] sm:$0xff] %vm6214_vm6, %v7043_v38  }
 0x200   :  { %v6339_v63 = vld [vmem:[#allocation0 + $0x10] sm:$0xff]  ;;  %v6347_v3 = vld [vmem:[#allocation0 + $0x18] sm:$0xff] }
 0x201   :  { %v6876_v4 = vpack.c.bf16 %v6347_v3, %v6339_v63 }
 0x202   :  { %v7036_v46 = vpop.permute.xlu0 %7035 }
 0x203   :  { %v7038_v21 = vunpack.i.h.bf16 %v7036_v46  ;;  %v7037_v62 = vunpack.i.l.bf16 %v7036_v46  ;;  %6878 = vst [vmem:[%s8477_s1 + $0x8] sm:$0xff] %v6876_v4  }
 0x205   :  { %6215 = vst.msk [vmem:[#allocation0] sm:$0xff] %vm6214_vm6, %v7037_v62   ;;  %6250 = vst.msk [vmem:[#allocation0 + $0x8] sm:$0xff] %vm6214_vm6, %v7038_v21  }
 0x20c   :  { %v6326_v55 = vld [vmem:[#allocation0] sm:$0xff]  ;;  %v6332_v2 = vld [vmem:[#allocation0 + $0x8] sm:$0xff] }
 0x20d   :  { %v6871_v6 = vpack.c.bf16 %v6332_v2, %v6326_v55 }
 0x20f   :  { %6872 = vst [vmem:[%s8477_s1] sm:$0xff] %v6871_v6  }

// kernel: ffc_resnet_block.11
= control target key start
LH: loop header
LB: loop body
LE: loop exit
PB: predicated region body
PF: predicated region fallthrough
CT: control target
= control target key end

     0   :  { %s601_s18 = smov 0   ;;  %s603_s19 = smov 0   ;;  %s666_s0 = inlined_call_operand.vmem [shape: bf16[8,512], index: 0, kind: input, shape index: {}]   ;;  %s667_s1 = inlined_call_operand.vmem [shape: bf16[8,512], index: 1, kind: input, shape index: {}]   ;;  %s668_s2 = inlined_call_operand.vmem [shape: bf16[8,512], index: 2, kind: input, shape index: {}]   ;;  %s669_s3 = inlined_call_operand.vmem [shape: bf16[16,8], index: 3, kind: input, shape index: {}]   ;;  %s670_s4 = inlined_call_operand.vmem [shape: f32[16,1], index: 4, kind: input, shape index: {}]   ;;  %s671_s5 = inlined_call_operand.vmem [shape: bf16[16,512], index: 5, kind: output, shape index: {}]  }
   0x1   :  { %s605_s20 = smov 0  }
   0x2 LB: > { %s614_s21 = sadd.s32 4294967295, %s568_s20   ;;  %s616_s22 = sadd.s32 1, %s568_s20   ;;  %s568_s20 = sphi %s605_s20, %s675_s20   ;;  %s564_s19 = sphi %s603_s19, %s674_s19   ;;  %s560_s18 = sphi %s601_s18, %s673_s18  }
   0x3   : > { %s139_s23 = ssub.s32 %s568_s20, %s616_s22  ;;  %s142_s24 = sadd.s32 1, %s564_s19 }
   0x4   : > { %p140_p0 = scmp.eq.s32.totalorder %s139_s23, 0  ;;  %p152_p1 = scmp.ne.s32.totalorder %s564_s19, %s560_s18 }
   0x5   : > { %p153_p2 = scmp.eq.s32.totalorder %s614_s21, 1  ;;  %p498_p3 = scmp.ge.s32.totalorder %s568_s20, 1 }
   0x6   : > { %s624_s25 = scalar_select %p140_p0, %s564_s19, %s142_s24  }
   0x7   : > { %p626_p4 = por %p153_p2, %p152_p1  ;;  %p210_p5 = scmp.lt.s32.totalorder %s568_s20, 3 }
   0x9   : > { %p211_p6 = pnand %p498_p3, %p210_p5 }
   0xa   : > { %s500_s27 = sshll.u32 (!%p211_p6), %s614_s21, 1  ;;  %s244_s23 = sand.u32 (!%p211_p6), 1, %s560_s18  }
   0xb   : > { %214 = sbr.rel (%p211_p6) target bundleno = 247 (0xf7), region = 40  ;;  %p248_p7 = scmp.lt.s32.totalorder (!%p211_p6), %s500_s27, 3 }
   0xc   : > { %s499_s24 = sshll.u32 (!%p211_p6), %s244_s23, 4 }
  0x10   : > { %v570_v0 = vmov 0   ;;  %v284_v1 = vld [vmem:[%s670_s4] sm:$0xff]  ;;  %s677_s27 = smov (!%p248_p7, %s500_s27), 3  ;;  %v285_v2 = vld [vmem:[%s670_s4 + $0x8] sm:$0xff]  ;;  %vm305_vm0 = vcmask 1043456   ;;  %vm301_vm1 = vcmask 64512  }
  0x11   : > { %344 = vmatprep.mubr.bf16.mxu0 %v570_v0  ;;  %544 = vset.pattern.permute.xlu0 %v570_v0  ;;  %s501_s7 = sshll.u32 %s677_s27, 2  ;;  %v545_v19 = vld [vmem:[%s669_s3] sm:$0xff]   ;;  %s246_s27 = scalar_lea.vmem [#allocation2], %s499_s24 }
  0x12   : > { %288 = vperm.xlu0 %544, %v284_v1   ;;  %s251_s10 = scalar_lea.vmem %s666_s0, %s501_s7  ;;  %s257_s13 = scalar_lea.vmem %s667_s1, %s501_s7 }
  0x13   : > { %s263_s16 = scalar_lea.vmem %s668_s2, %s501_s7  ;;  %v267_v3 = vld [vmem:[%s251_s10] sm:$0xff]  ;;  %s518_s18 = sshll.u32 (%p626_p4), %s614_s21, 3 }
  0x14   : > { %v270_v4 = vld [vmem:[%s257_s13] sm:$0xff]  ;;  %v269_v5 = vunpack.c.h.bf16 %v267_v3  ;;  %v268_v8 = vunpack.c.l.bf16 %v267_v3  ;;  %s382_s30 = scalar_lea.vmem (%p626_p4), %s671_s5, %s518_s18 }
  0x15   : > { %v272_v6 = vunpack.c.h.bf16 %v270_v4  ;;  %v275_v7 = vld [vmem:[%s263_s16] sm:$0xff]  ;;  %v271_v9 = vunpack.c.l.bf16 %v270_v4 }
  0x16   : > { %293 = vperm.xlu0 %544, %v285_v2   ;;  %v277_v10 = vunpack.c.h.bf16 %v275_v7  ;;  %v276_v11 = vunpack.c.l.bf16 %v275_v7 }
  0x17   : > { %v274_v12 = vadd.f32 %v272_v6, %v269_v5  ;;  %v273_v13 = vadd.f32 %v271_v9, %v268_v8 }
  0x19   : > { %v279_v14 = vadd.f32 %v277_v10, %v274_v12  ;;  %v278_v15 = vadd.f32 %v276_v11, %v273_v13 }
  0x1b   : > { %v283_v16 = vpack.c.bf16 %v279_v14, %v279_v14  ;;  %v282_v17 = vpack.c.bf16 %v278_v15, %v278_v15 }
  0x1d   : > { %507 = vmatprep.subr.msk.bf16.mxu0 %vm305_vm0, %v283_v16  ;;  %v307_v18 = vsel %vm305_vm0, %v282_v17, 0 }
  0x1e   : > { %327 = vmatpush1.bf16.msra.mxu0 %v307_v18 }
  0x21   : > { %508 = vmatmul.mubr.msk.bf16.vlgmr.msra.gmra.mxu0 %vm301_vm1, %v545_v19 }
  0x8d   : > { %v289_v20 = vpop.permute.xlu0 %288 }
  0x91   : > { %v294_v25 = vpop.permute.xlu0 %293 }
  0xe1   : > { %v346_v21 = vpop.f32.mrf.mxu0 }
  0xe2   : > { %v347_v22 = vadd.f32 %v346_v21, %v289_v20 }
  0xe3   : > { %v348_v23 = vpop.f32.mrf.mxu0 }
  0xe4   : > { %v349_v24 = vadd.f32 %v348_v23, %v289_v20  ;;  %v355_v27 = vmax.f32 %v347_v22, 0.0 }
  0xe5   : > { %v350_v26 = vpop.f32.mrf.mxu0 }
  0xe6   : > { %v356_v28 = vmax.f32 %v349_v24, 0.0  ;;  %v351_v29 = vadd.f32 %v350_v26, %v294_v25 }
  0xe7   : > { %v352_v30 = vpop.f32.mrf.mxu0 }
  0xe8   : > { %v516_v31 = vpack.c.bf16 %v356_v28, %v355_v27  ;;  %v353_v32 = vadd.f32 %v352_v30, %v294_v25  ;;  %v357_v33 = vmax.f32 %v351_v29, 0.0 }
  0xea   : > { %371 = vst [vmem:[%s246_s27] sm:$0xff] %v516_v31  ;;  %v358_v34 = vmax.f32 %v353_v32, 0.0  ;;  %379 = sbr.rel (!%p626_p4) target bundleno = 247 (0xf7), region = 44 }
  0xec   : > { %v517_v35 = vpack.c.bf16 %v358_v34, %v357_v33 }
  0xee   : > { %372 = vst [vmem:[%s246_s27 + $0x8] sm:$0xff] %v517_v35 }
  0xf1   : > { %v413_v36 = vld [vmem:[%s246_s27] sm:$0xff] }
  0xf2   : > { %414 = vst [vmem:[%s382_s30] sm:$0xff] %v413_v36 }
  0xf5   : > { %v415_v37 = vld [vmem:[%s246_s27 + $0x8] sm:$0xff] }
  0xf6   : > { %416 = vst [vmem:[%s382_s30 + $0x10] sm:$0xff] %v415_v37 }
  0xf7 PF: > { %p12_p8 = scmp.ge.s32.totalorder %s616_s22, 4   ;;  %s673_s18 = smov %s564_s19 }
  0xf8   : > { %s674_s19 = smov %s624_s25  ;;  %s675_s20 = smov %s616_s22 }
  0xf9   :  { %14 = sbr.rel (!%p12_p8) target bundleno = 2 (0x2), region = 114 }

// kernel: ffc_resnet_block.15
= control target key start
LH: loop header
LB: loop body
LE: loop exit
PB: predicated region body
PF: predicated region fallthrough
CT: control target
= control target key end

     0   :  { %s683_s21 = smov 0   ;;  %s685_s22 = smov 0   ;;  %s762_s0 = inlined_call_operand.vmem [shape: bf16[8,512], index: 0, kind: input, shape index: {}]   ;;  %s763_s1 = inlined_call_operand.vmem [shape: bf16[8,512], index: 1, kind: input, shape index: {}]   ;;  %s764_s2 = inlined_call_operand.vmem [shape: bf16[8,512], index: 2, kind: input, shape index: {}]   ;;  %s765_s3 = inlined_call_operand.vmem [shape: f32[16,512], index: 3, kind: input, shape index: {}]   ;;  %s766_s4 = inlined_call_operand.vmem [shape: bf16[16,8], index: 4, kind: input, shape index: {}]   ;;  %s767_s5 = inlined_call_operand.vmem [shape: f32[16,1], index: 5, kind: input, shape index: {}]   ;;  %s768_s6 = inlined_call_operand.vmem [shape: f32[16,512], index: 6, kind: output, shape index: {}]  }
   0x1   :  { %s687_s23 = smov 0  }
   0x2 LB: > { %s699_s24 = sadd.s32 4294967295, %s645_s23   ;;  %s702_s25 = sadd.s32 1, %s645_s23   ;;  %s645_s23 = sphi %s687_s23, %s772_s23   ;;  %s641_s22 = sphi %s685_s22, %s771_s22   ;;  %s637_s21 = sphi %s683_s21, %s770_s21  }
   0x3   : > { %s98_s26 = ssub.s32 %s645_s23, %s702_s25  ;;  %s101_s27 = sadd.s32 1, %s641_s22 }
   0x4   : > { %p99_p0 = scmp.eq.s32.totalorder %s98_s26, 0  ;;  %p108_p1 = scmp.ne.s32.totalorder %s641_s22, %s637_s21 }
   0x5   : > { %p109_p2 = scmp.eq.s32.totalorder %s645_s23, 0  ;;  %p180_p3 = scmp.eq.s32.totalorder %s699_s24, 1 }
   0x6   : > { %s712_s28 = scalar_select %p99_p0, %s641_s22, %s101_s27  }
   0x7   : > { %p110_p4 = por %p109_p2, %p108_p1  ;;  %p714_p5 = por %p180_p3, %p108_p1 }
   0x8   : > { %p573_p6 = scmp.ge.s32.totalorder %s645_s23, 2 }
   0xa   : > { %208 = sbr.rel (%p573_p6) target bundleno = 21 (0x15), region = 24 }
   0xf   : > { %238 = sbr.rel (!%p110_p4) target bundleno = 21 (0x15), region = 40  ;;  %s240_s30 = sand.u32 (%p110_p4), 1, %s641_s22  }
  0x10   : > { %s594_s7 = sshll.u32 (%p110_p4), %s645_s23, 4  ;;  %s574_s8 = sshll.u32 (%p110_p4), %s240_s30, 5 }
  0x11   : > { %s245_s11 = scalar_lea.vmem (%p110_p4), %s765_s3, %s594_s7  ;;  %s242_s12 = scalar_lea.vmem (%p110_p4), [#allocation2], %s574_s8 }
  0x12   : > { %v258_v0 = vld [vmem:[%s245_s11] sm:$0xff] (%p110_p4)  ;;  %v260_v1 = vld [vmem:[%s245_s11 + $0x8] sm:$0xff] (%p110_p4) }
  0x13   : > { %v262_v2 = vld [vmem:[%s245_s11 + $0x20] sm:$0xff] (%p110_p4)  ;;  %259 = vst [vmem:[%s242_s12] sm:$0xff] (%p110_p4), %v258_v0  ;;  %261 = vst [vmem:[%s242_s12 + $0x8] sm:$0xff] (%p110_p4), %v260_v1  ;;  %v264_v3 = vld [vmem:[%s245_s11 + $0x28] sm:$0xff] (%p110_p4) }
  0x14   : > { %263 = vst [vmem:[%s242_s12 + $0x10] sm:$0xff] %v262_v2  ;;  %265 = vst [vmem:[%s242_s12 + $0x18] sm:$0xff] %v264_v3 }
  0x15 PF: > { %p577_p7 = scmp.ge.s32.totalorder %s645_s23, 1  ;;  %p270_p8 = scmp.lt.s32.totalorder %s645_s23, 3 }
  0x17   : > { %p271_p9 = pnand %p577_p7, %p270_p8 }
  0x18   : > { %s580_s13 = sshll.u32 (!%p271_p9), %s699_s24, 1  ;;  %s277_s12 = sand.u32 (!%p271_p9), 1, %s637_s21  }
  0x19   : > { %274 = sbr.rel (%p271_p9) target bundleno = 261 (0x105), region = 63  ;;  %p321_p10 = scmp.lt.s32.totalorder (!%p271_p9), %s580_s13, 3 }
  0x1e   : > { %v647_v4 = vmov 0   ;;  %v358_v5 = vld [vmem:[%s767_s5] sm:$0xff]  ;;  %s774_s13 = smov (!%p321_p10, %s580_s13), 3  ;;  %v359_v6 = vld [vmem:[%s767_s5 + $0x8] sm:$0xff]  ;;  %vm379_vm0 = vcmask 1043456   ;;  %vm375_vm1 = vcmask 64512  }
  0x1f   : > { %418 = vmatprep.mubr.bf16.mxu0 %v647_v4  ;;  %621 = vset.pattern.permute.xlu0 %v647_v4  ;;  %s581_s18 = sshll.u32 %s774_s13, 2  ;;  %v622_v23 = vld [vmem:[%s766_s4] sm:$0xff]   ;;  %s578_s13 = sshll.u32 %s277_s12, 5 }
  0x20   : > { %362 = vperm.xlu0 %621, %v358_v5   ;;  %s324_s23 = scalar_lea.vmem %s762_s0, %s581_s18  ;;  %s330_s30 = scalar_lea.vmem %s763_s1, %s581_s18 }
  0x21   : > { %s336_s9 = scalar_lea.vmem %s764_s2, %s581_s18  ;;  %v341_v7 = vld [vmem:[%s324_s23] sm:$0xff]  ;;  %s279_s14 = scalar_lea.vmem [#allocation2], %s578_s13 }
  0x22   : > { %v344_v8 = vld [vmem:[%s330_s30] sm:$0xff]  ;;  %v343_v9 = vunpack.c.h.bf16 %v341_v7  ;;  %v342_v12 = vunpack.c.l.bf16 %v341_v7  ;;  %v434_v32 = vld [vmem:[%s279_s14 + $0x8] sm:$0xff]  ;;  %v435_v37 = vld [vmem:[%s279_s14 + $0x10] sm:$0xff]  ;;  %s319_s15 = scalar_lea.vmem [#allocation3], %s578_s13  ;;  %s595_s21 = sshll.u32 (%p714_p5), %s699_s24, 4 }
  0x23   : > { %v346_v10 = vunpack.c.h.bf16 %v344_v8  ;;  %v349_v11 = vld [vmem:[%s336_s9] sm:$0xff]  ;;  %v345_v13 = vunpack.c.l.bf16 %v344_v8  ;;  %v436_v42 = vld [vmem:[%s279_s14 + $0x18] sm:$0xff]  ;;  %s454_s18 = scalar_lea.vmem (%p714_p5), %s768_s6, %s595_s21 }
  0x24   : > { %367 = vperm.xlu0 %621, %v359_v6   ;;  %v351_v14 = vunpack.c.h.bf16 %v349_v11  ;;  %v350_v15 = vunpack.c.l.bf16 %v349_v11  ;;  %v433_v27 = vld [vmem:[%s279_s14] sm:$0xff] }
  0x25   : > { %v348_v16 = vadd.f32 %v346_v10, %v343_v9  ;;  %v347_v17 = vadd.f32 %v345_v13, %v342_v12 }
  0x27   : > { %v353_v18 = vadd.f32 %v351_v14, %v348_v16  ;;  %v352_v19 = vadd.f32 %v350_v15, %v347_v17 }
  0x29   : > { %v357_v20 = vpack.c.bf16 %v353_v18, %v353_v18  ;;  %v356_v21 = vpack.c.bf16 %v352_v19, %v352_v19 }
  0x2b   : > { %587 = vmatprep.subr.msk.bf16.mxu0 %vm379_vm0, %v357_v20  ;;  %v381_v22 = vsel %vm379_vm0, %v356_v21, 0 }
  0x2c   : > { %401 = vmatpush1.bf16.msra.mxu0 %v381_v22 }
  0x2f   : > { %588 = vmatmul.mubr.msk.bf16.vlgmr.msra.gmra.mxu0 %vm375_vm1, %v622_v23 }
  0x9b   : > { %v363_v24 = vpop.permute.xlu0 %362 }
  0x9f   : > { %v368_v31 = vpop.permute.xlu0 %367 }
  0xef   : > { %v420_v25 = vpop.f32.mrf.mxu0 }
  0xf0   : > { %v421_v26 = vadd.f32 %v420_v25, %v363_v24 }
  0xf1   : > { %v422_v28 = vpop.f32.mrf.mxu0 }
  0xf2   : > { %v429_v29 = vmax.f32 %v421_v26, 0.0  ;;  %v423_v30 = vadd.f32 %v422_v28, %v363_v24 }
  0xf3   : > { %v424_v33 = vpop.f32.mrf.mxu0 }
  0xf4   : > { %v437_v34 = vadd.f32 %v433_v27, %v429_v29  ;;  %v430_v35 = vmax.f32 %v423_v30, 0.0  ;;  %v425_v36 = vadd.f32 %v424_v33, %v368_v31 }
  0xf5   : > { %v426_v38 = vpop.f32.mrf.mxu0 }
  0xf6   : > { %441 = vst [vmem:[%s319_s15] sm:$0xff] %v437_v34  ;;  %v438_v39 = vadd.f32 %v434_v32, %v430_v35  ;;  %v431_v40 = vmax.f32 %v425_v36, 0.0  ;;  %v427_v41 = vadd.f32 %v426_v38, %v368_v31 }
  0xf8   : > { %442 = vst [vmem:[%s319_s15 + $0x8] sm:$0xff] %v438_v39  ;;  %v439_v43 = vadd.f32 %v435_v37, %v431_v40  ;;  %v432_v44 = vmax.f32 %v427_v41, 0.0  ;;  %451 = sbr.rel (!%p714_p5) target bundleno = 261 (0x105), region = 71 }
  0xfa   : > { %443 = vst [vmem:[%s319_s15 + $0x10] sm:$0xff] %v439_v43  ;;  %v440_v45 = vadd.f32 %v436_v42, %v432_v44 }
  0xfc   : > { %444 = vst [vmem:[%s319_s15 + $0x18] sm:$0xff] %v440_v45 }
  0xfd   : > { %v467_v46 = vld [vmem:[%s319_s15] sm:$0xff] }
  0xfe   : > { %468 = vst [vmem:[%s454_s18] sm:$0xff] %v467_v46 }
  0xff   : > { %v469_v47 = vld [vmem:[%s319_s15 + $0x8] sm:$0xff] }
 0x100   : > { %470 = vst [vmem:[%s454_s18 + $0x8] sm:$0xff] %v469_v47 }
 0x101   : > { %v471_v48 = vld [vmem:[%s319_s15 + $0x10] sm:$0xff] }
 0x102   : > { %472 = vst [vmem:[%s454_s18 + $0x20] sm:$0xff] %v471_v48 }
 0x103   : > { %v473_v49 = vld [vmem:[%s319_s15 + $0x18] sm:$0xff] }
 0x104   : > { %474 = vst [vmem:[%s454_s18 + $0x28] sm:$0xff] %v473_v49 }
 0x105 PF: > { %p13_p11 = scmp.ge.s32.totalorder %s702_s25, 4   ;;  %s770_s21 = smov %s641_s22 }
 0x106   : > { %s771_s22 = smov %s712_s28  ;;  %s772_s23 = smov %s702_s25 }
 0x107   :  { %15 = sbr.rel (!%p13_p11) target bundleno = 2 (0x2), region = 134 }

</bundles_post_ra>
